<compile_context>
chip_gen: v6e
topology: v6e:2x2x1
jax: 0.10.0
libtpu: 0.0.40
codegen_flags: <defaults>
</compile_context>

<pallas_src>
import jax
import jax.numpy as jnp
from jax import lax
from jax.experimental import pallas as pl
from jax.experimental.pallas import tpu as pltpu

# ---------------- model hyper-parameters ----------------
CHANNEL = 32
TAU = 2.0
V_TH = 1.0
ALPHA = 1.0
EPS = 1e-5

# ~2 MiB per double-buffered stream keeps all pipelines (plus the 384 KiB
# banded-weight block) well inside a 32 MiB scoped VMEM budget, which also
# fits v7x (64 MiB physical VMEM) and v5e once the limit is raised explicitly.
_BLOCK_TARGET = 2 * 1024 * 1024
_VMEM_LIMIT = 32 * 1024 * 1024


# ---------------- tiling helpers (static, trace-time) ----------------
def _tile(n, cap):
    """Largest divisor of n that is <= cap (>= 1)."""
    cap = max(1, min(n, cap))
    for d in range(cap, 0, -1):
        if n % d == 0:
            return d
    return 1


def _row_tile(rows, cap):
    """Largest multiple-of-8 divisor of `rows` <= cap, else `rows` (full)."""
    best = 0
    d = 8
    while d <= min(rows, cap):
        if rows % d == 0:
            best = d
        d += 8
    return best if best > 0 else rows


# ---------------- Pallas kernels ----------------
def conv1_lif_kernel(x_ref, b_ref, bias_ref, o_ref, cnt_ref, acc_ref, v_ref):
    """Fused conv1 (banded lane-dense matmuls) + LIF over T for a sample tile.

    x_ref:    (T, NB, H, WC) f32   input, channels-last, lane-dense (WC=W*C)
    b_ref:    (3, WC, WC)    bf16  block-banded conv1 weights, one per H-tap
    bias_ref: (1, WC)        f32   conv1 bias tiled over W
    o_ref:    (T, NB, H, WC) bf16  spikes (exact in bf16)
    cnt_ref:  (1, 1, WC)     f32   per-block spike counts (free bn1 stats)
    acc_ref:  VMEM (NB, H, WC) f32 conv accumulator (H-shift combine)
    v_ref:    VMEM (NB, H, WC) f32 membrane potential
    """
    T, NB, H, WC = x_ref.shape
    M = NB * H
    v_ref[...] = jnp.zeros_like(v_ref)
    bias = bias_ref[...]                       # hoisted out of the T loop
    b0 = b_ref[0]
    b1 = b_ref[1]
    b2 = b_ref[2]

    def step(t, cnt):
        # bf16 MXU operands, f32 accumulate.
        xt = x_ref[t].reshape(M, WC).astype(jnp.bfloat16)
        y0 = jnp.dot(xt, b0, preferred_element_type=jnp.float32).reshape(NB, H, WC)
        y1 = jnp.dot(xt, b1, preferred_element_type=jnp.float32).reshape(NB, H, WC)
        y2 = jnp.dot(xt, b2, preferred_element_type=jnp.float32).reshape(NB, H, WC)
        # out[h] = y0[h-1] + y1[h] + y2[h+1]; missing rows are the zero
        # H-padding at sample edges (W-padding is baked into the banded B).
        acc_ref[...] = y1 + bias
        acc_ref[:, 1:, :] += y0[:, :H - 1, :]
        acc_ref[:, :H - 1, :] += y2[:, 1:, :]
        conv = acc_ref[...]
        # LIF (f32 elementwise): decay_input=True, hard reset to 0.
        v = v_ref[...]
        v = v + (conv - v) * (1.0 / TAU)
        spike = v >= V_TH
        v_ref[...] = jnp.where(spike, 0.0, v)
        sp = spike.astype(jnp.float32)
        o_ref[t] = sp.astype(o_ref.dtype)
        return cnt + jnp.sum(sp.reshape(M, WC), axis=0, keepdims=True)

    cnt = lax.fori_loop(0, T, step, jnp.zeros((1, WC), jnp.float32),
                        unroll=True)
    cnt_ref[0] = cnt


def conv2_kernel(s_ref, b_ref, bias_ref, add_ref, o_ref, st_ref):
    """conv2 on LIF1 spikes with bn1 folded in (banded lane-dense matmuls).

    s_ref:    (TB, H, WC) bf16  spike tile ((t, n) samples)
    b_ref:    (3, WC, WC) bf16  banded conv2 weights, bn1 scale folded per-cin
    bias_ref: (1, WC) f32       conv2 bias tiled over W
    add_ref:  (1, WC) f32       bn1 shift / bn1 scale (applied pre-pad)
    o_ref:    (TB, H, WC) f32   conv2 output (bn2 affine applied in res_lif)
    st_ref:   (1, 2, WC) f32    per-block [sum, sumsq] of the pre-bias output
    """
    TB, H, WC = s_ref.shape
    M = TB * H
    inp = (s_ref[...].astype(jnp.float32).reshape(M, WC)
           + add_ref[...]).astype(jnp.bfloat16)
    y0 = jnp.dot(inp, b_ref[0], preferred_element_type=jnp.float32).reshape(TB, H, WC)
    y1 = jnp.dot(inp, b_ref[1], preferred_element_type=jnp.float32).reshape(TB, H, WC)
    y2 = jnp.dot(inp, b_ref[2], preferred_element_type=jnp.float32).reshape(TB, H, WC)
    o_ref[...] = y1
    o_ref[:, 1:, :] += y0[:, :H - 1, :]
    o_ref[:, :H - 1, :] += y2[:, 1:, :]
    conv = o_ref[...].reshape(M, WC)            # pre-bias conv output
    o_ref[...] = (conv + bias_ref[...]).reshape(TB, H, WC)
    # One-pass tdBN2 statistics on the pre-bias values; bias is re-added to
    # the mean outside (variance is shift-invariant -> slightly better
    # centering for the one-pass sumsq).
    st_ref[0, 0:1, :] = jnp.sum(conv, axis=0, keepdims=True)
    st_ref[0, 1:2, :] = jnp.sum(conv * conv, axis=0, keepdims=True)


def res_lif_kernel(x_ref, c_ref, scale_ref, shift_ref, o_ref, v_ref):
    """out = LIF(x + bn2(c)) with the bn2 affine fused into the input path.

    x_ref, c_ref: (T, TR, WC) f32   scale_ref, shift_ref: (1, WC) f32
    o_ref: (T, TR, WC) f32          v_ref: VMEM (TR, WC) f32
    """
    T = x_ref.shape[0]
    v_ref[...] = jnp.zeros_like(v_ref)
    scale = scale_ref[...]              # hoisted out of the T loop
    shift = shift_ref[...]

    def step(t, carry):
        inp = x_ref[t] + c_ref[t] * scale + shift
        v = v_ref[...]
        v = v + (inp - v) * (1.0 / TAU)
        spike = v >= V_TH
        v_ref[...] = jnp.where(spike, 0.0, v)   # hard reset without a mul
        o_ref[t] = spike.astype(o_ref.dtype)
        return carry

    lax.fori_loop(0, T, step, 0, unroll=True)


# ---------------- pallas_call wrappers ----------------
def conv1_lif(x_ld, B1, bias1, n_tile):
    """x: (T, N, H, WC) -> (spikes (T, N, H, WC) bf16, counts (G, 1, WC))."""
    T, N, H, WC = x_ld.shape
    G = N // n_tile
    return pl.pallas_call(
        conv1_lif_kernel,
        out_shape=(jax.ShapeDtypeStruct((T, N, H, WC), jnp.bfloat16),
                   jax.ShapeDtypeStruct((G, 1, WC), jnp.float32)),
        grid=(G,),
        in_specs=[
            pl.BlockSpec((T, n_tile, H, WC), lambda i: (0, i, 0, 0)),
            pl.BlockSpec((3, WC, WC), lambda i: (0, 0, 0)),
            pl.BlockSpec((1, WC), lambda i: (0, 0)),
        ],
        out_specs=(pl.BlockSpec((T, n_tile, H, WC), lambda i: (0, i, 0, 0)),
                   pl.BlockSpec((1, 1, WC), lambda i: (i, 0, 0))),
        scratch_shapes=[pltpu.VMEM((n_tile, H, WC), jnp.float32),
                        pltpu.VMEM((n_tile, H, WC), jnp.float32)],
        compiler_params=pltpu.CompilerParams(
            dimension_semantics=("parallel",),
            vmem_limit_bytes=_VMEM_LIMIT),
    )(x_ld, B1, bias1)


def conv2(s_tn, B2s, bias2, add_row, tb):
    """s: (TN, H, WC) bf16 -> (conv2 out (TN, H, WC) f32, stats (G, 2, WC))."""
    TN, H, WC = s_tn.shape
    G = TN // tb
    return pl.pallas_call(
        conv2_kernel,
        out_shape=(jax.ShapeDtypeStruct((TN, H, WC), jnp.float32),
                   jax.ShapeDtypeStruct((G, 2, WC), jnp.float32)),
        grid=(G,),
        in_specs=[
            pl.BlockSpec((tb, H, WC), lambda i: (i, 0, 0)),
            pl.BlockSpec((3, WC, WC), lambda i: (0, 0, 0)),
            pl.BlockSpec((1, WC), lambda i: (0, 0)),
            pl.BlockSpec((1, WC), lambda i: (0, 0)),
        ],
        out_specs=(pl.BlockSpec((tb, H, WC), lambda i: (i, 0, 0)),
                   pl.BlockSpec((1, 2, WC), lambda i: (i, 0, 0))),
        compiler_params=pltpu.CompilerParams(
            dimension_semantics=("parallel",),
            vmem_limit_bytes=_VMEM_LIMIT),
    )(s_tn, B2s, bias2, add_row)


def res_lif(x_trw, c_trw, scale_wc, shift_wc, tile_r):
    """out = LIF(x + c*scale + shift), tiled over the spatial rows."""
    T, R, WC = x_trw.shape
    G = R // tile_r
    return pl.pallas_call(
        res_lif_kernel,
        out_shape=jax.ShapeDtypeStruct((T, R, WC), jnp.float32),
        grid=(G,),
        in_specs=[
            pl.BlockSpec((T, tile_r, WC), lambda i: (0, i, 0)),
            pl.BlockSpec((T, tile_r, WC), lambda i: (0, i, 0)),
            pl.BlockSpec((1, WC), lambda i: (0, 0)),
            pl.BlockSpec((1, WC), lambda i: (0, 0)),
        ],
        out_specs=pl.BlockSpec((T, tile_r, WC), lambda i: (0, i, 0)),
        scratch_shapes=[pltpu.VMEM((tile_r, WC), jnp.float32)],
        compiler_params=pltpu.CompilerParams(
            dimension_semantics=("parallel",),
            vmem_limit_bytes=_VMEM_LIMIT),
    )(x_trw, c_trw, scale_wc, shift_wc)


# ---------------- parameter / weight transforms ----------------
def _banded_weights(w_hwio, W, C):
    """(3, 3, Cin, Cout) HWIO -> (3, W*C, W*C) block-banded matrices.

    B[dy, win*C+cin, wout*C+cout] = w[dy, dx, cin, cout] with dx = win-wout+1;
    out-of-range W taps are simply absent, which *is* the zero W-padding.
    """
    WC = W * C
    B = jnp.zeros((3, WC, WC), w_hwio.dtype)
    for dx in range(3):
        for wout in range(W):
            win = wout + dx - 1
            if 0 <= win < W:
                B = B.at[:, win * C:(win + 1) * C,
                         wout * C:(wout + 1) * C].set(w_hwio[:, dx])
    return B


def _bn_affine(mean, var, weight, bias):
    """tdBN as a per-channel affine: y = x*scale + shift."""
    scale = (ALPHA * V_TH) * lax.rsqrt(var + EPS) * weight
    shift = bias - mean * scale
    return scale, shift


def init_params(key, C=CHANNEL):
    """Deterministic init matching PyTorch defaults (HWIO conv weights)."""
    k1, k2, k3, k4 = jax.random.split(key, 4)
    bound = 1.0 / jnp.sqrt(float(C * 3 * 3))      # conv kaiming-uniform bound
    w1 = jax.random.uniform(k1, (3, 3, C, C), jnp.float32, -bound, bound)
    b1 = jax.random.uniform(k2, (C,), jnp.float32, -bound, bound)
    w2 = jax.random.uniform(k3, (3, 3, C, C), jnp.float32, -bound, bound)
    b2 = jax.random.uniform(k4, (C,), jnp.float32, -bound, bound)
    return dict(
        conv1_w=w1, conv1_b=b1, conv2_w=w2, conv2_b=b2,
        bn1_w=jnp.ones((C,), jnp.float32), bn1_b=jnp.zeros((C,), jnp.float32),
        bn2_w=jnp.ones((C,), jnp.float32), bn2_b=jnp.zeros((C,), jnp.float32),
    )


# ---------------- forward pass ----------------
@jax.jit
def resblock_forward(x, params):
    """x: (T, N, C, H, W) float32 -> (T, N, C, H, W) float32 spikes."""
    T, N, C, H, W = x.shape
    WC = W * C
    TN = T * N
    R = N * H
    n_per_c = float(T * N * H * W)            # elements per channel for tdBN

    # Channels-last, lane-dense views (the transpose is a cheap XLA op).
    xc = jnp.transpose(x, (0, 1, 3, 4, 2))    # (T, N, H, W, C)
    x_ld = xc.reshape(T, N, H, WC)

    # Block-banded (W*C, W*C) weight matrices, one per H-tap; bf16 operands.
    B1 = _banded_weights(params["conv1_w"], W, C).astype(jnp.bfloat16)
    B2 = _banded_weights(params["conv2_w"], W, C)          # f32, scaled below
    bias1 = jnp.tile(params["conv1_b"], W).reshape(1, WC)
    bias2 = jnp.tile(params["conv2_b"], W).reshape(1, WC)

    # Tile sizes: ~2 MiB per stream, and G >= 2 wherever the shape allows so
    # both v7x TensorCores get work.
    n_cap = max(1, _BLOCK_TARGET // (T * H * WC * 4))
    n_tile = _tile(N, max(1, min(n_cap, N // 2)))
    tb_cap = max(1, _BLOCK_TARGET // (H * WC * 6))
    tb = _tile(TN, max(1, min(tb_cap, TN // 2)))
    r_cap = max(8, _BLOCK_TARGET // (T * WC * 12))
    tile_r = _row_tile(R, max(8, min(r_cap, R // 2)))

    # ---- fused conv1 + LIF1 (no HBM round trip for conv1 activations) ----
    s1, cnt = conv1_lif(x_ld, B1, bias1, n_tile)
    # bn1 stats are free: spikes are binary -> mean = p, var = p*(1-p).
    count_c = cnt.sum(axis=(0, 1)).reshape(W, C).sum(axis=0)
    mean1 = count_c / n_per_c
    var1 = mean1 - mean1 * mean1
    scale1, shift1 = _bn_affine(mean1, var1, params["bn1_w"], params["bn1_b"])

    # ---- conv2 with bn1 folded in: scale goes into the banded weight rows,
    # the shift becomes an additive per-lane constant on the pre-pad spikes.
    B2s = (B2 * jnp.tile(scale1, W)[None, :, None]).astype(jnp.bfloat16)
    add_row = jnp.tile(shift1 / scale1, W).reshape(1, WC)
    c2, st = conv2(s1.reshape(TN, H, WC), B2s, bias2, add_row, tb)

    # bn2 stats (one-pass, pre-bias values; bias re-added to the mean).
    st = st.sum(axis=0)                                   # (2, WC)
    sum_c = st[0].reshape(W, C).sum(axis=0)
    sq_c = st[1].reshape(W, C).sum(axis=0)
    mean_nb = sum_c / n_per_c
    var2 = sq_c / n_per_c - mean_nb * mean_nb
    mean2 = mean_nb + params["conv2_b"]
    scale2, shift2 = _bn_affine(mean2, var2, params["bn2_w"], params["bn2_b"])

    # ---- residual add + bn2 affine + LIF2, fused, lane-dense rows ----
    out = res_lif(x_ld.reshape(T, R, WC), c2.reshape(T, R, WC),
                  jnp.tile(scale2, W).reshape(1, WC),
                  jnp.tile(shift2, W).reshape(1, WC), tile_r)

    return jnp.transpose(out.reshape(T, N, H, W, C), (0, 1, 4, 2, 3))


if __name__ == "__main__":
    key = jax.random.PRNGKey(0)
    kx, kp = jax.random.split(key)
    T, N, C, H, W = 4, 2, CHANNEL, 8, 8
    x = jax.random.normal(kx, (T, N, C, H, W), jnp.float32)
    params = init_params(kp)

    out = resblock_forward(x, params)
    jax.block_until_ready(out)
    assert out.shape == (T, N, C, H, W)
    print("KERNEL_OK")
</pallas_src>

<mosaic_0001>
module attributes {stable_mosaic.version = 11 : i64} {
  func.func @conv1_lif_kernel(%arg0: i32, %arg1: memref<4x1x8x256xf32, #tpu.memory_space<vmem>>, %arg2: memref<3x256x256xbf16, #tpu.memory_space<vmem>>, %arg3: memref<1x256xf32, #tpu.memory_space<vmem>>, %arg4: memref<4x1x8x256xbf16, #tpu.memory_space<vmem>>, %arg5: memref<1x1x256xf32, #tpu.memory_space<vmem>>, %arg6: memref<1x8x256xf32, #tpu.memory_space<vmem>>, %arg7: memref<1x8x256xf32, #tpu.memory_space<vmem>>) attributes {dimension_semantics = [#tpu.dimension_semantics<parallel>], iteration_bounds = array<i64: 2>, scalar_prefetch = 0 : i64, scratch_operands = 2 : i64, tpu.core_type = #tpu.core_type<tc>, window_params = [{transform_indices = @transform_0, window_bounds = array<i64: 4, 1, 8, 256>}, {pipeline_mode = #tpu.pipeline_mode<synchronous>, transform_indices = @transform_1, window_bounds = array<i64: 3, 256, 256>}, {pipeline_mode = #tpu.pipeline_mode<synchronous>, transform_indices = @transform_2, window_bounds = array<i64: 1, 256>}, {transform_indices = @transform_3, window_bounds = array<i64: 4, 1, 8, 256>}, {transform_indices = @transform_4, window_bounds = array<i64: 1, 1, 256>}]} {
    %cst = arith.constant 0.000000e+00 : f32
    %0 = vector.broadcast %cst : f32 to vector<1x8x256xf32>
    %c0 = arith.constant 0 : index
    %c0_0 = arith.constant 0 : index
    %c0_1 = arith.constant 0 : index
    %1 = vector.load %arg7[%c0, %c0_0, %c0_1] : memref<1x8x256xf32, #tpu.memory_space<vmem>>, vector<1x8x256xf32>
    tpu.vector_store %arg7[%c0, %c0_0, %c0_1], %0 {strides = array<i32>} : memref<1x8x256xf32, #tpu.memory_space<vmem>>, vector<1x8x256xf32>,
    %c0_2 = arith.constant 0 : index
    %c0_3 = arith.constant 0 : index
    %2 = vector.load %arg3[%c0_2, %c0_3] : memref<1x256xf32, #tpu.memory_space<vmem>>, vector<1x256xf32>
    %c0_4 = arith.constant 0 : index
    %c0_5 = arith.constant 0 : index
    %c0_6 = arith.constant 0 : index
    %3 = vector.load %arg2[%c0_4, %c0_5, %c0_6] : memref<3x256x256xbf16, #tpu.memory_space<vmem>>, vector<1x256x256xbf16>
    %4 = vector.shape_cast %3 : vector<1x256x256xbf16> to vector<256x256xbf16>
    %c1 = arith.constant 1 : index
    %c0_7 = arith.constant 0 : index
    %c0_8 = arith.constant 0 : index
    %5 = vector.load %arg2[%c1, %c0_7, %c0_8] : memref<3x256x256xbf16, #tpu.memory_space<vmem>>, vector<1x256x256xbf16>
    %6 = vector.shape_cast %5 : vector<1x256x256xbf16> to vector<256x256xbf16>
    %c2 = arith.constant 2 : index
    %c0_9 = arith.constant 0 : index
    %c0_10 = arith.constant 0 : index
    %7 = vector.load %arg2[%c2, %c0_9, %c0_10] : memref<3x256x256xbf16, #tpu.memory_space<vmem>>, vector<1x256x256xbf16>
    %8 = vector.shape_cast %7 : vector<1x256x256xbf16> to vector<256x256xbf16>
    %cst_11 = arith.constant 0.000000e+00 : f32
    %9 = vector.broadcast %cst_11 : f32 to vector<1x256xf32>
    %c0_i32 = arith.constant 0 : i32
    %10 = arith.index_cast %c0_i32 : i32 to index
    %c0_12 = arith.constant 0 : index
    %c0_13 = arith.constant 0 : index
    %c0_14 = arith.constant 0 : index
    %11 = vector.load %arg1[%10, %c0_12, %c0_13, %c0_14] : memref<4x1x8x256xf32, #tpu.memory_space<vmem>>, vector<1x1x8x256xf32>
    %12 = vector.shape_cast %11 : vector<1x1x8x256xf32> to vector<1x8x256xf32>
    %13 = vector.shape_cast %12 : vector<1x8x256xf32> to vector<8x256xf32>
    %14 = arith.truncf %13 : vector<8x256xf32> to vector<8x256xbf16>
    %cst_15 = arith.constant dense<0.000000e+00> : vector<8x256xf32>
    %15 = tpu.matmul %14, %4, %cst_15 {dimension_numbers = #tpu.dot_dimension_numbers<[1], [0], [0], [1], [0, 0, 1, 1], [], []>} : vector<8x256xbf16>, vector<256x256xbf16>, vector<8x256xf32> -> vector<8x256xf32>
    %16 = vector.shape_cast %15 : vector<8x256xf32> to vector<1x8x256xf32>
    %cst_16 = arith.constant dense<0.000000e+00> : vector<8x256xf32>
    %17 = tpu.matmul %14, %6, %cst_16 {dimension_numbers = #tpu.dot_dimension_numbers<[1], [0], [0], [1], [0, 0, 1, 1], [], []>} : vector<8x256xbf16>, vector<256x256xbf16>, vector<8x256xf32> -> vector<8x256xf32>
    %18 = vector.shape_cast %17 : vector<8x256xf32> to vector<1x8x256xf32>
    %cst_17 = arith.constant dense<0.000000e+00> : vector<8x256xf32>
    %19 = tpu.matmul %14, %8, %cst_17 {dimension_numbers = #tpu.dot_dimension_numbers<[1], [0], [0], [1], [0, 0, 1, 1], [], []>} : vector<8x256xbf16>, vector<256x256xbf16>, vector<8x256xf32> -> vector<8x256xf32>
    %20 = vector.shape_cast %19 : vector<8x256xf32> to vector<1x8x256xf32>
    %21 = vector.shape_cast %2 : vector<1x256xf32> to vector<1x1x256xf32>
    %22 = vector.broadcast %21 : vector<1x1x256xf32> to vector<1x8x256xf32>
    %23 = arith.addf %18, %22 : vector<1x8x256xf32>
    %c0_18 = arith.constant 0 : index
    %c0_19 = arith.constant 0 : index
    %c0_20 = arith.constant 0 : index
    %24 = vector.load %arg6[%c0_18, %c0_19, %c0_20] : memref<1x8x256xf32, #tpu.memory_space<vmem>>, vector<1x8x256xf32>
    tpu.vector_store %arg6[%c0_18, %c0_19, %c0_20], %23 {strides = array<i32>} : memref<1x8x256xf32, #tpu.memory_space<vmem>>, vector<1x8x256xf32>,
    %c0_21 = arith.constant 0 : index
    %c1_22 = arith.constant 1 : index
    %c0_23 = arith.constant 0 : index
    %25 = vector.load %arg6[%c0_21, %c1_22, %c0_23] : memref<1x8x256xf32, #tpu.memory_space<vmem>>, vector<1x7x256xf32>
    %26 = vector.extract_strided_slice %16 {offsets = [0, 0, 0], sizes = [1, 7, 256], strides = [1, 1, 1]} : vector<1x8x256xf32> to vector<1x7x256xf32>
    %27 = arith.addf %25, %26 : vector<1x7x256xf32>
    %c0_24 = arith.constant 0 : index
    %c1_25 = arith.constant 1 : index
    %c0_26 = arith.constant 0 : index
    %28 = vector.load %arg6[%c0_24, %c1_25, %c0_26] : memref<1x8x256xf32, #tpu.memory_space<vmem>>, vector<1x7x256xf32>
    tpu.vector_store %arg6[%c0_24, %c1_25, %c0_26], %27 {strides = array<i32>} : memref<1x8x256xf32, #tpu.memory_space<vmem>>, vector<1x7x256xf32>,
    %c0_27 = arith.constant 0 : index
    %c0_28 = arith.constant 0 : index
    %c0_29 = arith.constant 0 : index
    %29 = vector.load %arg6[%c0_27, %c0_28, %c0_29] : memref<1x8x256xf32, #tpu.memory_space<vmem>>, vector<1x7x256xf32>
    %30 = vector.extract_strided_slice %20 {offsets = [0, 1, 0], sizes = [1, 7, 256], strides = [1, 1, 1]} : vector<1x8x256xf32> to vector<1x7x256xf32>
    %31 = arith.addf %29, %30 : vector<1x7x256xf32>
    %c0_30 = arith.constant 0 : index
    %c0_31 = arith.constant 0 : index
    %c0_32 = arith.constant 0 : index
    %32 = vector.load %arg6[%c0_30, %c0_31, %c0_32] : memref<1x8x256xf32, #tpu.memory_space<vmem>>, vector<1x7x256xf32>
    tpu.vector_store %arg6[%c0_30, %c0_31, %c0_32], %31 {strides = array<i32>} : memref<1x8x256xf32, #tpu.memory_space<vmem>>, vector<1x7x256xf32>,
    %c0_33 = arith.constant 0 : index
    %c0_34 = arith.constant 0 : index
    %c0_35 = arith.constant 0 : index
    %33 = vector.load %arg6[%c0_33, %c0_34, %c0_35] : memref<1x8x256xf32, #tpu.memory_space<vmem>>, vector<1x8x256xf32>
    %c0_36 = arith.constant 0 : index
    %c0_37 = arith.constant 0 : index
    %c0_38 = arith.constant 0 : index
    %34 = vector.load %arg7[%c0_36, %c0_37, %c0_38] : memref<1x8x256xf32, #tpu.memory_space<vmem>>, vector<1x8x256xf32>
    %35 = arith.subf %33, %34 : vector<1x8x256xf32>
    %cst_39 = arith.constant 5.000000e-01 : f32
    %36 = vector.broadcast %cst_39 : f32 to vector<1x8x256xf32>
    %37 = arith.mulf %35, %36 : vector<1x8x256xf32>
    %38 = arith.addf %34, %37 : vector<1x8x256xf32>
    %cst_40 = arith.constant 1.000000e+00 : f32
    %39 = vector.broadcast %cst_40 : f32 to vector<1x8x256xf32>
    %40 = arith.cmpf oge, %38, %39 : vector<1x8x256xf32>
    %cst_41 = arith.constant 0.000000e+00 : f32
    %41 = vector.broadcast %cst_41 : f32 to vector<1x8x256xf32>
    %42 = arith.select %40, %41, %38 : vector<1x8x256xi1>, vector<1x8x256xf32>
    %c0_42 = arith.constant 0 : index
    %c0_43 = arith.constant 0 : index
    %c0_44 = arith.constant 0 : index
    %43 = vector.load %arg7[%c0_42, %c0_43, %c0_44] : memref<1x8x256xf32, #tpu.memory_space<vmem>>, vector<1x8x256xf32>
    tpu.vector_store %arg7[%c0_42, %c0_43, %c0_44], %42 {strides = array<i32>} : memref<1x8x256xf32, #tpu.memory_space<vmem>>, vector<1x8x256xf32>,
    %44 = arith.extui %40 : vector<1x8x256xi1> to vector<1x8x256xi32>
    %45 = arith.sitofp %44 : vector<1x8x256xi32> to vector<1x8x256xf32>
    %46 = arith.truncf %45 : vector<1x8x256xf32> to vector<1x8x256xbf16>
    %47 = arith.index_cast %c0_i32 : i32 to index
    %c0_45 = arith.constant 0 : index
    %c0_46 = arith.constant 0 : index
    %c0_47 = arith.constant 0 : index
    %48 = vector.load %arg4[%47, %c0_45, %c0_46, %c0_47] : memref<4x1x8x256xbf16, #tpu.memory_space<vmem>>, vector<1x1x8x256xbf16>
    %49 = vector.shape_cast %48 : vector<1x1x8x256xbf16> to vector<1x8x256xbf16>
    %50 = vector.shape_cast %46 : vector<1x8x256xbf16> to vector<1x1x8x256xbf16>
    tpu.vector_store %arg4[%47, %c0_45, %c0_46, %c0_47], %50 {strides = array<i32>} : memref<4x1x8x256xbf16, #tpu.memory_space<vmem>>, vector<1x1x8x256xbf16>,
    %51 = vector.shape_cast %45 : vector<1x8x256xf32> to vector<8x256xf32>
    %cst_48 = arith.constant dense<0.000000e+00> : vector<256xf32>
    %52 = vector.multi_reduction <add>, %51, %cst_48 [0] : vector<8x256xf32> to vector<256xf32>
    %53 = vector.shape_cast %52 : vector<256xf32> to vector<1x256xf32>
    %54 = arith.addf %9, %53 : vector<1x256xf32>
    %c1_i32 = arith.constant 1 : i32
    %55 = arith.index_cast %c1_i32 : i32 to index
    %c0_49 = arith.constant 0 : index
    %c0_50 = arith.constant 0 : index
    %c0_51 = arith.constant 0 : index
    %56 = vector.load %arg1[%55, %c0_49, %c0_50, %c0_51] : memref<4x1x8x256xf32, #tpu.memory_space<vmem>>, vector<1x1x8x256xf32>
    %57 = vector.shape_cast %56 : vector<1x1x8x256xf32> to vector<1x8x256xf32>
    %58 = vector.shape_cast %57 : vector<1x8x256xf32> to vector<8x256xf32>
    %59 = arith.truncf %58 : vector<8x256xf32> to vector<8x256xbf16>
    %cst_52 = arith.constant dense<0.000000e+00> : vector<8x256xf32>
    %60 = tpu.matmul %59, %4, %cst_52 {dimension_numbers = #tpu.dot_dimension_numbers<[1], [0], [0], [1], [0, 0, 1, 1], [], []>} : vector<8x256xbf16>, vector<256x256xbf16>, vector<8x256xf32> -> vector<8x256xf32>
    %61 = vector.shape_cast %60 : vector<8x256xf32> to vector<1x8x256xf32>
    %cst_53 = arith.constant dense<0.000000e+00> : vector<8x256xf32>
    %62 = tpu.matmul %59, %6, %cst_53 {dimension_numbers = #tpu.dot_dimension_numbers<[1], [0], [0], [1], [0, 0, 1, 1], [], []>} : vector<8x256xbf16>, vector<256x256xbf16>, vector<8x256xf32> -> vector<8x256xf32>
    %63 = vector.shape_cast %62 : vector<8x256xf32> to vector<1x8x256xf32>
    %cst_54 = arith.constant dense<0.000000e+00> : vector<8x256xf32>
    %64 = tpu.matmul %59, %8, %cst_54 {dimension_numbers = #tpu.dot_dimension_numbers<[1], [0], [0], [1], [0, 0, 1, 1], [], []>} : vector<8x256xbf16>, vector<256x256xbf16>, vector<8x256xf32> -> vector<8x256xf32>
    %65 = vector.shape_cast %64 : vector<8x256xf32> to vector<1x8x256xf32>
    %66 = vector.shape_cast %2 : vector<1x256xf32> to vector<1x1x256xf32>
    %67 = vector.broadcast %66 : vector<1x1x256xf32> to vector<1x8x256xf32>
    %68 = arith.addf %63, %67 : vector<1x8x256xf32>
    %c0_55 = arith.constant 0 : index
    %c0_56 = arith.constant 0 : index
    %c0_57 = arith.constant 0 : index
    %69 = vector.load %arg6[%c0_55, %c0_56, %c0_57] : memref<1x8x256xf32, #tpu.memory_space<vmem>>, vector<1x8x256xf32>
    tpu.vector_store %arg6[%c0_55, %c0_56, %c0_57], %68 {strides = array<i32>} : memref<1x8x256xf32, #tpu.memory_space<vmem>>, vector<1x8x256xf32>,
    %c0_58 = arith.constant 0 : index
    %c1_59 = arith.constant 1 : index
    %c0_60 = arith.constant 0 : index
    %70 = vector.load %arg6[%c0_58, %c1_59, %c0_60] : memref<1x8x256xf32, #tpu.memory_space<vmem>>, vector<1x7x256xf32>
    %71 = vector.extract_strided_slice %61 {offsets = [0, 0, 0], sizes = [1, 7, 256], strides = [1, 1, 1]} : vector<1x8x256xf32> to vector<1x7x256xf32>
    %72 = arith.addf %70, %71 : vector<1x7x256xf32>
    %c0_61 = arith.constant 0 : index
    %c1_62 = arith.constant 1 : index
    %c0_63 = arith.constant 0 : index
    %73 = vector.load %arg6[%c0_61, %c1_62, %c0_63] : memref<1x8x256xf32, #tpu.memory_space<vmem>>, vector<1x7x256xf32>
    tpu.vector_store %arg6[%c0_61, %c1_62, %c0_63], %72 {strides = array<i32>} : memref<1x8x256xf32, #tpu.memory_space<vmem>>, vector<1x7x256xf32>,
    %c0_64 = arith.constant 0 : index
    %c0_65 = arith.constant 0 : index
    %c0_66 = arith.constant 0 : index
    %74 = vector.load %arg6[%c0_64, %c0_65, %c0_66] : memref<1x8x256xf32, #tpu.memory_space<vmem>>, vector<1x7x256xf32>
    %75 = vector.extract_strided_slice %65 {offsets = [0, 1, 0], sizes = [1, 7, 256], strides = [1, 1, 1]} : vector<1x8x256xf32> to vector<1x7x256xf32>
    %76 = arith.addf %74, %75 : vector<1x7x256xf32>
    %c0_67 = arith.constant 0 : index
    %c0_68 = arith.constant 0 : index
    %c0_69 = arith.constant 0 : index
    %77 = vector.load %arg6[%c0_67, %c0_68, %c0_69] : memref<1x8x256xf32, #tpu.memory_space<vmem>>, vector<1x7x256xf32>
    tpu.vector_store %arg6[%c0_67, %c0_68, %c0_69], %76 {strides = array<i32>} : memref<1x8x256xf32, #tpu.memory_space<vmem>>, vector<1x7x256xf32>,
    %c0_70 = arith.constant 0 : index
    %c0_71 = arith.constant 0 : index
    %c0_72 = arith.constant 0 : index
    %78 = vector.load %arg6[%c0_70, %c0_71, %c0_72] : memref<1x8x256xf32, #tpu.memory_space<vmem>>, vector<1x8x256xf32>
    %c0_73 = arith.constant 0 : index
    %c0_74 = arith.constant 0 : index
    %c0_75 = arith.constant 0 : index
    %79 = vector.load %arg7[%c0_73, %c0_74, %c0_75] : memref<1x8x256xf32, #tpu.memory_space<vmem>>, vector<1x8x256xf32>
    %80 = arith.subf %78, %79 : vector<1x8x256xf32>
    %cst_76 = arith.constant 5.000000e-01 : f32
    %81 = vector.broadcast %cst_76 : f32 to vector<1x8x256xf32>
    %82 = arith.mulf %80, %81 : vector<1x8x256xf32>
    %83 = arith.addf %79, %82 : vector<1x8x256xf32>
    %cst_77 = arith.constant 1.000000e+00 : f32
    %84 = vector.broadcast %cst_77 : f32 to vector<1x8x256xf32>
    %85 = arith.cmpf oge, %83, %84 : vector<1x8x256xf32>
    %cst_78 = arith.constant 0.000000e+00 : f32
    %86 = vector.broadcast %cst_78 : f32 to vector<1x8x256xf32>
    %87 = arith.select %85, %86, %83 : vector<1x8x256xi1>, vector<1x8x256xf32>
    %c0_79 = arith.constant 0 : index
    %c0_80 = arith.constant 0 : index
    %c0_81 = arith.constant 0 : index
    %88 = vector.load %arg7[%c0_79, %c0_80, %c0_81] : memref<1x8x256xf32, #tpu.memory_space<vmem>>, vector<1x8x256xf32>
    tpu.vector_store %arg7[%c0_79, %c0_80, %c0_81], %87 {strides = array<i32>} : memref<1x8x256xf32, #tpu.memory_space<vmem>>, vector<1x8x256xf32>,
    %89 = arith.extui %85 : vector<1x8x256xi1> to vector<1x8x256xi32>
    %90 = arith.sitofp %89 : vector<1x8x256xi32> to vector<1x8x256xf32>
    %91 = arith.truncf %90 : vector<1x8x256xf32> to vector<1x8x256xbf16>
    %92 = arith.index_cast %c1_i32 : i32 to index
    %c0_82 = arith.constant 0 : index
    %c0_83 = arith.constant 0 : index
    %c0_84 = arith.constant 0 : index
    %93 = vector.load %arg4[%92, %c0_82, %c0_83, %c0_84] : memref<4x1x8x256xbf16, #tpu.memory_space<vmem>>, vector<1x1x8x256xbf16>
    %94 = vector.shape_cast %93 : vector<1x1x8x256xbf16> to vector<1x8x256xbf16>
    %95 = vector.shape_cast %91 : vector<1x8x256xbf16> to vector<1x1x8x256xbf16>
    tpu.vector_store %arg4[%92, %c0_82, %c0_83, %c0_84], %95 {strides = array<i32>} : memref<4x1x8x256xbf16, #tpu.memory_space<vmem>>, vector<1x1x8x256xbf16>,
    %96 = vector.shape_cast %90 : vector<1x8x256xf32> to vector<8x256xf32>
    %cst_85 = arith.constant dense<0.000000e+00> : vector<256xf32>
    %97 = vector.multi_reduction <add>, %96, %cst_85 [0] : vector<8x256xf32> to vector<256xf32>
    %98 = vector.shape_cast %97 : vector<256xf32> to vector<1x256xf32>
    %99 = arith.addf %54, %98 : vector<1x256xf32>
    %c2_i32 = arith.constant 2 : i32
    %100 = arith.index_cast %c2_i32 : i32 to index
    %c0_86 = arith.constant 0 : index
    %c0_87 = arith.constant 0 : index
    %c0_88 = arith.constant 0 : index
    %101 = vector.load %arg1[%100, %c0_86, %c0_87, %c0_88] : memref<4x1x8x256xf32, #tpu.memory_space<vmem>>, vector<1x1x8x256xf32>
    %102 = vector.shape_cast %101 : vector<1x1x8x256xf32> to vector<1x8x256xf32>
    %103 = vector.shape_cast %102 : vector<1x8x256xf32> to vector<8x256xf32>
    %104 = arith.truncf %103 : vector<8x256xf32> to vector<8x256xbf16>
    %cst_89 = arith.constant dense<0.000000e+00> : vector<8x256xf32>
    %105 = tpu.matmul %104, %4, %cst_89 {dimension_numbers = #tpu.dot_dimension_numbers<[1], [0], [0], [1], [0, 0, 1, 1], [], []>} : vector<8x256xbf16>, vector<256x256xbf16>, vector<8x256xf32> -> vector<8x256xf32>
    %106 = vector.shape_cast %105 : vector<8x256xf32> to vector<1x8x256xf32>
    %cst_90 = arith.constant dense<0.000000e+00> : vector<8x256xf32>
    %107 = tpu.matmul %104, %6, %cst_90 {dimension_numbers = #tpu.dot_dimension_numbers<[1], [0], [0], [1], [0, 0, 1, 1], [], []>} : vector<8x256xbf16>, vector<256x256xbf16>, vector<8x256xf32> -> vector<8x256xf32>
    %108 = vector.shape_cast %107 : vector<8x256xf32> to vector<1x8x256xf32>
    %cst_91 = arith.constant dense<0.000000e+00> : vector<8x256xf32>
    %109 = tpu.matmul %104, %8, %cst_91 {dimension_numbers = #tpu.dot_dimension_numbers<[1], [0], [0], [1], [0, 0, 1, 1], [], []>} : vector<8x256xbf16>, vector<256x256xbf16>, vector<8x256xf32> -> vector<8x256xf32>
    %110 = vector.shape_cast %109 : vector<8x256xf32> to vector<1x8x256xf32>
    %111 = vector.shape_cast %2 : vector<1x256xf32> to vector<1x1x256xf32>
    %112 = vector.broadcast %111 : vector<1x1x256xf32> to vector<1x8x256xf32>
    %113 = arith.addf %108, %112 : vector<1x8x256xf32>
    %c0_92 = arith.constant 0 : index
    %c0_93 = arith.constant 0 : index
    %c0_94 = arith.constant 0 : index
    %114 = vector.load %arg6[%c0_92, %c0_93, %c0_94] : memref<1x8x256xf32, #tpu.memory_space<vmem>>, vector<1x8x256xf32>
    tpu.vector_store %arg6[%c0_92, %c0_93, %c0_94], %113 {strides = array<i32>} : memref<1x8x256xf32, #tpu.memory_space<vmem>>, vector<1x8x256xf32>,
    %c0_95 = arith.constant 0 : index
    %c1_96 = arith.constant 1 : index
    %c0_97 = arith.constant 0 : index
    %115 = vector.load %arg6[%c0_95, %c1_96, %c0_97] : memref<1x8x256xf32, #tpu.memory_space<vmem>>, vector<1x7x256xf32>
    %116 = vector.extract_strided_slice %106 {offsets = [0, 0, 0], sizes = [1, 7, 256], strides = [1, 1, 1]} : vector<1x8x256xf32> to vector<1x7x256xf32>
    %117 = arith.addf %115, %116 : vector<1x7x256xf32>
    %c0_98 = arith.constant 0 : index
    %c1_99 = arith.constant 1 : index
    %c0_100 = arith.constant 0 : index
    %118 = vector.load %arg6[%c0_98, %c1_99, %c0_100] : memref<1x8x256xf32, #tpu.memory_space<vmem>>, vector<1x7x256xf32>
    tpu.vector_store %arg6[%c0_98, %c1_99, %c0_100], %117 {strides = array<i32>} : memref<1x8x256xf32, #tpu.memory_space<vmem>>, vector<1x7x256xf32>,
    %c0_101 = arith.constant 0 : index
    %c0_102 = arith.constant 0 : index
    %c0_103 = arith.constant 0 : index
    %119 = vector.load %arg6[%c0_101, %c0_102, %c0_103] : memref<1x8x256xf32, #tpu.memory_space<vmem>>, vector<1x7x256xf32>
    %120 = vector.extract_strided_slice %110 {offsets = [0, 1, 0], sizes = [1, 7, 256], strides = [1, 1, 1]} : vector<1x8x256xf32> to vector<1x7x256xf32>
    %121 = arith.addf %119, %120 : vector<1x7x256xf32>
    %c0_104 = arith.constant 0 : index
    %c0_105 = arith.constant 0 : index
    %c0_106 = arith.constant 0 : index
    %122 = vector.load %arg6[%c0_104, %c0_105, %c0_106] : memref<1x8x256xf32, #tpu.memory_space<vmem>>, vector<1x7x256xf32>
    tpu.vector_store %arg6[%c0_104, %c0_105, %c0_106], %121 {strides = array<i32>} : memref<1x8x256xf32, #tpu.memory_space<vmem>>, vector<1x7x256xf32>,
    %c0_107 = arith.constant 0 : index
    %c0_108 = arith.constant 0 : index
    %c0_109 = arith.constant 0 : index
    %123 = vector.load %arg6[%c0_107, %c0_108, %c0_109] : memref<1x8x256xf32, #tpu.memory_space<vmem>>, vector<1x8x256xf32>
    %c0_110 = arith.constant 0 : index
    %c0_111 = arith.constant 0 : index
    %c0_112 = arith.constant 0 : index
    %124 = vector.load %arg7[%c0_110, %c0_111, %c0_112] : memref<1x8x256xf32, #tpu.memory_space<vmem>>, vector<1x8x256xf32>
    %125 = arith.subf %123, %124 : vector<1x8x256xf32>
    %cst_113 = arith.constant 5.000000e-01 : f32
    %126 = vector.broadcast %cst_113 : f32 to vector<1x8x256xf32>
    %127 = arith.mulf %125, %126 : vector<1x8x256xf32>
    %128 = arith.addf %124, %127 : vector<1x8x256xf32>
    %cst_114 = arith.constant 1.000000e+00 : f32
    %129 = vector.broadcast %cst_114 : f32 to vector<1x8x256xf32>
    %130 = arith.cmpf oge, %128, %129 : vector<1x8x256xf32>
    %cst_115 = arith.constant 0.000000e+00 : f32
    %131 = vector.broadcast %cst_115 : f32 to vector<1x8x256xf32>
    %132 = arith.select %130, %131, %128 : vector<1x8x256xi1>, vector<1x8x256xf32>
    %c0_116 = arith.constant 0 : index
    %c0_117 = arith.constant 0 : index
    %c0_118 = arith.constant 0 : index
    %133 = vector.load %arg7[%c0_116, %c0_117, %c0_118] : memref<1x8x256xf32, #tpu.memory_space<vmem>>, vector<1x8x256xf32>
    tpu.vector_store %arg7[%c0_116, %c0_117, %c0_118], %132 {strides = array<i32>} : memref<1x8x256xf32, #tpu.memory_space<vmem>>, vector<1x8x256xf32>,
    %134 = arith.extui %130 : vector<1x8x256xi1> to vector<1x8x256xi32>
    %135 = arith.sitofp %134 : vector<1x8x256xi32> to vector<1x8x256xf32>
    %136 = arith.truncf %135 : vector<1x8x256xf32> to vector<1x8x256xbf16>
    %137 = arith.index_cast %c2_i32 : i32 to index
    %c0_119 = arith.constant 0 : index
    %c0_120 = arith.constant 0 : index
    %c0_121 = arith.constant 0 : index
    %138 = vector.load %arg4[%137, %c0_119, %c0_120, %c0_121] : memref<4x1x8x256xbf16, #tpu.memory_space<vmem>>, vector<1x1x8x256xbf16>
    %139 = vector.shape_cast %138 : vector<1x1x8x256xbf16> to vector<1x8x256xbf16>
    %140 = vector.shape_cast %136 : vector<1x8x256xbf16> to vector<1x1x8x256xbf16>
    tpu.vector_store %arg4[%137, %c0_119, %c0_120, %c0_121], %140 {strides = array<i32>} : memref<4x1x8x256xbf16, #tpu.memory_space<vmem>>, vector<1x1x8x256xbf16>,
    %141 = vector.shape_cast %135 : vector<1x8x256xf32> to vector<8x256xf32>
    %cst_122 = arith.constant dense<0.000000e+00> : vector<256xf32>
    %142 = vector.multi_reduction <add>, %141, %cst_122 [0] : vector<8x256xf32> to vector<256xf32>
    %143 = vector.shape_cast %142 : vector<256xf32> to vector<1x256xf32>
    %144 = arith.addf %99, %143 : vector<1x256xf32>
    %c3_i32 = arith.constant 3 : i32
    %145 = arith.index_cast %c3_i32 : i32 to index
    %c0_123 = arith.constant 0 : index
    %c0_124 = arith.constant 0 : index
    %c0_125 = arith.constant 0 : index
    %146 = vector.load %arg1[%145, %c0_123, %c0_124, %c0_125] : memref<4x1x8x256xf32, #tpu.memory_space<vmem>>, vector<1x1x8x256xf32>
    %147 = vector.shape_cast %146 : vector<1x1x8x256xf32> to vector<1x8x256xf32>
    %148 = vector.shape_cast %147 : vector<1x8x256xf32> to vector<8x256xf32>
    %149 = arith.truncf %148 : vector<8x256xf32> to vector<8x256xbf16>
    %cst_126 = arith.constant dense<0.000000e+00> : vector<8x256xf32>
    %150 = tpu.matmul %149, %4, %cst_126 {dimension_numbers = #tpu.dot_dimension_numbers<[1], [0], [0], [1], [0, 0, 1, 1], [], []>} : vector<8x256xbf16>, vector<256x256xbf16>, vector<8x256xf32> -> vector<8x256xf32>
    %151 = vector.shape_cast %150 : vector<8x256xf32> to vector<1x8x256xf32>
    %cst_127 = arith.constant dense<0.000000e+00> : vector<8x256xf32>
    %152 = tpu.matmul %149, %6, %cst_127 {dimension_numbers = #tpu.dot_dimension_numbers<[1], [0], [0], [1], [0, 0, 1, 1], [], []>} : vector<8x256xbf16>, vector<256x256xbf16>, vector<8x256xf32> -> vector<8x256xf32>
    %153 = vector.shape_cast %152 : vector<8x256xf32> to vector<1x8x256xf32>
    %cst_128 = arith.constant dense<0.000000e+00> : vector<8x256xf32>
    %154 = tpu.matmul %149, %8, %cst_128 {dimension_numbers = #tpu.dot_dimension_numbers<[1], [0], [0], [1], [0, 0, 1, 1], [], []>} : vector<8x256xbf16>, vector<256x256xbf16>, vector<8x256xf32> -> vector<8x256xf32>
    %155 = vector.shape_cast %154 : vector<8x256xf32> to vector<1x8x256xf32>
    %156 = vector.shape_cast %2 : vector<1x256xf32> to vector<1x1x256xf32>
    %157 = vector.broadcast %156 : vector<1x1x256xf32> to vector<1x8x256xf32>
    %158 = arith.addf %153, %157 : vector<1x8x256xf32>
    %c0_129 = arith.constant 0 : index
    %c0_130 = arith.constant 0 : index
    %c0_131 = arith.constant 0 : index
    %159 = vector.load %arg6[%c0_129, %c0_130, %c0_131] : memref<1x8x256xf32, #tpu.memory_space<vmem>>, vector<1x8x256xf32>
    tpu.vector_store %arg6[%c0_129, %c0_130, %c0_131], %158 {strides = array<i32>} : memref<1x8x256xf32, #tpu.memory_space<vmem>>, vector<1x8x256xf32>,
    %c0_132 = arith.constant 0 : index
    %c1_133 = arith.constant 1 : index
    %c0_134 = arith.constant 0 : index
    %160 = vector.load %arg6[%c0_132, %c1_133, %c0_134] : memref<1x8x256xf32, #tpu.memory_space<vmem>>, vector<1x7x256xf32>
    %161 = vector.extract_strided_slice %151 {offsets = [0, 0, 0], sizes = [1, 7, 256], strides = [1, 1, 1]} : vector<1x8x256xf32> to vector<1x7x256xf32>
    %162 = arith.addf %160, %161 : vector<1x7x256xf32>
    %c0_135 = arith.constant 0 : index
    %c1_136 = arith.constant 1 : index
    %c0_137 = arith.constant 0 : index
    %163 = vector.load %arg6[%c0_135, %c1_136, %c0_137] : memref<1x8x256xf32, #tpu.memory_space<vmem>>, vector<1x7x256xf32>
    tpu.vector_store %arg6[%c0_135, %c1_136, %c0_137], %162 {strides = array<i32>} : memref<1x8x256xf32, #tpu.memory_space<vmem>>, vector<1x7x256xf32>,
    %c0_138 = arith.constant 0 : index
    %c0_139 = arith.constant 0 : index
    %c0_140 = arith.constant 0 : index
    %164 = vector.load %arg6[%c0_138, %c0_139, %c0_140] : memref<1x8x256xf32, #tpu.memory_space<vmem>>, vector<1x7x256xf32>
    %165 = vector.extract_strided_slice %155 {offsets = [0, 1, 0], sizes = [1, 7, 256], strides = [1, 1, 1]} : vector<1x8x256xf32> to vector<1x7x256xf32>
    %166 = arith.addf %164, %165 : vector<1x7x256xf32>
    %c0_141 = arith.constant 0 : index
    %c0_142 = arith.constant 0 : index
    %c0_143 = arith.constant 0 : index
    %167 = vector.load %arg6[%c0_141, %c0_142, %c0_143] : memref<1x8x256xf32, #tpu.memory_space<vmem>>, vector<1x7x256xf32>
    tpu.vector_store %arg6[%c0_141, %c0_142, %c0_143], %166 {strides = array<i32>} : memref<1x8x256xf32, #tpu.memory_space<vmem>>, vector<1x7x256xf32>,
    %c0_144 = arith.constant 0 : index
    %c0_145 = arith.constant 0 : index
    %c0_146 = arith.constant 0 : index
    %168 = vector.load %arg6[%c0_144, %c0_145, %c0_146] : memref<1x8x256xf32, #tpu.memory_space<vmem>>, vector<1x8x256xf32>
    %c0_147 = arith.constant 0 : index
    %c0_148 = arith.constant 0 : index
    %c0_149 = arith.constant 0 : index
    %169 = vector.load %arg7[%c0_147, %c0_148, %c0_149] : memref<1x8x256xf32, #tpu.memory_space<vmem>>, vector<1x8x256xf32>
    %170 = arith.subf %168, %169 : vector<1x8x256xf32>
    %cst_150 = arith.constant 5.000000e-01 : f32
    %171 = vector.broadcast %cst_150 : f32 to vector<1x8x256xf32>
    %172 = arith.mulf %170, %171 : vector<1x8x256xf32>
    %173 = arith.addf %169, %172 : vector<1x8x256xf32>
    %cst_151 = arith.constant 1.000000e+00 : f32
    %174 = vector.broadcast %cst_151 : f32 to vector<1x8x256xf32>
    %175 = arith.cmpf oge, %173, %174 : vector<1x8x256xf32>
    %cst_152 = arith.constant 0.000000e+00 : f32
    %176 = vector.broadcast %cst_152 : f32 to vector<1x8x256xf32>
    %177 = arith.select %175, %176, %173 : vector<1x8x256xi1>, vector<1x8x256xf32>
    %c0_153 = arith.constant 0 : index
    %c0_154 = arith.constant 0 : index
    %c0_155 = arith.constant 0 : index
    %178 = vector.load %arg7[%c0_153, %c0_154, %c0_155] : memref<1x8x256xf32, #tpu.memory_space<vmem>>, vector<1x8x256xf32>
    tpu.vector_store %arg7[%c0_153, %c0_154, %c0_155], %177 {strides = array<i32>} : memref<1x8x256xf32, #tpu.memory_space<vmem>>, vector<1x8x256xf32>,
    %179 = arith.extui %175 : vector<1x8x256xi1> to vector<1x8x256xi32>
    %180 = arith.sitofp %179 : vector<1x8x256xi32> to vector<1x8x256xf32>
    %181 = arith.truncf %180 : vector<1x8x256xf32> to vector<1x8x256xbf16>
    %182 = arith.index_cast %c3_i32 : i32 to index
    %c0_156 = arith.constant 0 : index
    %c0_157 = arith.constant 0 : index
    %c0_158 = arith.constant 0 : index
    %183 = vector.load %arg4[%182, %c0_156, %c0_157, %c0_158] : memref<4x1x8x256xbf16, #tpu.memory_space<vmem>>, vector<1x1x8x256xbf16>
    %184 = vector.shape_cast %183 : vector<1x1x8x256xbf16> to vector<1x8x256xbf16>
    %185 = vector.shape_cast %181 : vector<1x8x256xbf16> to vector<1x1x8x256xbf16>
    tpu.vector_store %arg4[%182, %c0_156, %c0_157, %c0_158], %185 {strides = array<i32>} : memref<4x1x8x256xbf16, #tpu.memory_space<vmem>>, vector<1x1x8x256xbf16>,
    %186 = vector.shape_cast %180 : vector<1x8x256xf32> to vector<8x256xf32>
    %cst_159 = arith.constant dense<0.000000e+00> : vector<256xf32>
    %187 = vector.multi_reduction <add>, %186, %cst_159 [0] : vector<8x256xf32> to vector<256xf32>
    %188 = vector.shape_cast %187 : vector<256xf32> to vector<1x256xf32>
    %189 = arith.addf %144, %188 : vector<1x256xf32>
    %c4_i32 = arith.constant 4 : i32
    %c0_160 = arith.constant 0 : index
    %c0_161 = arith.constant 0 : index
    %c0_162 = arith.constant 0 : index
    %190 = vector.load %arg5[%c0_160, %c0_161, %c0_162] : memref<1x1x256xf32, #tpu.memory_space<vmem>>, vector<1x1x256xf32>
    %191 = vector.shape_cast %190 : vector<1x1x256xf32> to vector<1x256xf32>
    %192 = vector.shape_cast %189 : vector<1x256xf32> to vector<1x1x256xf32>
    tpu.vector_store %arg5[%c0_160, %c0_161, %c0_162], %192 {strides = array<i32>} : memref<1x1x256xf32, #tpu.memory_space<vmem>>, vector<1x1x256xf32>,
    return
  }
  func.func @transform_0(%arg0: i32) -> (i32, i32, i32, i32) {
    %c0_i32 = arith.constant 0 : i32
    %c0_i32_0 = arith.constant 0 : i32
    %c0_i32_1 = arith.constant 0 : i32
    %c0_i32_2 = arith.constant 0 : i32
    return %c0_i32, %arg0, %c0_i32_0, %c0_i32_1 : i32, i32, i32, i32
  }
  func.func @transform_1(%arg0: i32) -> (i32, i32, i32) {
    %c0_i32 = arith.constant 0 : i32
    %c0_i32_0 = arith.constant 0 : i32
    %c0_i32_1 = arith.constant 0 : i32
    %c0_i32_2 = arith.constant 0 : i32
    return %c0_i32, %c0_i32_0, %c0_i32_1 : i32, i32, i32
  }
  func.func @transform_2(%arg0: i32) -> (i32, i32) {
    %c0_i32 = arith.constant 0 : i32
    %c0_i32_0 = arith.constant 0 : i32
    %c0_i32_1 = arith.constant 0 : i32
    return %c0_i32, %c0_i32_0 : i32, i32
  }
  func.func @transform_3(%arg0: i32) -> (i32, i32, i32, i32) {
    %c0_i32 = arith.constant 0 : i32
    %c0_i32_0 = arith.constant 0 : i32
    %c0_i32_1 = arith.constant 0 : i32
    %c0_i32_2 = arith.constant 0 : i32
    return %c0_i32, %arg0, %c0_i32_0, %c0_i32_1 : i32, i32, i32, i32
  }
  func.func @transform_4(%arg0: i32) -> (i32, i32, i32) {
    %c0_i32 = arith.constant 0 : i32
    %c0_i32_0 = arith.constant 0 : i32
    %c0_i32_1 = arith.constant 0 : i32
    return %arg0, %c0_i32, %c0_i32_0 : i32, i32, i32
  }
}

module attributes {stable_mosaic.version = 11 : i64} {
  func.func @conv2_kernel(%arg0: i32, %arg1: memref<4x8x256xbf16, #tpu.memory_space<vmem>>, %arg2: memref<3x256x256xbf16, #tpu.memory_space<vmem>>, %arg3: memref<1x256xf32, #tpu.memory_space<vmem>>, %arg4: memref<1x256xf32, #tpu.memory_space<vmem>>, %arg5: memref<4x8x256xf32, #tpu.memory_space<vmem>>, %arg6: memref<1x2x256xf32, #tpu.memory_space<vmem>>) attributes {dimension_semantics = [#tpu.dimension_semantics<parallel>], iteration_bounds = array<i64: 2>, scalar_prefetch = 0 : i64, scratch_operands = 0 : i64, tpu.core_type = #tpu.core_type<tc>, window_params = [{transform_indices = @transform_0, window_bounds = array<i64: 4, 8, 256>}, {pipeline_mode = #tpu.pipeline_mode<synchronous>, transform_indices = @transform_1, window_bounds = array<i64: 3, 256, 256>}, {pipeline_mode = #tpu.pipeline_mode<synchronous>, transform_indices = @transform_2, window_bounds = array<i64: 1, 256>}, {pipeline_mode = #tpu.pipeline_mode<synchronous>, transform_indices = @transform_3, window_bounds = array<i64: 1, 256>}, {transform_indices = @transform_4, window_bounds = array<i64: 4, 8, 256>}, {transform_indices = @transform_5, window_bounds = array<i64: 1, 2, 256>}]} {
    %c0 = arith.constant 0 : index
    %c0_0 = arith.constant 0 : index
    %c0_1 = arith.constant 0 : index
    %0 = vector.load %arg1[%c0, %c0_0, %c0_1] : memref<4x8x256xbf16, #tpu.memory_space<vmem>>, vector<4x8x256xbf16>
    %1 = arith.extf %0 : vector<4x8x256xbf16> to vector<4x8x256xf32>
    %2 = vector.shape_cast %1 : vector<4x8x256xf32> to vector<32x256xf32>
    %c0_2 = arith.constant 0 : index
    %c0_3 = arith.constant 0 : index
    %3 = vector.load %arg4[%c0_2, %c0_3] : memref<1x256xf32, #tpu.memory_space<vmem>>, vector<1x256xf32>
    %4 = vector.broadcast %3 : vector<1x256xf32> to vector<32x256xf32>
    %5 = arith.addf %2, %4 : vector<32x256xf32>
    %6 = arith.truncf %5 : vector<32x256xf32> to vector<32x256xbf16>
    %c0_4 = arith.constant 0 : index
    %c0_5 = arith.constant 0 : index
    %c0_6 = arith.constant 0 : index
    %7 = vector.load %arg2[%c0_4, %c0_5, %c0_6] : memref<3x256x256xbf16, #tpu.memory_space<vmem>>, vector<1x256x256xbf16>
    %8 = vector.shape_cast %7 : vector<1x256x256xbf16> to vector<256x256xbf16>
    %cst = arith.constant dense<0.000000e+00> : vector<32x256xf32>
    %9 = tpu.matmul %6, %8, %cst {dimension_numbers = #tpu.dot_dimension_numbers<[1], [0], [0], [1], [0, 0, 1, 1], [], []>} : vector<32x256xbf16>, vector<256x256xbf16>, vector<32x256xf32> -> vector<32x256xf32>
    %10 = vector.shape_cast %9 : vector<32x256xf32> to vector<4x8x256xf32>
    %c1 = arith.constant 1 : index
    %c0_7 = arith.constant 0 : index
    %c0_8 = arith.constant 0 : index
    %11 = vector.load %arg2[%c1, %c0_7, %c0_8] : memref<3x256x256xbf16, #tpu.memory_space<vmem>>, vector<1x256x256xbf16>
    %12 = vector.shape_cast %11 : vector<1x256x256xbf16> to vector<256x256xbf16>
    %cst_9 = arith.constant dense<0.000000e+00> : vector<32x256xf32>
    %13 = tpu.matmul %6, %12, %cst_9 {dimension_numbers = #tpu.dot_dimension_numbers<[1], [0], [0], [1], [0, 0, 1, 1], [], []>} : vector<32x256xbf16>, vector<256x256xbf16>, vector<32x256xf32> -> vector<32x256xf32>
    %14 = vector.shape_cast %13 : vector<32x256xf32> to vector<4x8x256xf32>
    %c2 = arith.constant 2 : index
    %c0_10 = arith.constant 0 : index
    %c0_11 = arith.constant 0 : index
    %15 = vector.load %arg2[%c2, %c0_10, %c0_11] : memref<3x256x256xbf16, #tpu.memory_space<vmem>>, vector<1x256x256xbf16>
    %16 = vector.shape_cast %15 : vector<1x256x256xbf16> to vector<256x256xbf16>
    %cst_12 = arith.constant dense<0.000000e+00> : vector<32x256xf32>
    %17 = tpu.matmul %6, %16, %cst_12 {dimension_numbers = #tpu.dot_dimension_numbers<[1], [0], [0], [1], [0, 0, 1, 1], [], []>} : vector<32x256xbf16>, vector<256x256xbf16>, vector<32x256xf32> -> vector<32x256xf32>
    %18 = vector.shape_cast %17 : vector<32x256xf32> to vector<4x8x256xf32>
    %c0_13 = arith.constant 0 : index
    %c0_14 = arith.constant 0 : index
    %c0_15 = arith.constant 0 : index
    %19 = vector.load %arg5[%c0_13, %c0_14, %c0_15] : memref<4x8x256xf32, #tpu.memory_space<vmem>>, vector<4x8x256xf32>
    tpu.vector_store %arg5[%c0_13, %c0_14, %c0_15], %14 {strides = array<i32>} : memref<4x8x256xf32, #tpu.memory_space<vmem>>, vector<4x8x256xf32>,
    %c0_16 = arith.constant 0 : index
    %c1_17 = arith.constant 1 : index
    %c0_18 = arith.constant 0 : index
    %20 = vector.load %arg5[%c0_16, %c1_17, %c0_18] : memref<4x8x256xf32, #tpu.memory_space<vmem>>, vector<4x7x256xf32>
    %21 = vector.extract_strided_slice %10 {offsets = [0, 0, 0], sizes = [4, 7, 256], strides = [1, 1, 1]} : vector<4x8x256xf32> to vector<4x7x256xf32>
    %22 = arith.addf %20, %21 : vector<4x7x256xf32>
    %c0_19 = arith.constant 0 : index
    %c1_20 = arith.constant 1 : index
    %c0_21 = arith.constant 0 : index
    %23 = vector.load %arg5[%c0_19, %c1_20, %c0_21] : memref<4x8x256xf32, #tpu.memory_space<vmem>>, vector<4x7x256xf32>
    tpu.vector_store %arg5[%c0_19, %c1_20, %c0_21], %22 {strides = array<i32>} : memref<4x8x256xf32, #tpu.memory_space<vmem>>, vector<4x7x256xf32>,
    %c0_22 = arith.constant 0 : index
    %c0_23 = arith.constant 0 : index
    %c0_24 = arith.constant 0 : index
    %24 = vector.load %arg5[%c0_22, %c0_23, %c0_24] : memref<4x8x256xf32, #tpu.memory_space<vmem>>, vector<4x7x256xf32>
    %25 = vector.extract_strided_slice %18 {offsets = [0, 1, 0], sizes = [4, 7, 256], strides = [1, 1, 1]} : vector<4x8x256xf32> to vector<4x7x256xf32>
    %26 = arith.addf %24, %25 : vector<4x7x256xf32>
    %c0_25 = arith.constant 0 : index
    %c0_26 = arith.constant 0 : index
    %c0_27 = arith.constant 0 : index
    %27 = vector.load %arg5[%c0_25, %c0_26, %c0_27] : memref<4x8x256xf32, #tpu.memory_space<vmem>>, vector<4x7x256xf32>
    tpu.vector_store %arg5[%c0_25, %c0_26, %c0_27], %26 {strides = array<i32>} : memref<4x8x256xf32, #tpu.memory_space<vmem>>, vector<4x7x256xf32>,
    %c0_28 = arith.constant 0 : index
    %c0_29 = arith.constant 0 : index
    %c0_30 = arith.constant 0 : index
    %28 = vector.load %arg5[%c0_28, %c0_29, %c0_30] : memref<4x8x256xf32, #tpu.memory_space<vmem>>, vector<4x8x256xf32>
    %29 = vector.shape_cast %28 : vector<4x8x256xf32> to vector<32x256xf32>
    %c0_31 = arith.constant 0 : index
    %c0_32 = arith.constant 0 : index
    %30 = vector.load %arg3[%c0_31, %c0_32] : memref<1x256xf32, #tpu.memory_space<vmem>>, vector<1x256xf32>
    %31 = vector.broadcast %30 : vector<1x256xf32> to vector<32x256xf32>
    %32 = arith.addf %29, %31 : vector<32x256xf32>
    %33 = vector.shape_cast %32 : vector<32x256xf32> to vector<4x8x256xf32>
    %c0_33 = arith.constant 0 : index
    %c0_34 = arith.constant 0 : index
    %c0_35 = arith.constant 0 : index
    %34 = vector.load %arg5[%c0_33, %c0_34, %c0_35] : memref<4x8x256xf32, #tpu.memory_space<vmem>>, vector<4x8x256xf32>
    tpu.vector_store %arg5[%c0_33, %c0_34, %c0_35], %33 {strides = array<i32>} : memref<4x8x256xf32, #tpu.memory_space<vmem>>, vector<4x8x256xf32>,
    %cst_36 = arith.constant dense<0.000000e+00> : vector<256xf32>
    %35 = vector.multi_reduction <add>, %29, %cst_36 [0] : vector<32x256xf32> to vector<256xf32>
    %36 = vector.shape_cast %35 : vector<256xf32> to vector<1x256xf32>
    %c0_37 = arith.constant 0 : index
    %c0_38 = arith.constant 0 : index
    %c0_39 = arith.constant 0 : index
    %37 = vector.load %arg6[%c0_37, %c0_38, %c0_39] : memref<1x2x256xf32, #tpu.memory_space<vmem>>, vector<1x1x256xf32>
    %38 = vector.shape_cast %37 : vector<1x1x256xf32> to vector<1x256xf32>
    %39 = vector.shape_cast %36 : vector<1x256xf32> to vector<1x1x256xf32>
    tpu.vector_store %arg6[%c0_37, %c0_38, %c0_39], %39 {strides = array<i32>} : memref<1x2x256xf32, #tpu.memory_space<vmem>>, vector<1x1x256xf32>,
    %40 = arith.mulf %29, %29 : vector<32x256xf32>
    %cst_40 = arith.constant dense<0.000000e+00> : vector<256xf32>
    %41 = vector.multi_reduction <add>, %40, %cst_40 [0] : vector<32x256xf32> to vector<256xf32>
    %42 = vector.shape_cast %41 : vector<256xf32> to vector<1x256xf32>
    %c0_41 = arith.constant 0 : index
    %c1_42 = arith.constant 1 : index
    %c0_43 = arith.constant 0 : index
    %43 = vector.load %arg6[%c0_41, %c1_42, %c0_43] : memref<1x2x256xf32, #tpu.memory_space<vmem>>, vector<1x1x256xf32>
    %44 = vector.shape_cast %43 : vector<1x1x256xf32> to vector<1x256xf32>
    %45 = vector.shape_cast %42 : vector<1x256xf32> to vector<1x1x256xf32>
    tpu.vector_store %arg6[%c0_41, %c1_42, %c0_43], %45 {strides = array<i32>} : memref<1x2x256xf32, #tpu.memory_space<vmem>>, vector<1x1x256xf32>,
    return
  }
  func.func @transform_0(%arg0: i32) -> (i32, i32, i32) {
    %c0_i32 = arith.constant 0 : i32
    %c0_i32_0 = arith.constant 0 : i32
    %c0_i32_1 = arith.constant 0 : i32
    return %arg0, %c0_i32, %c0_i32_0 : i32, i32, i32
  }
  func.func @transform_1(%arg0: i32) -> (i32, i32, i32) {
    %c0_i32 = arith.constant 0 : i32
    %c0_i32_0 = arith.constant 0 : i32
    %c0_i32_1 = arith.constant 0 : i32
    %c0_i32_2 = arith.constant 0 : i32
    return %c0_i32, %c0_i32_0, %c0_i32_1 : i32, i32, i32
  }
  func.func @transform_2(%arg0: i32) -> (i32, i32) {
    %c0_i32 = arith.constant 0 : i32
    %c0_i32_0 = arith.constant 0 : i32
    %c0_i32_1 = arith.constant 0 : i32
    return %c0_i32, %c0_i32_0 : i32, i32
  }
  func.func @transform_3(%arg0: i32) -> (i32, i32) {
    %c0_i32 = arith.constant 0 : i32
    %c0_i32_0 = arith.constant 0 : i32
    %c0_i32_1 = arith.constant 0 : i32
    return %c0_i32, %c0_i32_0 : i32, i32
  }
  func.func @transform_4(%arg0: i32) -> (i32, i32, i32) {
    %c0_i32 = arith.constant 0 : i32
    %c0_i32_0 = arith.constant 0 : i32
    %c0_i32_1 = arith.constant 0 : i32
    return %arg0, %c0_i32, %c0_i32_0 : i32, i32, i32
  }
  func.func @transform_5(%arg0: i32) -> (i32, i32, i32) {
    %c0_i32 = arith.constant 0 : i32
    %c0_i32_0 = arith.constant 0 : i32
    %c0_i32_1 = arith.constant 0 : i32
    return %arg0, %c0_i32, %c0_i32_0 : i32, i32, i32
  }
}

module attributes {stable_mosaic.version = 11 : i64} {
  func.func @res_lif_kernel(%arg0: i32, %arg1: memref<4x8x256xf32, #tpu.memory_space<vmem>>, %arg2: memref<4x8x256xf32, #tpu.memory_space<vmem>>, %arg3: memref<1x256xf32, #tpu.memory_space<vmem>>, %arg4: memref<1x256xf32, #tpu.memory_space<vmem>>, %arg5: memref<4x8x256xf32, #tpu.memory_space<vmem>>, %arg6: memref<8x256xf32, #tpu.memory_space<vmem>>) attributes {dimension_semantics = [#tpu.dimension_semantics<parallel>], iteration_bounds = array<i64: 2>, scalar_prefetch = 0 : i64, scratch_operands = 1 : i64, tpu.core_type = #tpu.core_type<tc>, window_params = [{transform_indices = @transform_0, window_bounds = array<i64: 4, 8, 256>}, {transform_indices = @transform_1, window_bounds = array<i64: 4, 8, 256>}, {pipeline_mode = #tpu.pipeline_mode<synchronous>, transform_indices = @transform_2, window_bounds = array<i64: 1, 256>}, {pipeline_mode = #tpu.pipeline_mode<synchronous>, transform_indices = @transform_3, window_bounds = array<i64: 1, 256>}, {transform_indices = @transform_4, window_bounds = array<i64: 4, 8, 256>}]} {
    %cst = arith.constant 0.000000e+00 : f32
    %0 = vector.broadcast %cst : f32 to vector<8x256xf32>
    %c0 = arith.constant 0 : index
    %c0_0 = arith.constant 0 : index
    %1 = vector.load %arg6[%c0, %c0_0] : memref<8x256xf32, #tpu.memory_space<vmem>>, vector<8x256xf32>
    tpu.vector_store %arg6[%c0, %c0_0], %0 {strides = array<i32>} : memref<8x256xf32, #tpu.memory_space<vmem>>, vector<8x256xf32>,
    %c0_1 = arith.constant 0 : index
    %c0_2 = arith.constant 0 : index
    %2 = vector.load %arg3[%c0_1, %c0_2] : memref<1x256xf32, #tpu.memory_space<vmem>>, vector<1x256xf32>
    %c0_3 = arith.constant 0 : index
    %c0_4 = arith.constant 0 : index
    %3 = vector.load %arg4[%c0_3, %c0_4] : memref<1x256xf32, #tpu.memory_space<vmem>>, vector<1x256xf32>
    %c0_i32 = arith.constant 0 : i32
    %4 = arith.index_cast %c0_i32 : i32 to index
    %c0_5 = arith.constant 0 : index
    %c0_6 = arith.constant 0 : index
    %5 = vector.load %arg1[%4, %c0_5, %c0_6] : memref<4x8x256xf32, #tpu.memory_space<vmem>>, vector<1x8x256xf32>
    %6 = vector.shape_cast %5 : vector<1x8x256xf32> to vector<8x256xf32>
    %7 = arith.index_cast %c0_i32 : i32 to index
    %c0_7 = arith.constant 0 : index
    %c0_8 = arith.constant 0 : index
    %8 = vector.load %arg2[%7, %c0_7, %c0_8] : memref<4x8x256xf32, #tpu.memory_space<vmem>>, vector<1x8x256xf32>
    %9 = vector.shape_cast %8 : vector<1x8x256xf32> to vector<8x256xf32>
    %10 = vector.broadcast %2 : vector<1x256xf32> to vector<8x256xf32>
    %11 = arith.mulf %9, %10 : vector<8x256xf32>
    %12 = arith.addf %6, %11 : vector<8x256xf32>
    %13 = vector.broadcast %3 : vector<1x256xf32> to vector<8x256xf32>
    %14 = arith.addf %12, %13 : vector<8x256xf32>
    %c0_9 = arith.constant 0 : index
    %c0_10 = arith.constant 0 : index
    %15 = vector.load %arg6[%c0_9, %c0_10] : memref<8x256xf32, #tpu.memory_space<vmem>>, vector<8x256xf32>
    %16 = arith.subf %14, %15 : vector<8x256xf32>
    %cst_11 = arith.constant 5.000000e-01 : f32
    %17 = vector.broadcast %cst_11 : f32 to vector<8x256xf32>
    %18 = arith.mulf %16, %17 : vector<8x256xf32>
    %19 = arith.addf %15, %18 : vector<8x256xf32>
    %cst_12 = arith.constant 1.000000e+00 : f32
    %20 = vector.broadcast %cst_12 : f32 to vector<8x256xf32>
    %21 = arith.cmpf oge, %19, %20 : vector<8x256xf32>
    %cst_13 = arith.constant 0.000000e+00 : f32
    %22 = vector.broadcast %cst_13 : f32 to vector<8x256xf32>
    %23 = arith.select %21, %22, %19 : vector<8x256xi1>, vector<8x256xf32>
    %c0_14 = arith.constant 0 : index
    %c0_15 = arith.constant 0 : index
    %24 = vector.load %arg6[%c0_14, %c0_15] : memref<8x256xf32, #tpu.memory_space<vmem>>, vector<8x256xf32>
    tpu.vector_store %arg6[%c0_14, %c0_15], %23 {strides = array<i32>} : memref<8x256xf32, #tpu.memory_space<vmem>>, vector<8x256xf32>,
    %25 = arith.extui %21 : vector<8x256xi1> to vector<8x256xi32>
    %26 = arith.sitofp %25 : vector<8x256xi32> to vector<8x256xf32>
    %27 = arith.index_cast %c0_i32 : i32 to index
    %c0_16 = arith.constant 0 : index
    %c0_17 = arith.constant 0 : index
    %28 = vector.load %arg5[%27, %c0_16, %c0_17] : memref<4x8x256xf32, #tpu.memory_space<vmem>>, vector<1x8x256xf32>
    %29 = vector.shape_cast %28 : vector<1x8x256xf32> to vector<8x256xf32>
    %30 = vector.shape_cast %26 : vector<8x256xf32> to vector<1x8x256xf32>
    tpu.vector_store %arg5[%27, %c0_16, %c0_17], %30 {strides = array<i32>} : memref<4x8x256xf32, #tpu.memory_space<vmem>>, vector<1x8x256xf32>,
    %c1_i32 = arith.constant 1 : i32
    %31 = arith.index_cast %c1_i32 : i32 to index
    %c0_18 = arith.constant 0 : index
    %c0_19 = arith.constant 0 : index
    %32 = vector.load %arg1[%31, %c0_18, %c0_19] : memref<4x8x256xf32, #tpu.memory_space<vmem>>, vector<1x8x256xf32>
    %33 = vector.shape_cast %32 : vector<1x8x256xf32> to vector<8x256xf32>
    %34 = arith.index_cast %c1_i32 : i32 to index
    %c0_20 = arith.constant 0 : index
    %c0_21 = arith.constant 0 : index
    %35 = vector.load %arg2[%34, %c0_20, %c0_21] : memref<4x8x256xf32, #tpu.memory_space<vmem>>, vector<1x8x256xf32>
    %36 = vector.shape_cast %35 : vector<1x8x256xf32> to vector<8x256xf32>
    %37 = vector.broadcast %2 : vector<1x256xf32> to vector<8x256xf32>
    %38 = arith.mulf %36, %37 : vector<8x256xf32>
    %39 = arith.addf %33, %38 : vector<8x256xf32>
    %40 = vector.broadcast %3 : vector<1x256xf32> to vector<8x256xf32>
    %41 = arith.addf %39, %40 : vector<8x256xf32>
    %c0_22 = arith.constant 0 : index
    %c0_23 = arith.constant 0 : index
    %42 = vector.load %arg6[%c0_22, %c0_23] : memref<8x256xf32, #tpu.memory_space<vmem>>, vector<8x256xf32>
    %43 = arith.subf %41, %42 : vector<8x256xf32>
    %cst_24 = arith.constant 5.000000e-01 : f32
    %44 = vector.broadcast %cst_24 : f32 to vector<8x256xf32>
    %45 = arith.mulf %43, %44 : vector<8x256xf32>
    %46 = arith.addf %42, %45 : vector<8x256xf32>
    %cst_25 = arith.constant 1.000000e+00 : f32
    %47 = vector.broadcast %cst_25 : f32 to vector<8x256xf32>
    %48 = arith.cmpf oge, %46, %47 : vector<8x256xf32>
    %cst_26 = arith.constant 0.000000e+00 : f32
    %49 = vector.broadcast %cst_26 : f32 to vector<8x256xf32>
    %50 = arith.select %48, %49, %46 : vector<8x256xi1>, vector<8x256xf32>
    %c0_27 = arith.constant 0 : index
    %c0_28 = arith.constant 0 : index
    %51 = vector.load %arg6[%c0_27, %c0_28] : memref<8x256xf32, #tpu.memory_space<vmem>>, vector<8x256xf32>
    tpu.vector_store %arg6[%c0_27, %c0_28], %50 {strides = array<i32>} : memref<8x256xf32, #tpu.memory_space<vmem>>, vector<8x256xf32>,
    %52 = arith.extui %48 : vector<8x256xi1> to vector<8x256xi32>
    %53 = arith.sitofp %52 : vector<8x256xi32> to vector<8x256xf32>
    %54 = arith.index_cast %c1_i32 : i32 to index
    %c0_29 = arith.constant 0 : index
    %c0_30 = arith.constant 0 : index
    %55 = vector.load %arg5[%54, %c0_29, %c0_30] : memref<4x8x256xf32, #tpu.memory_space<vmem>>, vector<1x8x256xf32>
    %56 = vector.shape_cast %55 : vector<1x8x256xf32> to vector<8x256xf32>
    %57 = vector.shape_cast %53 : vector<8x256xf32> to vector<1x8x256xf32>
    tpu.vector_store %arg5[%54, %c0_29, %c0_30], %57 {strides = array<i32>} : memref<4x8x256xf32, #tpu.memory_space<vmem>>, vector<1x8x256xf32>,
    %c2_i32 = arith.constant 2 : i32
    %58 = arith.index_cast %c2_i32 : i32 to index
    %c0_31 = arith.constant 0 : index
    %c0_32 = arith.constant 0 : index
    %59 = vector.load %arg1[%58, %c0_31, %c0_32] : memref<4x8x256xf32, #tpu.memory_space<vmem>>, vector<1x8x256xf32>
    %60 = vector.shape_cast %59 : vector<1x8x256xf32> to vector<8x256xf32>
    %61 = arith.index_cast %c2_i32 : i32 to index
    %c0_33 = arith.constant 0 : index
    %c0_34 = arith.constant 0 : index
    %62 = vector.load %arg2[%61, %c0_33, %c0_34] : memref<4x8x256xf32, #tpu.memory_space<vmem>>, vector<1x8x256xf32>
    %63 = vector.shape_cast %62 : vector<1x8x256xf32> to vector<8x256xf32>
    %64 = vector.broadcast %2 : vector<1x256xf32> to vector<8x256xf32>
    %65 = arith.mulf %63, %64 : vector<8x256xf32>
    %66 = arith.addf %60, %65 : vector<8x256xf32>
    %67 = vector.broadcast %3 : vector<1x256xf32> to vector<8x256xf32>
    %68 = arith.addf %66, %67 : vector<8x256xf32>
    %c0_35 = arith.constant 0 : index
    %c0_36 = arith.constant 0 : index
    %69 = vector.load %arg6[%c0_35, %c0_36] : memref<8x256xf32, #tpu.memory_space<vmem>>, vector<8x256xf32>
    %70 = arith.subf %68, %69 : vector<8x256xf32>
    %cst_37 = arith.constant 5.000000e-01 : f32
    %71 = vector.broadcast %cst_37 : f32 to vector<8x256xf32>
    %72 = arith.mulf %70, %71 : vector<8x256xf32>
    %73 = arith.addf %69, %72 : vector<8x256xf32>
    %cst_38 = arith.constant 1.000000e+00 : f32
    %74 = vector.broadcast %cst_38 : f32 to vector<8x256xf32>
    %75 = arith.cmpf oge, %73, %74 : vector<8x256xf32>
    %cst_39 = arith.constant 0.000000e+00 : f32
    %76 = vector.broadcast %cst_39 : f32 to vector<8x256xf32>
    %77 = arith.select %75, %76, %73 : vector<8x256xi1>, vector<8x256xf32>
    %c0_40 = arith.constant 0 : index
    %c0_41 = arith.constant 0 : index
    %78 = vector.load %arg6[%c0_40, %c0_41] : memref<8x256xf32, #tpu.memory_space<vmem>>, vector<8x256xf32>
    tpu.vector_store %arg6[%c0_40, %c0_41], %77 {strides = array<i32>} : memref<8x256xf32, #tpu.memory_space<vmem>>, vector<8x256xf32>,
    %79 = arith.extui %75 : vector<8x256xi1> to vector<8x256xi32>
    %80 = arith.sitofp %79 : vector<8x256xi32> to vector<8x256xf32>
    %81 = arith.index_cast %c2_i32 : i32 to index
    %c0_42 = arith.constant 0 : index
    %c0_43 = arith.constant 0 : index
    %82 = vector.load %arg5[%81, %c0_42, %c0_43] : memref<4x8x256xf32, #tpu.memory_space<vmem>>, vector<1x8x256xf32>
    %83 = vector.shape_cast %82 : vector<1x8x256xf32> to vector<8x256xf32>
    %84 = vector.shape_cast %80 : vector<8x256xf32> to vector<1x8x256xf32>
    tpu.vector_store %arg5[%81, %c0_42, %c0_43], %84 {strides = array<i32>} : memref<4x8x256xf32, #tpu.memory_space<vmem>>, vector<1x8x256xf32>,
    %c3_i32 = arith.constant 3 : i32
    %85 = arith.index_cast %c3_i32 : i32 to index
    %c0_44 = arith.constant 0 : index
    %c0_45 = arith.constant 0 : index
    %86 = vector.load %arg1[%85, %c0_44, %c0_45] : memref<4x8x256xf32, #tpu.memory_space<vmem>>, vector<1x8x256xf32>
    %87 = vector.shape_cast %86 : vector<1x8x256xf32> to vector<8x256xf32>
    %88 = arith.index_cast %c3_i32 : i32 to index
    %c0_46 = arith.constant 0 : index
    %c0_47 = arith.constant 0 : index
    %89 = vector.load %arg2[%88, %c0_46, %c0_47] : memref<4x8x256xf32, #tpu.memory_space<vmem>>, vector<1x8x256xf32>
    %90 = vector.shape_cast %89 : vector<1x8x256xf32> to vector<8x256xf32>
    %91 = vector.broadcast %2 : vector<1x256xf32> to vector<8x256xf32>
    %92 = arith.mulf %90, %91 : vector<8x256xf32>
    %93 = arith.addf %87, %92 : vector<8x256xf32>
    %94 = vector.broadcast %3 : vector<1x256xf32> to vector<8x256xf32>
    %95 = arith.addf %93, %94 : vector<8x256xf32>
    %c0_48 = arith.constant 0 : index
    %c0_49 = arith.constant 0 : index
    %96 = vector.load %arg6[%c0_48, %c0_49] : memref<8x256xf32, #tpu.memory_space<vmem>>, vector<8x256xf32>
    %97 = arith.subf %95, %96 : vector<8x256xf32>
    %cst_50 = arith.constant 5.000000e-01 : f32
    %98 = vector.broadcast %cst_50 : f32 to vector<8x256xf32>
    %99 = arith.mulf %97, %98 : vector<8x256xf32>
    %100 = arith.addf %96, %99 : vector<8x256xf32>
    %cst_51 = arith.constant 1.000000e+00 : f32
    %101 = vector.broadcast %cst_51 : f32 to vector<8x256xf32>
    %102 = arith.cmpf oge, %100, %101 : vector<8x256xf32>
    %cst_52 = arith.constant 0.000000e+00 : f32
    %103 = vector.broadcast %cst_52 : f32 to vector<8x256xf32>
    %104 = arith.select %102, %103, %100 : vector<8x256xi1>, vector<8x256xf32>
    %c0_53 = arith.constant 0 : index
    %c0_54 = arith.constant 0 : index
    %105 = vector.load %arg6[%c0_53, %c0_54] : memref<8x256xf32, #tpu.memory_space<vmem>>, vector<8x256xf32>
    tpu.vector_store %arg6[%c0_53, %c0_54], %104 {strides = array<i32>} : memref<8x256xf32, #tpu.memory_space<vmem>>, vector<8x256xf32>,
    %106 = arith.extui %102 : vector<8x256xi1> to vector<8x256xi32>
    %107 = arith.sitofp %106 : vector<8x256xi32> to vector<8x256xf32>
    %108 = arith.index_cast %c3_i32 : i32 to index
    %c0_55 = arith.constant 0 : index
    %c0_56 = arith.constant 0 : index
    %109 = vector.load %arg5[%108, %c0_55, %c0_56] : memref<4x8x256xf32, #tpu.memory_space<vmem>>, vector<1x8x256xf32>
    %110 = vector.shape_cast %109 : vector<1x8x256xf32> to vector<8x256xf32>
    %111 = vector.shape_cast %107 : vector<8x256xf32> to vector<1x8x256xf32>
    tpu.vector_store %arg5[%108, %c0_55, %c0_56], %111 {strides = array<i32>} : memref<4x8x256xf32, #tpu.memory_space<vmem>>, vector<1x8x256xf32>,
    %c4_i32 = arith.constant 4 : i32
    return
  }
  func.func @transform_0(%arg0: i32) -> (i32, i32, i32) {
    %c0_i32 = arith.constant 0 : i32
    %c0_i32_0 = arith.constant 0 : i32
    %c0_i32_1 = arith.constant 0 : i32
    return %c0_i32, %arg0, %c0_i32_0 : i32, i32, i32
  }
  func.func @transform_1(%arg0: i32) -> (i32, i32, i32) {
    %c0_i32 = arith.constant 0 : i32
    %c0_i32_0 = arith.constant 0 : i32
    %c0_i32_1 = arith.constant 0 : i32
    return %c0_i32, %arg0, %c0_i32_0 : i32, i32, i32
  }
  func.func @transform_2(%arg0: i32) -> (i32, i32) {
    %c0_i32 = arith.constant 0 : i32
    %c0_i32_0 = arith.constant 0 : i32
    %c0_i32_1 = arith.constant 0 : i32
    return %c0_i32, %c0_i32_0 : i32, i32
  }
  func.func @transform_3(%arg0: i32) -> (i32, i32) {
    %c0_i32 = arith.constant 0 : i32
    %c0_i32_0 = arith.constant 0 : i32
    %c0_i32_1 = arith.constant 0 : i32
    return %c0_i32, %c0_i32_0 : i32, i32
  }
  func.func @transform_4(%arg0: i32) -> (i32, i32, i32) {
    %c0_i32 = arith.constant 0 : i32
    %c0_i32_0 = arith.constant 0 : i32
    %c0_i32_1 = arith.constant 0 : i32
    return %c0_i32, %arg0, %c0_i32_0 : i32, i32, i32
  }
}

</mosaic_0001>

<bundles_post_ra>
// kernel: tile.33
= control target key start
LH: loop header
LB: loop body
LE: loop exit
PB: predicated region body
PF: predicated region fallthrough
CT: control target
= control target key end

     0   :  { %s22_s0 = inlined_call_operand.vmem [shape: f32[32], index: 0, kind: input, shape index: {}]   ;;  %s23_s1 = inlined_call_operand.vmem [shape: f32[8,32], index: 1, kind: output, shape index: {}]  }
   0x1   :  { %v4_v0 = vld [vmem:[%s22_s0] ss:$0 sm:$0xff] }
   0x2   :  { %5 = vst [vmem:[%s23_s1] sm:$0xff] %v4_v0 }

// kernel: tile.34
= control target key start
LH: loop header
LB: loop body
LE: loop exit
PB: predicated region body
PF: predicated region fallthrough
CT: control target
= control target key end

     0   :  { %s7_s6 = smov 3  ;;  %s14_s9 = smov 3  ;;  %vm4_vm0 = vcmask 261120   ;;  %vm11_vm1 = vcmask 1048320   ;;  %vm18_vm2 = vcmask 785920   ;;  %vm25_vm3 = vcmask 523520   ;;  %s79_s0 = inlined_call_operand.vmem [shape: f32[8,32], index: 0, kind: input, shape index: {}]   ;;  %s80_s1 = inlined_call_operand.vmem [shape: f32[1,256], index: 1, kind: output, shape index: {}]  }
   0x1   :  { %v41_v0 = vld [vmem:[%s79_s0 + $0x3] ss:$4 sm:%s7_s6]   ;;  %s48_s10 = smov 96   ;;  %s21_s11 = smov 3  ;;  %v42_v1 = vld [vmem:[%s79_s0 + $0x2] ss:$4 sm:%s14_s9]  }
   0x2   :  { %9 = vrot.lane.b32.xlu0 %v41_v0, %s48_s10  ;;  %v43_v2 = vld [vmem:[%s79_s0 + $0x1] ss:$4 sm:%s21_s11]   ;;  %s2_s16 = smov 3  ;;  %s49_s17 = smov 32  }
   0x3   :  { %23 = vrot.lane.b32.xlu1 %v43_v2, %s49_s17  ;;  %v3_v3 = vld [vmem:[%s79_s0] ss:$4 sm:%s2_s16]   ;;  %s50_s0 = smov 64  }
   0x4   :  { %5 = vst.msk [vmem:[#allocation0] ss:$8 sm:$0x3] %vm4_vm0, %v3_v3  }
   0x6   :  { %16 = vrot.lane.b32.xlu0 %v42_v1, %s50_s0 }
  0x74   :  { %v10_v4 = vpop.permute.xlu0 %9  }
  0x75   :  { %12 = vst.msk [vmem:[#allocation0] ss:$8 sm:$0x3] %vm11_vm1, %v10_v4   ;;  %v24_v5 = vpop.permute.xlu1 %23  }
  0x78   :  { %v17_v6 = vpop.permute.xlu0 %16  }
  0x79   :  { %19 = vst.msk [vmem:[#allocation0] ss:$8 sm:$0x3] %vm18_vm2, %v17_v6  }
  0x7a   :  { %26 = vst.msk [vmem:[#allocation0] ss:$8 sm:$0x3] %vm25_vm3, %v24_v5  }
  0x81   :  { %v31_v7 = vld [vmem:[#allocation0] sm:$0x1]  ;;  %v36_v8 = vld [vmem:[#allocation0 + $0x8] sm:$0x1] }
  0x82   :  { %34 = vst [vmem:[%s80_s1] sm:$0x1] %v31_v7  ;;  %44 = vst [vmem:[%s80_s1 + $0x1] sm:$0x1] %v36_v8 }

// kernel: mul.14
= control target key start
LH: loop header
LB: loop body
LE: loop exit
PB: predicated region body
PF: predicated region fallthrough
CT: control target
= control target key end

     0   :  { %s7_s6 = smov 3  ;;  %s14_s9 = smov 3  ;;  %vm4_vm0 = vcmask 261120   ;;  %vm11_vm1 = vcmask 1048320   ;;  %vm18_vm2 = vcmask 785920   ;;  %vm25_vm3 = vcmask 523520   ;;  %s69_s0 = inlined_call_operand.vmem [shape: f32[8,32], index: 0, kind: input, shape index: {}]   ;;  %s70_s1 = inlined_call_operand.vmem [shape: f32[256], index: 1, kind: output, shape index: {}]  }
   0x1   :  { %v35_v0 = vld [vmem:[%s69_s0 + $0x3] ss:$4 sm:%s7_s6]   ;;  %s41_s10 = smov 96   ;;  %s21_s11 = smov 3  ;;  %v36_v1 = vld [vmem:[%s69_s0 + $0x2] ss:$4 sm:%s14_s9]  }
   0x2   :  { %9 = vrot.lane.b32.xlu0 %v35_v0, %s41_s10  ;;  %v37_v2 = vld [vmem:[%s69_s0 + $0x1] ss:$4 sm:%s21_s11]   ;;  %s2_s16 = smov 3  ;;  %s42_s17 = smov 32  }
   0x3   :  { %23 = vrot.lane.b32.xlu1 %v37_v2, %s42_s17  ;;  %v3_v3 = vld [vmem:[%s69_s0] ss:$4 sm:%s2_s16]   ;;  %s43_s0 = smov 64  }
   0x4   :  { %5 = vst.msk [vmem:[#allocation0] sm:$0x3] %vm4_vm0, %v3_v3  }
   0x6   :  { %16 = vrot.lane.b32.xlu0 %v36_v1, %s43_s0 }
  0x74   :  { %v10_v4 = vpop.permute.xlu0 %9  }
  0x75   :  { %12 = vst.msk [vmem:[#allocation0] sm:$0x3] %vm11_vm1, %v10_v4   ;;  %v24_v5 = vpop.permute.xlu1 %23  }
  0x78   :  { %v17_v6 = vpop.permute.xlu0 %16  }
  0x79   :  { %19 = vst.msk [vmem:[#allocation0] sm:$0x3] %vm18_vm2, %v17_v6  }
  0x7a   :  { %26 = vst.msk [vmem:[#allocation0] sm:$0x3] %vm25_vm3, %v24_v5  }
  0x81   :  { %v31_v7 = vld [vmem:[#allocation0] sm:$0x3] }
  0x82   :  { %34 = vst [vmem:[%s70_s1] sm:$0x3] %v31_v7 }

// kernel: resblock_forward.5
= control target key start
LH: loop header
LB: loop body
LE: loop exit
PB: predicated region body
PF: predicated region fallthrough
CT: control target
= control target key end

     0   :  { %s673_s15 = smov 0   ;;  %s675_s16 = smov 0   ;;  %s807_s0 = inlined_call_operand.vmem [shape: f32[4,16,256], index: 0, kind: input, shape index: {}]   ;;  %s808_s1 = inlined_call_operand.vmem [shape: f32[4,16,256], index: 1, kind: input, shape index: {}]   ;;  %s809_s2 = inlined_call_operand.vmem [shape: f32[1,256], index: 2, kind: input, shape index: {}]   ;;  %s810_s3 = inlined_call_operand.vmem [shape: f32[1,256], index: 3, kind: input, shape index: {}]   ;;  %s811_s4 = inlined_call_operand.vmem [shape: f32[4,16,256], index: 4, kind: output, shape index: {}]  }
   0x1   :  { %s677_s17 = smov 0  }
   0x2 LB: > { %s550_s18 = sadd.s32 4294967295, %s645_s17   ;;  %s690_s19 = sadd.s32 1, %s645_s17   ;;  %s645_s17 = sphi %s677_s17, %s816_s17   ;;  %s641_s16 = sphi %s675_s16, %s815_s16   ;;  %s637_s15 = sphi %s673_s15, %s814_s15  }
   0x3   : > { %s18_s20 = ssub.s32 %s645_s17, %s690_s19  ;;  %s21_s21 = sadd.s32 1, %s641_s16 }
   0x4   : > { %p19_p0 = scmp.eq.s32.totalorder %s18_s20, 0  ;;  %p28_p1 = scmp.ne.s32.totalorder %s641_s16, %s637_s15 }
   0x5   : > { %p29_p2 = scmp.eq.s32.totalorder %s645_s17, 0  ;;  %p126_p3 = scmp.eq.s32.totalorder %s550_s18, 1 }
   0x6   : > { %s701_s22 = scalar_select %p19_p0, %s641_s16, %s21_s21  }
   0x7   : > { %p703_p4 = por %p29_p2, %p28_p1  ;;  %p707_p5 = por %p126_p3, %p28_p1 }
   0x8   : > { %p553_p6 = scmp.ge.s32.totalorder %s645_s17, 2 }
   0xa   : > { %154 = sbr.rel (%p553_p6) target bundleno = 31 (0x1f), region = 24 }
   0xf   : > { %157 = sbr.rel (!%p703_p4) target bundleno = 23 (0x17), region = 28  ;;  %s159_s25 = sand.u32 (%p703_p4), 1, %s641_s16  }
  0x10   : > { %s595_s26 = sshll.u32 (%p703_p4), %s645_s17, 4  ;;  %s554_s27 = sshll.u32 (%p703_p4), %s159_s25, 6 }
  0x11   : > { %s164_s30 = scalar_lea.vmem (%p703_p4), %s807_s0, %s595_s26  ;;  %s161_s5 = scalar_lea.vmem (%p703_p4), [#allocation3], %s554_s27 }
  0x12   : > { %v177_v0 = vld [vmem:[%s164_s30] sm:$0xff] (%p703_p4)  ;;  %v179_v1 = vld [vmem:[%s164_s30 + $0x8] sm:$0xff] (%p703_p4) }
  0x13   : > { %v181_v2 = vld [vmem:[%s164_s30 + $0x20] sm:$0xff] (%p703_p4)  ;;  %178 = vst [vmem:[%s161_s5] sm:$0xff] (%p703_p4), %v177_v0  ;;  %180 = vst [vmem:[%s161_s5 + $0x8] sm:$0xff] (%p703_p4), %v179_v1  ;;  %v183_v3 = vld [vmem:[%s164_s30 + $0x28] sm:$0xff] (%p703_p4) }
  0x14   : > { %182 = vst [vmem:[%s161_s5 + $0x10] sm:$0xff] %v181_v2  ;;  %v185_v4 = vld [vmem:[%s164_s30 + $0x40] sm:$0xff]  ;;  %v187_v5 = vld [vmem:[%s164_s30 + $0x48] sm:$0xff]  ;;  %184 = vst [vmem:[%s161_s5 + $0x18] sm:$0xff] %v183_v3 }
  0x15   : > { %186 = vst [vmem:[%s161_s5 + $0x20] sm:$0xff] %v185_v4  ;;  %188 = vst [vmem:[%s161_s5 + $0x28] sm:$0xff] %v187_v5  ;;  %v189_v6 = vld [vmem:[%s164_s30 + $0x60] sm:$0xff]  ;;  %v191_v7 = vld [vmem:[%s164_s30 + $0x68] sm:$0xff] }
  0x16   : > { %190 = vst [vmem:[%s161_s5 + $0x30] sm:$0xff] %v189_v6  ;;  %192 = vst [vmem:[%s161_s5 + $0x38] sm:$0xff] %v191_v7 }
  0x17 PF: > { %198 = sbr.rel (!%p703_p4) target bundleno = 31 (0x1f), region = 51  ;;  %s200_s6 = sand.u32 (%p703_p4), 1, %s641_s16  }
  0x18   : > { %s596_s7 = sshll.u32 (%p703_p4), %s645_s17, 4  ;;  %s557_s8 = sshll.u32 (%p703_p4), %s200_s6, 6 }
  0x19   : > { %s205_s11 = scalar_lea.vmem (%p703_p4), %s808_s1, %s596_s7  ;;  %s202_s12 = scalar_lea.vmem (%p703_p4), [#allocation4], %s557_s8 }
  0x1a   : > { %v218_v8 = vld [vmem:[%s205_s11] sm:$0xff] (%p703_p4)  ;;  %v220_v9 = vld [vmem:[%s205_s11 + $0x8] sm:$0xff] (%p703_p4) }
  0x1b   : > { %v222_v10 = vld [vmem:[%s205_s11 + $0x20] sm:$0xff] (%p703_p4)  ;;  %219 = vst [vmem:[%s202_s12] sm:$0xff] (%p703_p4), %v218_v8  ;;  %221 = vst [vmem:[%s202_s12 + $0x8] sm:$0xff] (%p703_p4), %v220_v9  ;;  %v224_v11 = vld [vmem:[%s205_s11 + $0x28] sm:$0xff] (%p703_p4) }
  0x1c   : > { %223 = vst [vmem:[%s202_s12 + $0x10] sm:$0xff] %v222_v10  ;;  %v226_v12 = vld [vmem:[%s205_s11 + $0x40] sm:$0xff]  ;;  %v228_v13 = vld [vmem:[%s205_s11 + $0x48] sm:$0xff]  ;;  %225 = vst [vmem:[%s202_s12 + $0x18] sm:$0xff] %v224_v11 }
  0x1d   : > { %227 = vst [vmem:[%s202_s12 + $0x20] sm:$0xff] %v226_v12  ;;  %229 = vst [vmem:[%s202_s12 + $0x28] sm:$0xff] %v228_v13  ;;  %v230_v14 = vld [vmem:[%s205_s11 + $0x60] sm:$0xff]  ;;  %v232_v15 = vld [vmem:[%s205_s11 + $0x68] sm:$0xff] }
  0x1e   : > { %231 = vst [vmem:[%s202_s12 + $0x30] sm:$0xff] %v230_v14  ;;  %233 = vst [vmem:[%s202_s12 + $0x38] sm:$0xff] %v232_v15 }
  0x1f PF: > { %p560_p7 = scmp.ge.s32.totalorder %s645_s17, 1  ;;  %p238_p8 = scmp.lt.s32.totalorder %s645_s17, 3 }
  0x21   : > { %p239_p9 = pnand %p560_p7, %p238_p8 }
  0x22   : > { %s245_s13 = sand.u32 (!%p239_p9), 1, %s637_s15  }
  0x23   : > { %242 = sbr.rel (%p239_p9) target bundleno = 91 (0x5b), region = 74  ;;  %s729_s14 = sshll.u32 (!%p239_p9), %s245_s13, 6 }
  0x24   : > { %s738_s26 = scalar_lea.vmem (!%p239_p9), [#allocation4], %s729_s14  ;;  %s745_s15 = scalar_lea.vmem (!%p239_p9), [#allocation3], %s729_s14 }
  0x25   : > { %s764_s27 = scalar_lea.vmem (!%p239_p9), [#allocation5], %s729_s14 }
  0x28   : > { %v289_v16 = vlaneseq  ;;  %v282_v18 = vld [vmem:[%s809_s2] sm:$0x3]  ;;  %v568_v23 = vld [vmem:[%s738_s26 + $0x10] sm:$0xff]  ;;  %v287_v24 = vld [vmem:[%s738_s26 + $0x8] sm:$0xff]  ;;  %v647_v55 = vmov 0.0   ;;  %s597_s28 = sshll.u32 (%p707_p5), %s550_s18, 4 }
  0x29   : > { %v283_v19 = vld [vmem:[%s810_s3] sm:$0x3]  ;;  %v569_v25 = vld [vmem:[%s738_s26 + $0x18] sm:$0xff]  ;;  %v566_v30 = vld [vmem:[%s745_s15 + $0x10] sm:$0xff]  ;;  %s444_s5 = scalar_lea.vmem (%p707_p5), %s811_s4, %s597_s28 }
  0x2a   : > { %v290_v17 = vshrl.u32 %v289_v16, 7  ;;  %v286_v20 = vld [vmem:[%s738_s26] sm:$0xff]  ;;  %v285_v31 = vld [vmem:[%s745_s15 + $0x8] sm:$0xff]  ;;  %v567_v33 = vld [vmem:[%s745_s15 + $0x18] sm:$0xff] }
  0x2b   : > { %v284_v26 = vld [vmem:[%s745_s15] sm:$0xff]  ;;  %v577_v43 = vld [vmem:[%s738_s26 + $0x28] sm:$0xff]  ;;  %v584_v63 = vld [vmem:[%s738_s26 + $0x30] sm:$0xff] }
  0x2c   : > { %v291_v21 = vsub.s32 0, %v290_v17  ;;  %v295_v22 = vsub.s32 1, %v290_v17  ;;  %v576_v42 = vld [vmem:[%s738_s26 + $0x20] sm:$0xff]  ;;  %v575_v53 = vld [vmem:[%s745_s15 + $0x28] sm:$0xff]  ;;  %v585_v0 = vld [vmem:[%s738_s26 + $0x38] sm:$0xff] }
  0x2d   : > { %v574_v52 = vld [vmem:[%s745_s15 + $0x20] sm:$0xff]  ;;  %v582_v9 = vld [vmem:[%s745_s15 + $0x30] sm:$0xff]  ;;  %v583_v10 = vld [vmem:[%s745_s15 + $0x38] sm:$0xff] }
  0x2e   : > { %v292_v27 = vrot.slane %v282_v18, %v291_v21  ;;  %v296_v28 = vrot.slane %v282_v18, %v295_v22  ;;  %v748_v29 = vrot.slane %v283_v19, %v291_v21  ;;  %v752_v32 = vrot.slane %v283_v19, %v295_v22 }
  0x30   : > { %v299_v34 = vmul.f32 %v292_v27, %v286_v20  ;;  %v342_v35 = vmul.f32 %v568_v23, %v292_v27  ;;  %v300_v36 = vmul.f32 %v296_v28, %v287_v24  ;;  %v343_v37 = vmul.f32 %v569_v25, %v296_v28 }
  0x31   : > { %v375_v46 = vmul.f32 %v576_v42, %v292_v27  ;;  %v376_v47 = vmul.f32 %v577_v43, %v296_v28  ;;  %v408_v3 = vmul.f32 %v584_v63, %v292_v27  ;;  %v409_v4 = vmul.f32 %v585_v0, %v296_v28 }
  0x32   : > { %v301_v38 = vadd.f32 %v299_v34, %v284_v26  ;;  %v344_v39 = vadd.f32 %v566_v30, %v342_v35  ;;  %v302_v40 = vadd.f32 %v300_v36, %v285_v31  ;;  %v345_v41 = vadd.f32 %v567_v33, %v343_v37 }
  0x33   : > { %v377_v61 = vadd.f32 %v574_v52, %v375_v46  ;;  %v378_v62 = vadd.f32 %v575_v53, %v376_v47  ;;  %v410_v17 = vadd.f32 %v582_v9, %v408_v3  ;;  %v411_v18 = vadd.f32 %v583_v10, %v409_v4 }
  0x34   : > { %v314_v44 = vadd.f32 %v748_v29, %v301_v38  ;;  %v315_v45 = vadd.f32 %v752_v32, %v302_v40  ;;  %v346_v49 = vadd.f32 %v344_v39, %v748_v29  ;;  %v347_v51 = vadd.f32 %v345_v41, %v752_v32 }
  0x35   : > { %v379_v6 = vadd.f32 %v377_v61, %v748_v29  ;;  %v380_v8 = vadd.f32 %v378_v62, %v752_v32  ;;  %v412_v22 = vadd.f32 %v410_v17, %v748_v29  ;;  %v413_v24 = vadd.f32 %v411_v18, %v752_v32 }
  0x36   : > { %v320_v48 = vmul.f32 0.5, %v314_v44  ;;  %v321_v50 = vmul.f32 0.5, %v315_v45 }
  0x38   : > { %vm324_vm0 = vcmp.ge.f32.partialorder %v320_v48, 1.0  ;;  %vm325_vm1 = vcmp.ge.f32.partialorder %v321_v50, 1.0 }
  0x39   : > { %v326_v54 = vsel %vm324_vm0, 0.0, %v320_v48  ;;  %v564_v56 = vsel %vm324_vm0, 1.0, %v647_v55  ;;  %v327_v57 = vsel %vm325_vm1, 0.0, %v321_v50  ;;  %v565_v58 = vsel %vm325_vm1, 1.0, %v647_v55 }
  0x3a   : > { %334 = vst [vmem:[%s764_s27] sm:$0xff] %v564_v56  ;;  %v350_v59 = vsub.f32 %v346_v49, %v326_v54  ;;  %335 = vst [vmem:[%s764_s27 + $0x8] sm:$0xff] %v565_v58  ;;  %v351_v60 = vsub.f32 %v347_v51, %v327_v57 }
  0x3c   : > { %v352_v1 = vmul.f32 0.5, %v350_v59  ;;  %v353_v2 = vmul.f32 0.5, %v351_v60 }
  0x3e   : > { %v354_v5 = vadd.f32 %v352_v1, %v326_v54  ;;  %v355_v7 = vadd.f32 %v353_v2, %v327_v57 }
  0x40   : > { %vm356_vm2 = vcmp.ge.f32.partialorder %v354_v5, 1.0  ;;  %vm357_vm3 = vcmp.ge.f32.partialorder %v355_v7, 1.0 }
  0x41   : > { %v358_v11 = vsel %vm356_vm2, 0.0, %v354_v5  ;;  %v570_v12 = vsel %vm356_vm2, 1.0, %v647_v55  ;;  %v359_v13 = vsel %vm357_vm3, 0.0, %v355_v7  ;;  %v571_v14 = vsel %vm357_vm3, 1.0, %v647_v55  ;;  %v457_v37 = vld [vmem:[%s764_s27] sm:$0xff] (%p707_p5)  ;;  %v459_v38 = vld [vmem:[%s764_s27 + $0x8] sm:$0xff] (%p707_p5) }
  0x42   : > { %572 = vst [vmem:[%s764_s27 + $0x10] sm:$0xff] %v570_v12  ;;  %v383_v15 = vsub.f32 %v379_v6, %v358_v11  ;;  %573 = vst [vmem:[%s764_s27 + $0x18] sm:$0xff] %v571_v14  ;;  %v384_v16 = vsub.f32 %v380_v8, %v359_v13 }
  0x43   : > { %458 = vst [vmem:[%s444_s5] sm:$0xff] (%p707_p5), %v457_v37  ;;  %460 = vst [vmem:[%s444_s5 + $0x8] sm:$0xff] (%p707_p5), %v459_v38 }
  0x44   : > { %v385_v19 = vmul.f32 0.5, %v383_v15  ;;  %v386_v20 = vmul.f32 0.5, %v384_v16 }
  0x46   : > { %v387_v21 = vadd.f32 %v385_v19, %v358_v11  ;;  %v388_v23 = vadd.f32 %v386_v20, %v359_v13 }
  0x48   : > { %vm389_vm4 = vcmp.ge.f32.partialorder %v387_v21, 1.0  ;;  %vm390_vm5 = vcmp.ge.f32.partialorder %v388_v23, 1.0 }
  0x49   : > { %v391_v25 = vsel %vm389_vm4, 0.0, %v387_v21  ;;  %v578_v26 = vsel %vm389_vm4, 1.0, %v647_v55  ;;  %v392_v27 = vsel %vm390_vm5, 0.0, %v388_v23  ;;  %v579_v28 = vsel %vm390_vm5, 1.0, %v647_v55  ;;  %v461_v39 = vld [vmem:[%s764_s27 + $0x10] sm:$0xff] (%p707_p5)  ;;  %v463_v40 = vld [vmem:[%s764_s27 + $0x18] sm:$0xff] (%p707_p5) }
  0x4a   : > { %580 = vst [vmem:[%s764_s27 + $0x20] sm:$0xff] %v578_v26  ;;  %v416_v30 = vsub.f32 %v412_v22, %v391_v25  ;;  %581 = vst [vmem:[%s764_s27 + $0x28] sm:$0xff] %v579_v28  ;;  %v417_v31 = vsub.f32 %v413_v24, %v392_v27 }
  0x4b   : > { %462 = vst [vmem:[%s444_s5 + $0x20] sm:$0xff] (%p707_p5), %v461_v39  ;;  %464 = vst [vmem:[%s444_s5 + $0x28] sm:$0xff] (%p707_p5), %v463_v40 }
  0x4c   : > { %v418_v33 = vmul.f32 0.5, %v416_v30  ;;  %v419_v34 = vmul.f32 0.5, %v417_v31 }
  0x4e   : > { %v420_v35 = vadd.f32 %v418_v33, %v391_v25  ;;  %v421_v36 = vadd.f32 %v419_v34, %v392_v27  ;;  %441 = sbr.rel (!%p707_p5) target bundleno = 91 (0x5b), region = 86 }
  0x50   : > { %vm422_vm6 = vcmp.ge.f32.partialorder %v420_v35, 1.0  ;;  %vm423_vm7 = vcmp.ge.f32.partialorder %v421_v36, 1.0 }
  0x51   : > { %v586_v29 = vsel %vm422_vm6, 1.0, %v647_v55  ;;  %v587_v32 = vsel %vm423_vm7, 1.0, %v647_v55  ;;  %v465_v41 = vld [vmem:[%s764_s27 + $0x20] sm:$0xff] (%p707_p5)  ;;  %v467_v42 = vld [vmem:[%s764_s27 + $0x28] sm:$0xff] (%p707_p5) }
  0x52   : > { %588 = vst [vmem:[%s764_s27 + $0x30] sm:$0xff] %v586_v29  ;;  %589 = vst [vmem:[%s764_s27 + $0x38] sm:$0xff] %v587_v32 }
  0x53   : > { %466 = vst [vmem:[%s444_s5 + $0x40] sm:$0xff] %v465_v41  ;;  %468 = vst [vmem:[%s444_s5 + $0x48] sm:$0xff] %v467_v42 }
  0x59   : > { %v469_v43 = vld [vmem:[%s764_s27 + $0x30] sm:$0xff]  ;;  %v471_v44 = vld [vmem:[%s764_s27 + $0x38] sm:$0xff] }
  0x5a   : > { %470 = vst [vmem:[%s444_s5 + $0x60] sm:$0xff] %v469_v43  ;;  %472 = vst [vmem:[%s444_s5 + $0x68] sm:$0xff] %v471_v44 }
  0x5b PF: > { %p11_p10 = scmp.ge.s32.totalorder %s690_s19, 4   ;;  %s814_s15 = smov %s641_s16 }
  0x5c   : > { %s815_s16 = smov %s701_s22  ;;  %s816_s17 = smov %s690_s19 }
  0x5d   :  { %13 = sbr.rel (!%p11_p10) target bundleno = 2 (0x2), region = 157 }

// kernel: resblock_forward.4
= control target key start
LH: loop header
LB: loop body
LE: loop exit
PB: predicated region body
PF: predicated region fallthrough
CT: control target
= control target key end

     0   :  { %s1740_s18 = smov 0   ;;  %s2157_s0 = inlined_call_operand.vmem [shape: bf16[8,8,256], index: 0, kind: input, shape index: {}]   ;;  %s2158_s1 = inlined_call_operand.vmem [shape: bf16[3,256,256], index: 1, kind: input, shape index: {}]   ;;  %s2159_s2 = inlined_call_operand.vmem [shape: f32[1,256], index: 2, kind: input, shape index: {}]   ;;  %s2160_s3 = inlined_call_operand.vmem [shape: f32[1,256], index: 3, kind: input, shape index: {}]   ;;  %s2161_s4 = inlined_call_operand.vmem [shape: f32[8,8,256], index: 4, kind: output, shape index: {0}]   ;;  %s2162_s5 = inlined_call_operand.vmem [shape: f32[2,2,256], index: 5, kind: output, shape index: {1}]  }
   0x1 LB: > { %s1746_s19 = sadd.s32 4294967295, %s1707_s18   ;;  %p1341_p0 = scmp.ge.s32.totalorder %s1707_s18, 1  ;;  %s1707_s18 = sphi %s1740_s18, %s16_s18  }
   0x2   : > { %p192_p1 = scmp.lt.s32.totalorder %s1707_s18, 3 }
   0x4   : > { %p193_p2 = pnand %p1341_p0, %p192_p1 }
   0x5   : > { %s1342_s9 = sshll.u32 (!%p193_p2), %s1746_s19, 2  ;;  %p241_p4 = scmp.lt.s32.totalorder (!%p193_p2), %s1746_s19, 1 }
   0x6   : > { %196 = sbr.rel (%p193_p2) target bundleno = 379 (0x17b), region = 36  ;;  %p228_p3 = scmp.lt.s32.totalorder (!%p193_p2), %s1342_s9, 7 }
   0xb   : > { %v1557_v0 = vld [vmem:[%s2158_s1 + $0x74] ss:$8 sps:$4 sm:$0xff]   ;;  %v1561_v2 = vld [vmem:[%s2158_s1 + $0x70] ss:$8 sps:$4 sm:$0xff]   ;;  %v1563_v4 = vld [vmem:[%s2158_s1 + $0x64] ss:$8 sps:$4 sm:$0xff]   ;;  %v260_v36 = vlaneseq }
   0xc   : > { %v1559_v1 = vld [vmem:[%s2158_s1 + $0x174] ss:$8 sps:$4 sm:$0xff]   ;;  %474 = vmatprep.subr.bf16.mxu0 %v1557_v0  ;;  %v1562_v3 = vld [vmem:[%s2158_s1 + $0x170] ss:$8 sps:$4 sm:$0xff]   ;;  %v1565_v5 = vld [vmem:[%s2158_s1 + $0x164] ss:$8 sps:$4 sm:$0xff]  }
   0xd   : > { %720 = vmatprep.subr.bf16.mxu1 %v1559_v1  ;;  %475 = vmatpush1.bf16.msra.mxu0 %v1561_v2  ;;  %v1567_v6 = vld [vmem:[%s2158_s1 + $0x60] ss:$8 sps:$4 sm:$0xff]   ;;  %v1569_v8 = vld [vmem:[%s2158_s1 + $0x54] ss:$8 sps:$4 sm:$0xff]   ;;  %v1573_v10 = vld [vmem:[%s2158_s1 + $0x50] ss:$8 sps:$4 sm:$0xff]  }
   0xe   : > { %721 = vmatpush1.bf16.msra.mxu1 %v1562_v3  ;;  %476 = vmatprep.subr.bf16.mxu0 %v1563_v4  ;;  %v1568_v7 = vld [vmem:[%s2158_s1 + $0x160] ss:$8 sps:$4 sm:$0xff]   ;;  %v1571_v9 = vld [vmem:[%s2158_s1 + $0x154] ss:$8 sps:$4 sm:$0xff]   ;;  %v1574_v11 = vld [vmem:[%s2158_s1 + $0x150] ss:$8 sps:$4 sm:$0xff]  }
   0xf   : > { %722 = vmatprep.subr.bf16.mxu1 %v1565_v5  ;;  %v1575_v12 = vld [vmem:[%s2158_s1 + $0x44] ss:$8 sps:$4 sm:$0xff]   ;;  %v1579_v14 = vld [vmem:[%s2158_s1 + $0x40] ss:$8 sps:$4 sm:$0xff]   ;;  %v1581_v16 = vld [vmem:[%s2158_s1 + $0x34] ss:$8 sps:$4 sm:$0xff]  }
  0x10   : > { %v1577_v13 = vld [vmem:[%s2158_s1 + $0x144] ss:$8 sps:$4 sm:$0xff]   ;;  %v1580_v15 = vld [vmem:[%s2158_s1 + $0x140] ss:$8 sps:$4 sm:$0xff]   ;;  %v1583_v17 = vld [vmem:[%s2158_s1 + $0x134] ss:$8 sps:$4 sm:$0xff]  }
  0x11   : > { %477 = vmatpush1.bf16.msra.mxu0 %v1567_v6  ;;  %v1585_v18 = vld [vmem:[%s2158_s1 + $0x30] ss:$8 sps:$4 sm:$0xff]   ;;  %v1587_v20 = vld [vmem:[%s2158_s1 + $0x24] ss:$8 sps:$4 sm:$0xff]   ;;  %v1591_v22 = vld [vmem:[%s2158_s1 + $0x20] ss:$8 sps:$4 sm:$0xff]  }
  0x12   : > { %723 = vmatpush1.bf16.msra.mxu1 %v1568_v7  ;;  %478 = vmatprep.subr.bf16.mxu0 %v1569_v8  ;;  %v1586_v19 = vld [vmem:[%s2158_s1 + $0x130] ss:$8 sps:$4 sm:$0xff]   ;;  %v1589_v21 = vld [vmem:[%s2158_s1 + $0x124] ss:$8 sps:$4 sm:$0xff]   ;;  %v1592_v23 = vld [vmem:[%s2158_s1 + $0x120] ss:$8 sps:$4 sm:$0xff]  }
  0x13   : > { %724 = vmatprep.subr.bf16.mxu1 %v1571_v9  ;;  %v1593_v24 = vld [vmem:[%s2158_s1 + $0x14] ss:$8 sps:$4 sm:$0xff]   ;;  %v1597_v26 = vld [vmem:[%s2158_s1 + $0x10] ss:$8 sps:$4 sm:$0xff]   ;;  %v1599_v28 = vld [vmem:[%s2158_s1 + $0x4] ss:$8 sps:$4 sm:$0xff]  }
  0x14   : > { %v1595_v25 = vld [vmem:[%s2158_s1 + $0x114] ss:$8 sps:$4 sm:$0xff]   ;;  %v1598_v27 = vld [vmem:[%s2158_s1 + $0x110] ss:$8 sps:$4 sm:$0xff]   ;;  %v1601_v29 = vld [vmem:[%s2158_s1 + $0x104] ss:$8 sps:$4 sm:$0xff]  }
  0x15   : > { %479 = vmatpush1.bf16.msra.mxu0 %v1573_v10  ;;  %v1603_v30 = vld [vmem:[%s2158_s1] ss:$8 sps:$4 sm:$0xff]   ;;  %v1605_v32 = vld [vmem:[%s2158_s1 + $0xf4] ss:$8 sps:$4 sm:$0xff]   ;;  %v1609_v34 = vld [vmem:[%s2158_s1 + $0xf0] ss:$8 sps:$4 sm:$0xff]  }
  0x16   : > { %725 = vmatpush1.bf16.msra.mxu1 %v1574_v11  ;;  %480 = vmatprep.subr.bf16.mxu0 %v1575_v12  ;;  %v1604_v31 = vld [vmem:[%s2158_s1 + $0x100] ss:$8 sps:$4 sm:$0xff]   ;;  %v1607_v33 = vld [vmem:[%s2158_s1 + $0x1f4] ss:$8 sps:$4 sm:$0xff]   ;;  %v1610_v35 = vld [vmem:[%s2158_s1 + $0x1f0] ss:$8 sps:$4 sm:$0xff]  }
  0x17   : > { %726 = vmatprep.subr.bf16.mxu1 %v1577_v13  ;;  %v1611_v37 = vld [vmem:[%s2158_s1 + $0xe4] ss:$8 sps:$4 sm:$0xff]   ;;  %s2164_s9 = smov (!%p228_p3, %s1342_s9), 7  ;;  %v1615_v39 = vld [vmem:[%s2158_s1 + $0xe0] ss:$8 sps:$4 sm:$0xff]   ;;  %v1871_v40 = vshrl.u32 %v260_v36, 7 }
  0x18   : > { %v1613_v38 = vld [vmem:[%s2158_s1 + $0x1e4] ss:$8 sps:$4 sm:$0xff]   ;;  %v1616_v41 = vld [vmem:[%s2158_s1 + $0x1e0] ss:$8 sps:$4 sm:$0xff]   ;;  %v1617_v42 = vld [vmem:[%s2158_s1 + $0xd4] ss:$8 sps:$4 sm:$0xff]  }
  0x19   : > { %481 = vmatpush1.bf16.msra.mxu0 %v1579_v14  ;;  %s1513_s10 = sshll.u32 %s2164_s9, 3  ;;  %v1619_v43 = vld [vmem:[%s2158_s1 + $0x1d4] ss:$8 sps:$4 sm:$0xff]   ;;  %v1621_v44 = vld [vmem:[%s2158_s1 + $0xd0] ss:$8 sps:$4 sm:$0xff]   ;;  %v266_v47 = vsub.s32 1, %v1871_v40 }
  0x1a   : > { %727 = vmatpush1.bf16.msra.mxu1 %v1580_v15  ;;  %482 = vmatprep.subr.bf16.mxu0 %v1581_v16  ;;  %v1622_v45 = vld [vmem:[%s2158_s1 + $0x1d0] ss:$8 sps:$4 sm:$0xff]   ;;  %s1892_s21 = scalar_lea.vmem %s2157_s0, %s1513_s10  ;;  %v1623_v46 = vld [vmem:[%s2158_s1 + $0xc4] ss:$8 sps:$4 sm:$0xff]   ;;  %v1627_v49 = vld [vmem:[%s2158_s1 + $0xc0] ss:$8 sps:$4 sm:$0xff]  }
  0x1b   : > { %728 = vmatprep.subr.bf16.mxu1 %v1583_v17  ;;  %v1625_v48 = vld [vmem:[%s2158_s1 + $0x1c4] ss:$8 sps:$4 sm:$0xff]   ;;  %v1628_v51 = vld [vmem:[%s2158_s1 + $0x1c0] ss:$8 sps:$4 sm:$0xff]   ;;  %v1629_v55 = vld [vmem:[%s2158_s1 + $0xb4] ss:$8 sps:$4 sm:$0xff]  }
  0x1c   : > { %v246_v50 = vld [vmem:[%s1892_s21] sm:$0xff]  ;;  %v247_v52 = vld [vmem:[%s1892_s21 + $0x8] sm:$0xff]  ;;  %v1631_v58 = vld [vmem:[%s2158_s1 + $0x1b4] ss:$8 sps:$4 sm:$0xff]   ;;  %v262_v2 = vsub.s32 0, %v1871_v40  ;;  %s1514_s16 = sshll.u32 %s2164_s9, 4 }
  0x1d   : > { %483 = vmatpush1.bf16.msra.mxu0 %v1585_v18  ;;  %v251_v53 = vunpack.c.h.bf16 %v246_v50  ;;  %v258_v54 = vld [vmem:[%s2160_s3] sm:$0x3]  ;;  %v253_v56 = vunpack.c.h.bf16 %v247_v52  ;;  %v1633_v61 = vld [vmem:[%s2158_s1 + $0xb0] ss:$8 sps:$4 sm:$0xff]   ;;  %v1635_v0 = vld [vmem:[%s2158_s1 + $0xa4] ss:$8 sps:$4 sm:$0xff]   ;;  %v250_v8 = vunpack.c.l.bf16 %v246_v50  ;;  %v252_v9 = vunpack.c.l.bf16 %v247_v52  ;;  %s2082_s22 = scalar_lea.vmem %s2161_s4, %s1514_s16 }
  0x1e   : > { %729 = vmatpush1.bf16.msra.mxu1 %v1586_v19  ;;  %484 = vmatprep.subr.bf16.mxu0 %v1587_v20  ;;  %v267_v57 = vrot.slane %v258_v54, %v266_v47  ;;  %v1634_v62 = vld [vmem:[%s2158_s1 + $0x1b0] ss:$8 sps:$4 sm:$0xff]   ;;  %v1637_v1 = vld [vmem:[%s2158_s1 + $0x1a4] ss:$8 sps:$4 sm:$0xff]   ;;  %v1639_v3 = vld [vmem:[%s2158_s1 + $0xa0] ss:$8 sps:$4 sm:$0xff]   ;;  %v263_v10 = vrot.slane %v258_v54, %v262_v2 }
  0x1f   : > { %730 = vmatprep.subr.bf16.mxu1 %v1589_v21  ;;  %v1640_v4 = vld [vmem:[%s2158_s1 + $0x1a0] ss:$8 sps:$4 sm:$0xff]   ;;  %v1641_v5 = vld [vmem:[%s2158_s1 + $0x94] ss:$8 sps:$4 sm:$0xff]   ;;  %v1645_v12 = vld [vmem:[%s2158_s1 + $0x90] ss:$8 sps:$4 sm:$0xff]  }
  0x20   : > { %v271_v59 = vadd.f32 %v267_v57, %v251_v53  ;;  %v273_v60 = vadd.f32 %v267_v57, %v253_v56  ;;  %v1643_v6 = vld [vmem:[%s2158_s1 + $0x194] ss:$8 sps:$4 sm:$0xff]   ;;  %v1646_v13 = vld [vmem:[%s2158_s1 + $0x190] ss:$8 sps:$4 sm:$0xff]   ;;  %v1647_v14 = vld [vmem:[%s2158_s1 + $0x84] ss:$8 sps:$4 sm:$0xff]   ;;  %v270_v18 = vadd.f32 %v263_v10, %v250_v8  ;;  %v272_v19 = vadd.f32 %v263_v10, %v252_v9 }
  0x21   : > { %485 = vmatpush1.bf16.msra.mxu0 %v1591_v22  ;;  %v248_v7 = vld [vmem:[%s1892_s21 + $0x10] sm:$0xff]  ;;  %v249_v11 = vld [vmem:[%s1892_s21 + $0x18] sm:$0xff]  ;;  %v1649_v15 = vld [vmem:[%s2158_s1 + $0x184] ss:$8 sps:$4 sm:$0xff]   ;;  %s2166_s19 = smov (!%p241_p4, %s1746_s19), 1  ;;  %vm1197_vm0 = vcmp.lt.s32.totalorder %v260_v36, 256 }
  0x22   : > { %731 = vmatpush1.bf16.msra.mxu1 %v1592_v23  ;;  %486 = vmatprep.subr.bf16.mxu0 %v1593_v24  ;;  %v1926_v63 = vpack.c.bf16 %v273_v60, %v271_v59  ;;  %v255_v16 = vunpack.c.h.bf16 %v248_v7  ;;  %v257_v17 = vunpack.c.h.bf16 %v249_v11  ;;  %v1651_v20 = vld [vmem:[%s2158_s1 + $0x80] ss:$8 sps:$4 sm:$0xff]   ;;  %v1655_v22 = vld [vmem:[%s2158_s1 + $0x274] ss:$8 sps:$4 sm:$0xff]   ;;  %v1682_v52 = vld [vmem:[%s2158_s1 + $0x2e4] ss:$8 sps:$4 sm:$0xff]  }
  0x23   : > { %732 = vmatprep.subr.bf16.mxu1 %v1595_v25  ;;  %v1652_v21 = vld [vmem:[%s2158_s1 + $0x180] ss:$8 sps:$4 sm:$0xff]   ;;  %v1974_v25 = vpack.c.bf16 %v272_v19, %v270_v18  ;;  %v1679_v50 = vld [vmem:[%s2158_s1 + $0x2f4] ss:$8 sps:$4 sm:$0xff]   ;;  %v1688_v56 = vld [vmem:[%s2158_s1 + $0x2c4] ss:$8 sps:$4 sm:$0xff]  }
  0x24   : > { %506 = vmatprep.mubr.bf16.mxu0 %v1926_v63  ;;  %752 = vmatprep.mubr.bf16.mxu1 %v1926_v63  ;;  %v275_v23 = vadd.f32 %v267_v57, %v255_v16  ;;  %v277_v24 = vadd.f32 %v267_v57, %v257_v17  ;;  %v1680_v53 = vld [vmem:[%s2158_s1 + $0x2e0] ss:$8 sps:$4 sm:$0xff]   ;;  %v1685_v54 = vld [vmem:[%s2158_s1 + $0x2d4] ss:$8 sps:$4 sm:$0xff]   ;;  %v1689_v59 = vld [vmem:[%s2158_s1 + $0x2b0] ss:$8 sps:$4 sm:$0xff]  }
  0x25   : > { %487 = vmatpush1.bf16.msra.mxu0 %v1597_v26  ;;  %v254_v26 = vunpack.c.l.bf16 %v248_v7  ;;  %v1686_v57 = vld [vmem:[%s2158_s1 + $0x2c0] ss:$8 sps:$4 sm:$0xff]   ;;  %v1694_v60 = vld [vmem:[%s2158_s1 + $0x2a4] ss:$8 sps:$4 sm:$0xff]   ;;  %s1515_s24 = sshll.u32 %s2166_s19, 2 }
  0x26   : > { %733 = vmatpush1.bf16.msra.mxu1 %v1598_v27  ;;  %488 = vmatprep.subr.bf16.mxu0 %v1599_v28  ;;  %v256_v27 = vunpack.c.l.bf16 %v249_v11  ;;  %v1653_v28 = vld [vmem:[%s2158_s1 + $0x270] ss:$8 sps:$4 sm:$0xff]   ;;  %s245_s27 = scalar_lea.vmem %s2162_s5, %s1515_s24 }
  0x27   : > { %734 = vmatprep.subr.bf16.mxu1 %v1601_v29  ;;  %v1658_v29 = vld [vmem:[%s2158_s1 + $0x264] ss:$8 sps:$4 sm:$0xff]  }
  0x29   : > { %489 = vmatpush1.bf16.msra.mxu0 %v1603_v30  ;;  %v281_v30 = vpack.c.bf16 %v277_v24, %v275_v23 }
  0x2a   : > { %735 = vmatpush1.bf16.msra.mxu1 %v1604_v31  ;;  %490 = vmatprep.subr.bf16.mxu0 %v1605_v32  ;;  %v274_v31 = vadd.f32 %v263_v10, %v254_v26  ;;  %v276_v32 = vadd.f32 %v263_v10, %v256_v27 }
  0x2b   : > { %736 = vmatprep.subr.bf16.mxu1 %v1607_v33  ;;  %v1656_v33 = vld [vmem:[%s2158_s1 + $0x260] ss:$8 sps:$4 sm:$0xff]  }
  0x2d   : > { %491 = vmatpush2.bf16.msra.mxu0 %v1609_v34  ;;  %v1661_v34 = vld [vmem:[%s2158_s1 + $0x254] ss:$8 sps:$4 sm:$0xff]  }
  0x2e   : > { %737 = vmatpush2.bf16.msra.mxu1 %v1610_v35  ;;  %492 = vmatprep.subr.bf16.mxu0 %v1611_v37  ;;  %v1990_v35 = vpack.c.bf16 %v276_v32, %v274_v31  ;;  %v1659_v37 = vld [vmem:[%s2158_s1 + $0x250] ss:$8 sps:$4 sm:$0xff]  }
  0x2f   : > { %738 = vmatprep.subr.bf16.mxu1 %v1613_v38  ;;  %v1664_v38 = vld [vmem:[%s2158_s1 + $0x244] ss:$8 sps:$4 sm:$0xff]  }
  0x31   : > { %493 = vmatpush2.bf16.msra.mxu0 %v1615_v39  ;;  %v1662_v39 = vld [vmem:[%s2158_s1 + $0x240] ss:$8 sps:$4 sm:$0xff]  }
  0x32   : > { %739 = vmatpush2.bf16.msra.mxu1 %v1616_v41  ;;  %494 = vmatprep.subr.bf16.mxu0 %v1617_v42  ;;  %v1667_v41 = vld [vmem:[%s2158_s1 + $0x234] ss:$8 sps:$4 sm:$0xff]   ;;  %v1665_v42 = vld [vmem:[%s2158_s1 + $0x230] ss:$8 sps:$4 sm:$0xff]  }
  0x33   : > { %740 = vmatprep.subr.bf16.mxu1 %v1619_v43  ;;  %v1670_v43 = vld [vmem:[%s2158_s1 + $0x224] ss:$8 sps:$4 sm:$0xff]  }
  0x35   : > { %495 = vmatpush2.bf16.msra.mxu0 %v1621_v44  ;;  %v1668_v44 = vld [vmem:[%s2158_s1 + $0x220] ss:$8 sps:$4 sm:$0xff]  }
  0x36   : > { %741 = vmatpush2.bf16.msra.mxu1 %v1622_v45  ;;  %496 = vmatprep.subr.bf16.mxu0 %v1623_v46  ;;  %v1673_v45 = vld [vmem:[%s2158_s1 + $0x214] ss:$8 sps:$4 sm:$0xff]   ;;  %v1671_v46 = vld [vmem:[%s2158_s1 + $0x210] ss:$8 sps:$4 sm:$0xff]  }
  0x37   : > { %742 = vmatprep.subr.bf16.mxu1 %v1625_v48  ;;  %v1676_v48 = vld [vmem:[%s2158_s1 + $0x204] ss:$8 sps:$4 sm:$0xff]  }
  0x39   : > { %497 = vmatpush2.bf16.msra.mxu0 %v1627_v49  ;;  %v1674_v49 = vld [vmem:[%s2158_s1 + $0x200] ss:$8 sps:$4 sm:$0xff]  }
  0x3a   : > { %743 = vmatpush2.bf16.msra.mxu1 %v1628_v51  ;;  %498 = vmatprep.subr.bf16.mxu0 %v1629_v55  ;;  %v1677_v51 = vld [vmem:[%s2158_s1 + $0x2f0] ss:$8 sps:$4 sm:$0xff]  }
  0x3b   : > { %744 = vmatprep.subr.bf16.mxu1 %v1631_v58  ;;  %v1683_v55 = vld [vmem:[%s2158_s1 + $0x2d0] ss:$8 sps:$4 sm:$0xff]   ;;  %v1691_v58 = vld [vmem:[%s2158_s1 + $0x2b4] ss:$8 sps:$4 sm:$0xff]  }
  0x3d   : > { %499 = vmatpush2.bf16.msra.mxu0 %v1633_v61  ;;  %v1692_v61 = vld [vmem:[%s2158_s1 + $0x2a0] ss:$8 sps:$4 sm:$0xff]  }
  0x3e   : > { %745 = vmatpush2.bf16.msra.mxu1 %v1634_v62  ;;  %500 = vmatprep.subr.bf16.mxu0 %v1635_v0  ;;  %v1697_v62 = vld [vmem:[%s2158_s1 + $0x294] ss:$8 sps:$4 sm:$0xff]   ;;  %v1700_v0 = vld [vmem:[%s2158_s1 + $0x284] ss:$8 sps:$4 sm:$0xff]  }
  0x3f   : > { %746 = vmatprep.subr.bf16.mxu1 %v1637_v1  ;;  %v1698_v1 = vld [vmem:[%s2158_s1 + $0x280] ss:$8 sps:$4 sm:$0xff]  }
  0x41   : > { %501 = vmatpush2.bf16.msra.mxu0 %v1639_v3 }
  0x42   : > { %747 = vmatpush2.bf16.msra.mxu1 %v1640_v4  ;;  %502 = vmatprep.subr.bf16.mxu0 %v1641_v5 }
  0x43   : > { %748 = vmatprep.subr.bf16.mxu1 %v1643_v6 }
  0x45   : > { %503 = vmatpush2.bf16.msra.mxu0 %v1645_v12 }
  0x46   : > { %749 = vmatpush2.bf16.msra.mxu1 %v1646_v13  ;;  %504 = vmatprep.subr.bf16.mxu0 %v1647_v14 }
  0x47   : > { %750 = vmatprep.subr.bf16.mxu1 %v1649_v15 }
  0x49   : > { %505 = vmatpush2.bf16.msra.mxu0 %v1651_v20 }
  0x4a   : > { %751 = vmatpush2.bf16.msra.mxu1 %v1652_v21  ;;  %966 = vmatprep.subr.bf16.mxu0 %v1655_v22 }
  0x4b   : > { %1516 = vmatprep.subr.bf16.mxu1 %v1655_v22 }
  0x4c   : > { %507 = vmatmul.mubr.bf16.vlgmr.msra.gmra.mxu0 %v1974_v25 }
  0x4d   : > { %753 = vmatmul.mubr.bf16.vlgmr.msra.gmra.mxu1 %v1974_v25  ;;  %967 = vmatpush1.bf16.msra.mxu0 %v1653_v28 }
  0x4e   : > { %1532 = vmatpush1.bf16.msra.mxu1 %v1653_v28  ;;  %968 = vmatprep.subr.bf16.mxu0 %v1658_v29 }
  0x4f   : > { %1517 = vmatprep.subr.bf16.mxu1 %v1658_v29  ;;  %762 = vmatprep.mubr.bf16.mxu1 %v281_v30 }
  0x50   : > { %516 = vmatprep.mubr.bf16.mxu0 %v281_v30 }
  0x51   : > { %969 = vmatpush1.bf16.msra.mxu0 %v1656_v33 }
  0x52   : > { %1533 = vmatpush1.bf16.msra.mxu1 %v1656_v33  ;;  %970 = vmatprep.subr.bf16.mxu0 %v1661_v34 }
  0x53   : > { %1518 = vmatprep.subr.bf16.mxu1 %v1661_v34 }
  0x54   : > { %517 = vmatmul.mubr.bf16.gmra.mxu0 %v1990_v35 }
  0x55   : > { %763 = vmatmul.mubr.bf16.gmra.mxu1 %v1990_v35  ;;  %971 = vmatpush1.bf16.msra.mxu0 %v1659_v37 }
  0x56   : > { %1534 = vmatpush1.bf16.msra.mxu1 %v1659_v37  ;;  %972 = vmatprep.subr.bf16.mxu0 %v1664_v38 }
  0x57   : > { %1519 = vmatprep.subr.bf16.mxu1 %v1664_v38  ;;  %998 = vmatprep.mubr.bf16.mxu0 %v1926_v63  ;;  %v1695_v63 = vld [vmem:[%s2158_s1 + $0x290] ss:$8 sps:$4 sm:$0xff]  }
  0x58   : > { %1008 = vmatprep.mubr.bf16.mxu1 %v281_v30 }
  0x59   : > { %973 = vmatpush1.bf16.msra.mxu0 %v1662_v39 }
  0x5a   : > { %1535 = vmatpush1.bf16.msra.mxu1 %v1662_v39  ;;  %974 = vmatprep.subr.bf16.mxu0 %v1667_v41 }
  0x5b   : > { %1520 = vmatprep.subr.bf16.mxu1 %v1667_v41 }
  0x5d   : > { %975 = vmatpush1.bf16.msra.mxu0 %v1665_v42 }
  0x5e   : > { %1536 = vmatpush1.bf16.msra.mxu1 %v1665_v42  ;;  %976 = vmatprep.subr.bf16.mxu0 %v1670_v43 }
  0x5f   : > { %1521 = vmatprep.subr.bf16.mxu1 %v1670_v43 }
  0x61   : > { %977 = vmatpush1.bf16.msra.mxu0 %v1668_v44 }
  0x62   : > { %1537 = vmatpush1.bf16.msra.mxu1 %v1668_v44  ;;  %978 = vmatprep.subr.bf16.mxu0 %v1673_v45 }
  0x63   : > { %1522 = vmatprep.subr.bf16.mxu1 %v1673_v45 }
  0x65   : > { %979 = vmatpush1.bf16.msra.mxu0 %v1671_v46 }
  0x66   : > { %1538 = vmatpush1.bf16.msra.mxu1 %v1671_v46  ;;  %980 = vmatprep.subr.bf16.mxu0 %v1676_v48 }
  0x67   : > { %1523 = vmatprep.subr.bf16.mxu1 %v1676_v48 }
  0x69   : > { %981 = vmatpush1.bf16.msra.mxu0 %v1674_v49 }
  0x6a   : > { %1539 = vmatpush1.bf16.msra.mxu1 %v1674_v49  ;;  %982 = vmatprep.subr.bf16.mxu0 %v1679_v50 }
  0x6b   : > { %1524 = vmatprep.subr.bf16.mxu1 %v1679_v50 }
  0x6d   : > { %983 = vmatpush2.bf16.msra.mxu0 %v1677_v51 }
  0x6e   : > { %1540 = vmatpush2.bf16.msra.mxu1 %v1677_v51  ;;  %984 = vmatprep.subr.bf16.mxu0 %v1682_v52 }
  0x6f   : > { %1525 = vmatprep.subr.bf16.mxu1 %v1682_v52 }
  0x71   : > { %985 = vmatpush2.bf16.msra.mxu0 %v1680_v53 }
  0x72   : > { %1541 = vmatpush2.bf16.msra.mxu1 %v1680_v53  ;;  %986 = vmatprep.subr.bf16.mxu0 %v1685_v54 }
  0x73   : > { %1526 = vmatprep.subr.bf16.mxu1 %v1685_v54 }
  0x75   : > { %987 = vmatpush2.bf16.msra.mxu0 %v1683_v55 }
  0x76   : > { %1542 = vmatpush2.bf16.msra.mxu1 %v1683_v55  ;;  %988 = vmatprep.subr.bf16.mxu0 %v1688_v56 }
  0x77   : > { %1527 = vmatprep.subr.bf16.mxu1 %v1688_v56 }
  0x79   : > { %989 = vmatpush2.bf16.msra.mxu0 %v1686_v57 }
  0x7a   : > { %1543 = vmatpush2.bf16.msra.mxu1 %v1686_v57  ;;  %990 = vmatprep.subr.bf16.mxu0 %v1691_v58 }
  0x7b   : > { %1528 = vmatprep.subr.bf16.mxu1 %v1691_v58 }
  0x7d   : > { %991 = vmatpush2.bf16.msra.mxu0 %v1689_v59 }
  0x7e   : > { %1544 = vmatpush2.bf16.msra.mxu1 %v1689_v59  ;;  %992 = vmatprep.subr.bf16.mxu0 %v1694_v60 }
  0x7f   : > { %1529 = vmatprep.subr.bf16.mxu1 %v1694_v60 }
  0x81   : > { %993 = vmatpush2.bf16.msra.mxu0 %v1692_v61 }
  0x82   : > { %1545 = vmatpush2.bf16.msra.mxu1 %v1692_v61  ;;  %994 = vmatprep.subr.bf16.mxu0 %v1697_v62 }
  0x83   : > { %1530 = vmatprep.subr.bf16.mxu1 %v1697_v62 }
  0x85   : > { %995 = vmatpush2.bf16.msra.mxu0 %v1695_v63 }
  0x86   : > { %1546 = vmatpush2.bf16.msra.mxu1 %v1695_v63  ;;  %996 = vmatprep.subr.bf16.mxu0 %v1700_v0 }
  0x87   : > { %1531 = vmatprep.subr.bf16.mxu1 %v1700_v0 }
  0x89   : > { %997 = vmatpush2.bf16.msra.mxu0 %v1698_v1 }
  0x8a   : > { %1547 = vmatpush2.bf16.msra.mxu1 %v1698_v1 }
  0x8c   : > { %999 = vmatmul.mubr.bf16.vlgmr.msra.gmra.mxu0 %v1974_v25 }
  0x8d   : > { %1009 = vmatmul.mubr.bf16.vlgmr.msra.gmra.mxu1 %v1990_v35 }
 0x10c   : > { %v508_v3 = vpop.f32.mrf.mxu0 }
 0x10d   : > { %v754_v4 = vpop.f32.mrf.mxu1  ;;  %v1043_v20 = vrot.slane %v508_v3, 7 }
 0x10e   : > { %1019 = vst [vmem:[%s2082_s22] sm:$0xff] %v754_v4  ;;  %v510_v5 = vpop.f32.mrf.mxu0 }
 0x10f   : > { %v756_v6 = vpop.f32.mrf.mxu1  ;;  %v1044_v22 = vrot.slane %v510_v5, 7 }
 0x110   : > { %1020 = vst [vmem:[%s2082_s22 + $0x8] sm:$0xff] %v756_v6  ;;  %v512_v7 = vpop.f32.mrf.mxu0 }
 0x111   : > { %v758_v8 = vpop.f32.mrf.mxu1  ;;  %v1045_v23 = vrot.slane %v512_v7, 7 }
 0x112   : > { %1021 = vst [vmem:[%s2082_s22 + $0x10] sm:$0xff] %v758_v8  ;;  %v514_v9 = vpop.f32.mrf.mxu0 }
 0x113   : > { %v760_v10 = vpop.f32.mrf.mxu1  ;;  %v1046_v29 = vrot.slane %v514_v9, 7 }
 0x114   : > { %1022 = vst [vmem:[%s2082_s22 + $0x18] sm:$0xff] %v760_v10  ;;  %v518_v12 = vpop.f32.mrf.mxu0 }
 0x115   : > { %v764_v11 = vpop.f32.mrf.mxu1  ;;  %v1047_v19 = vrot.slane %v518_v12, 7  ;;  %v1027_v26 = vld [vmem:[%s2082_s22] sm:$0xfe] }
 0x116   : > { %1023 = vst [vmem:[%s2082_s22 + $0x20] sm:$0xff] %v764_v11  ;;  %v520_v14 = vpop.f32.mrf.mxu0  ;;  %v1059_v31 = vadd.f32 %v1043_v20, %v1027_v26 }
 0x117   : > { %v766_v13 = vpop.f32.mrf.mxu1  ;;  %v1048_v24 = vrot.slane %v520_v14, 7  ;;  %v1028_v34 = vld [vmem:[%s2082_s22 + $0x8] sm:$0xfe] }
 0x118   : > { %1024 = vst [vmem:[%s2082_s22 + $0x28] sm:$0xff] %v766_v13  ;;  %v522_v16 = vpop.f32.mrf.mxu0  ;;  %1067 = vst [vmem:[%s2082_s22] sm:$0xfe] %v1059_v31  ;;  %v1060_v41 = vadd.f32 %v1044_v22, %v1028_v34 }
 0x119   : > { %v768_v15 = vpop.f32.mrf.mxu1  ;;  %v1049_v21 = vrot.slane %v522_v16, 7  ;;  %v1029_v27 = vld [vmem:[%s2082_s22 + $0x10] sm:$0xfe] }
 0x11a   : > { %1025 = vst [vmem:[%s2082_s22 + $0x30] sm:$0xff] %v768_v15  ;;  %v524_v18 = vpop.f32.mrf.mxu0  ;;  %v1061_v32 = vadd.f32 %v1045_v23, %v1029_v27  ;;  %1068 = vst [vmem:[%s2082_s22 + $0x8] sm:$0xfe] %v1060_v41  ;;  %v1131_v15 = vld [vmem:[%s2159_s2] sm:$0x3] }
 0x11b   : > { %v770_v17 = vpop.f32.mrf.mxu1  ;;  %v1050_v25 = vrot.slane %v524_v18, 7  ;;  %v1030_v35 = vld [vmem:[%s2082_s22 + $0x18] sm:$0xfe]  ;;  %v1136_v16 = vrot.slane %v1131_v15, %v262_v2 }
 0x11c   : > { %1026 = vst [vmem:[%s2082_s22 + $0x38] sm:$0xff] %v770_v17  ;;  %v1062_v42 = vadd.f32 %v1046_v29, %v1030_v35  ;;  %1069 = vst [vmem:[%s2082_s22 + $0x10] sm:$0xfe] %v1061_v32  ;;  %v1140_v17 = vrot.slane %v1131_v15, %v266_v47 }
 0x11d   : > { %v1031_v28 = vld [vmem:[%s2082_s22 + $0x20] sm:$0xfe] }
 0x11e   : > { %v1063_v33 = vadd.f32 %v1047_v19, %v1031_v28  ;;  %1070 = vst [vmem:[%s2082_s22 + $0x18] sm:$0xfe] %v1062_v42 }
 0x11f   : > { %v1032_v37 = vld [vmem:[%s2082_s22 + $0x28] sm:$0xfe]  ;;  %v1075_v49 = vld [vmem:[%s2082_s22] sm:$0x7f] }
 0x120   : > { %v1064_v43 = vadd.f32 %v1048_v24, %v1032_v37  ;;  %1071 = vst [vmem:[%s2082_s22 + $0x20] sm:$0xfe] %v1063_v33 }
 0x121   : > { %v1033_v30 = vld [vmem:[%s2082_s22 + $0x30] sm:$0xfe]  ;;  %v1076_v57 = vld [vmem:[%s2082_s22 + $0x8] sm:$0x7f] }
 0x122   : > { %v1065_v38 = vadd.f32 %v1049_v21, %v1033_v30  ;;  %1072 = vst [vmem:[%s2082_s22 + $0x28] sm:$0xfe] %v1064_v43 }
 0x123   : > { %v1034_v39 = vld [vmem:[%s2082_s22 + $0x38] sm:$0xfe]  ;;  %v1077_v55 = vld [vmem:[%s2082_s22 + $0x10] sm:$0x7f] }
 0x124   : > { %v1066_v44 = vadd.f32 %v1050_v25, %v1034_v39  ;;  %1073 = vst [vmem:[%s2082_s22 + $0x30] sm:$0xfe] %v1065_v38 }
 0x125   : > { %v1078_v4 = vld [vmem:[%s2082_s22 + $0x18] sm:$0x7f] }
 0x126   : > { %1074 = vst [vmem:[%s2082_s22 + $0x38] sm:$0xfe] %v1066_v44 }
 0x127   : > { %v1079_v53 = vld [vmem:[%s2082_s22 + $0x20] sm:$0x7f] }
 0x129   : > { %v1080_v62 = vld [vmem:[%s2082_s22 + $0x28] sm:$0x7f] }
 0x12b   : > { %v1081_v60 = vld [vmem:[%s2082_s22 + $0x30] sm:$0x7f] }
 0x12d   : > { %v1082_v6 = vld [vmem:[%s2082_s22 + $0x38] sm:$0x7f] }
 0x14c   : > { %v1000_v45 = vpop.f32.mrf.mxu0 }
 0x14d   : > { %v1010_v46 = vpop.f32.mrf.mxu1  ;;  %v1091_v48 = vrot.slane %v1000_v45, 1 }
 0x14e   : > { %v1002_v50 = vpop.f32.mrf.mxu0  ;;  %v1095_v56 = vrot.slane %v1010_v46, 1 }
 0x14f   : > { %v1012_v51 = vpop.f32.mrf.mxu1  ;;  %v1107_v52 = vadd.f32 %v1091_v48, %v1075_v49  ;;  %v1092_v54 = vrot.slane %v1002_v50, 1 }
 0x150   : > { %v1004_v58 = vpop.f32.mrf.mxu0  ;;  %v1096_v1 = vrot.slane %v1012_v51, 1  ;;  %v1111_v10 = vadd.f32 %v1095_v56, %v1079_v53 }
 0x151   : > { %v1014_v59 = vpop.f32.mrf.mxu1  ;;  %v1108_v61 = vadd.f32 %v1092_v54, %v1076_v57  ;;  %v1093_v63 = vrot.slane %v1004_v58, 1  ;;  %1115 = vst [vmem:[%s2082_s22] sm:$0x7f] %v1107_v52 }
 0x152   : > { %v1097_v0 = vrot.slane %v1014_v59, 1  ;;  %v1006_v3 = vpop.f32.mrf.mxu0  ;;  %v1112_v13 = vadd.f32 %v1096_v1, %v1080_v62  ;;  %1119 = vst [vmem:[%s2082_s22 + $0x20] sm:$0x7f] %v1111_v10 }
 0x153   : > { %v1016_v5 = vpop.f32.mrf.mxu1  ;;  %v1109_v7 = vadd.f32 %v1093_v63, %v1077_v55  ;;  %v1094_v8 = vrot.slane %v1006_v3, 1  ;;  %1116 = vst [vmem:[%s2082_s22 + $0x8] sm:$0x7f] %v1108_v61 }
 0x154   : > { %v1098_v9 = vrot.slane %v1016_v5, 1  ;;  %v1113_v11 = vadd.f32 %v1097_v0, %v1081_v60  ;;  %1120 = vst [vmem:[%s2082_s22 + $0x28] sm:$0x7f] %v1112_v13  ;;  %v1709_v60 = vmov 1966171168  }
 0x155   : > { %1117 = vst [vmem:[%s2082_s22 + $0x10] sm:$0x7f] %v1109_v7  ;;  %v1110_v12 = vadd.f32 %v1094_v8, %v1078_v4  ;;  %v1181_v61 = vunpack.c.l.s4 %v1709_v60 }
 0x156   : > { %1121 = vst [vmem:[%s2082_s22 + $0x30] sm:$0x7f] %v1113_v11  ;;  %v1114_v14 = vadd.f32 %v1098_v9, %v1082_v6 }
 0x157   : > { %1118 = vst [vmem:[%s2082_s22 + $0x18] sm:$0x7f] %v1110_v12  ;;  %v1182_v6 = vunpack.c.0.s8 %v1181_v61 }
 0x158   : > { %1122 = vst [vmem:[%s2082_s22 + $0x38] sm:$0x7f] %v1114_v14  ;;  %v1123_v18 = vld [vmem:[%s2082_s22] sm:$0xff] }
 0x159   : > { %v1127_v20 = vld [vmem:[%s2082_s22 + $0x20] sm:$0xff]  ;;  %v1143_v22 = vadd.f32 %v1136_v16, %v1123_v18  ;;  %v1200_v25 = vmul.f32 %v1123_v18, %v1123_v18  ;;  %v1185_v14 = vsub.s32 %v1182_v6, %v1871_v40 }
 0x15a   : > { %v1124_v27 = vld [vmem:[%s2082_s22 + $0x8] sm:$0xff]  ;;  %v1147_v2 = vadd.f32 %v1136_v16, %v1127_v20  ;;  %v1204_v34 = vmul.f32 %v1127_v20, %v1127_v20 }
 0x15b   : > { %v1128_v29 = vld [vmem:[%s2082_s22 + $0x28] sm:$0xff]  ;;  %1151 = vst [vmem:[%s2082_s22] sm:$0xff] %v1143_v22  ;;  %v1144_v31 = vadd.f32 %v1140_v17, %v1124_v27  ;;  %v1201_v41 = vmul.f32 %v1124_v27, %v1124_v27 }
 0x15c   : > { %v1125_v19 = vld [vmem:[%s2082_s22 + $0x10] sm:$0xff]  ;;  %1155 = vst [vmem:[%s2082_s22 + $0x20] sm:$0xff] %v1147_v2  ;;  %v1148_v39 = vadd.f32 %v1140_v17, %v1128_v29  ;;  %v1205_v49 = vmul.f32 %v1128_v29, %v1128_v29 }
 0x15d   : > { %v1129_v21 = vld [vmem:[%s2082_s22 + $0x30] sm:$0xff]  ;;  %v1145_v23 = vadd.f32 %v1136_v16, %v1125_v19  ;;  %v1159_v24 = vadd.f32 %v1125_v19, %v1123_v18  ;;  %v1202_v26 = vmul.f32 %v1125_v19, %v1125_v19  ;;  %1152 = vst [vmem:[%s2082_s22 + $0x8] sm:$0xff] %v1144_v31 }
 0x15e   : > { %v1126_v28 = vld [vmem:[%s2082_s22 + $0x18] sm:$0xff]  ;;  %v1149_v33 = vadd.f32 %v1136_v16, %v1129_v21  ;;  %v1206_v43 = vmul.f32 %v1129_v21, %v1129_v21  ;;  %1156 = vst [vmem:[%s2082_s22 + $0x28] sm:$0xff] %v1148_v39 }
 0x15f   : > { %v1160_v47 = vadd.f32 %v1159_v24, %v1127_v20  ;;  %v1130_v30 = vld [vmem:[%s2082_s22 + $0x38] sm:$0xff]  ;;  %v1146_v32 = vadd.f32 %v1140_v17, %v1126_v28  ;;  %1153 = vst [vmem:[%s2082_s22 + $0x10] sm:$0xff] %v1145_v23  ;;  %v1208_v35 = vadd.f32 %v1202_v26, %v1200_v25  ;;  %v1168_v37 = vadd.f32 %v1126_v28, %v1124_v27 }
 0x160   : > { %v1203_v42 = vmul.f32 %v1126_v28, %v1126_v28  ;;  %1157 = vst [vmem:[%s2082_s22 + $0x30] sm:$0xff] %v1149_v33  ;;  %v1150_v45 = vadd.f32 %v1140_v17, %v1130_v30  ;;  %v1207_v54 = vmul.f32 %v1130_v30, %v1130_v30 }
 0x161   : > { %v1161_v38 = vadd.f32 %v1160_v47, %v1129_v21  ;;  %v1209_v44 = vadd.f32 %v1208_v35, %v1204_v34  ;;  %1154 = vst [vmem:[%s2082_s22 + $0x18] sm:$0xff] %v1146_v32  ;;  %v1169_v46 = vadd.f32 %v1168_v37, %v1128_v29 }
 0x162   : > { %v1217_v50 = vadd.f32 %v1203_v42, %v1201_v41  ;;  %1158 = vst [vmem:[%s2082_s22 + $0x38] sm:$0xff] %v1150_v45 }
 0x163   : > { %v1162_v48 = vrot.slane %v1161_v38, 4  ;;  %v1210_v51 = vadd.f32 %v1209_v44, %v1206_v43  ;;  %v1170_v52 = vadd.f32 %v1169_v46, %v1130_v30 }
 0x164   : > { %v1218_v55 = vadd.f32 %v1217_v50, %v1205_v49 }
 0x165   : > { %v1163_v53 = vadd.f32 %v1162_v48, %v1161_v38  ;;  %v1211_v56 = vrot.slane %v1210_v51, 4  ;;  %v1171_v57 = vrot.slane %v1170_v52, 4 }
 0x166   : > { %v1219_v59 = vadd.f32 %v1218_v55, %v1207_v54 }
 0x167   : > { %v1164_v58 = vrot.slane %v1163_v53, 2  ;;  %v1212_v62 = vadd.f32 %v1211_v56, %v1210_v51  ;;  %v1172_v63 = vadd.f32 %v1171_v57, %v1170_v52 }
 0x168   : > { %v1220_v1 = vrot.slane %v1219_v59, 4 }
 0x169   : > { %v1165_v0 = vadd.f32 %v1164_v58, %v1163_v53  ;;  %v1213_v3 = vrot.slane %v1212_v62, 2  ;;  %v1173_v4 = vrot.slane %v1172_v63, 2 }
 0x16a   : > { %v1221_v5 = vadd.f32 %v1220_v1, %v1219_v59 }
 0x16b   : > { %v1166_v7 = vrot.slane %v1165_v0, 1  ;;  %v1214_v8 = vadd.f32 %v1213_v3, %v1212_v62  ;;  %v1174_v9 = vadd.f32 %v1173_v4, %v1172_v63 }
 0x16c   : > { %v1222_v10 = vrot.slane %v1221_v5, 2 }
 0x16d   : > { %v1175_v11 = vrot.slane %v1174_v9, 1  ;;  %v1215_v12 = vrot.slane %v1214_v8, 1  ;;  %v1167_v15 = vadd.f32 %v1166_v7, %v1165_v0 }
 0x16e   : > { %v1223_v13 = vadd.f32 %v1222_v10, %v1221_v5 }
 0x16f   : > { %v1176_v16 = vadd.f32 %v1175_v11, %v1174_v9  ;;  %v1216_v19 = vadd.f32 %v1215_v12, %v1214_v8 }
 0x170   : > { %v1224_v17 = vrot.slane %v1223_v13, 1 }
 0x171   : > { %v1179_v18 = vcombine.low %v1167_v15, %v1176_v16 }
 0x172   : > { %v1225_v20 = vadd.f32 %v1224_v17, %v1223_v13 }
 0x173   : > { %v1186_v21 = vrot.slane %v1179_v18, %v1185_v14 }
 0x174   : > { %v1228_v22 = vcombine.low %v1216_v19, %v1225_v20 }
 0x175   : > { %v1193_v23 = vrot.slane %v1186_v21, %v1185_v14 }
 0x176   : > { %v1235_v24 = vrot.slane %v1228_v22, %v1185_v14 }
 0x177   : > { %1199 = vst.msk [vmem:[%s245_s27] ss:$2 sm:$0x3] %vm1197_vm0, %v1193_v23 }
 0x178   : > { %v1242_v25 = vrot.slane %v1235_v24, %v1185_v14 }
 0x17a   : > { %1510 = vst.msk [vmem:[%s245_s27 + $0x1] ss:$2 sm:$0x3] %vm1197_vm0, %v1242_v25 }
 0x17b PF: > { %s16_s18 = sadd.s32 1, %s1707_s18  }
 0x17c   : > { %p13_p5 = scmp.ge.s32.totalorder %s16_s18, 4  }
 0x17e   :  { %15 = sbr.rel (!%p13_p5) target bundleno = 1 (0x1), region = 81 }

// kernel: resblock_forward.3
= control target key start
LH: loop header
LB: loop body
LE: loop exit
PB: predicated region body
PF: predicated region fallthrough
CT: control target
= control target key end

     0   :  { %s2237_s15 = smov 0   ;;  %s2239_s16 = smov 0   ;;  %s3335_s0 = inlined_call_operand.vmem [shape: f32[4,2,8,256], index: 0, kind: input, shape index: {}]   ;;  %s3336_s1 = inlined_call_operand.vmem [shape: bf16[3,256,256], index: 1, kind: input, shape index: {}]   ;;  %s3337_s2 = inlined_call_operand.vmem [shape: f32[1,256], index: 2, kind: input, shape index: {}]   ;;  %s3338_s3 = inlined_call_operand.vmem [shape: bf16[4,2,8,256], index: 3, kind: output, shape index: {0}]   ;;  %s3339_s4 = inlined_call_operand.vmem [shape: f32[2,1,256], index: 4, kind: output, shape index: {1}]  }
   0x1   :  { %s2241_s17 = smov 0  }
   0x2 LB: > { %s2253_s18 = sadd.s32 4294967295, %s2208_s17   ;;  %s2256_s19 = sadd.s32 1, %s2208_s17   ;;  %s2208_s17 = sphi %s2241_s17, %s3566_s17   ;;  %s2204_s16 = sphi %s2239_s16, %s3565_s16   ;;  %s2200_s15 = sphi %s2237_s15, %s3564_s15  }
   0x3   : > { %s19_s20 = ssub.s32 %s2208_s17, %s2256_s19  ;;  %s22_s21 = sadd.s32 1, %s2204_s16 }
   0x4   : > { %p20_p0 = scmp.eq.s32.totalorder %s19_s20, 0  ;;  %p29_p1 = scmp.ne.s32.totalorder %s2204_s16, %s2200_s15 }
   0x5   : > { %p30_p2 = scmp.eq.s32.totalorder %s2208_s17, 0  ;;  %p101_p3 = scmp.eq.s32.totalorder %s2253_s18, 1 }
   0x6   : > { %s2266_s22 = scalar_select %p20_p0, %s2204_s16, %s22_s21  }
   0x7   : > { %p31_p4 = por %p30_p2, %p29_p1  ;;  %p2268_p5 = por %p101_p3, %p29_p1 }
   0x8   : > { %p1795_p6 = scmp.ge.s32.totalorder %s2208_s17, 2 }
   0xa   : > { %155 = sbr.rel (%p1795_p6) target bundleno = 23 (0x17), region = 24 }
   0xf   : > { %158 = sbr.rel (!%p31_p4) target bundleno = 23 (0x17), region = 28  ;;  %s160_s24 = sand.u32 (%p31_p4), 1, %s2204_s16  }
  0x10   : > { %s1989_s25 = sshll.u32 (%p31_p4), %s2208_s17, 4  ;;  %s1796_s26 = sshll.u32 (%p31_p4), %s160_s24, 6 }
  0x11   : > { %s165_s29 = scalar_lea.vmem (%p31_p4), %s3335_s0, %s1989_s25  ;;  %s162_s30 = scalar_lea.vmem (%p31_p4), [#allocation4], %s1796_s26 }
  0x12   : > { %v178_v0 = vld [vmem:[%s165_s29] sm:$0xff] (%p31_p4)  ;;  %v180_v1 = vld [vmem:[%s165_s29 + $0x8] sm:$0xff] (%p31_p4) }
  0x13   : > { %v182_v2 = vld [vmem:[%s165_s29 + $0x20] sm:$0xff] (%p31_p4)  ;;  %179 = vst [vmem:[%s162_s30] sm:$0xff] (%p31_p4), %v178_v0  ;;  %181 = vst [vmem:[%s162_s30 + $0x8] sm:$0xff] (%p31_p4), %v180_v1  ;;  %v184_v3 = vld [vmem:[%s165_s29 + $0x28] sm:$0xff] (%p31_p4) }
  0x14   : > { %183 = vst [vmem:[%s162_s30 + $0x10] sm:$0xff] %v182_v2  ;;  %v186_v4 = vld [vmem:[%s165_s29 + $0x40] sm:$0xff]  ;;  %v188_v5 = vld [vmem:[%s165_s29 + $0x48] sm:$0xff]  ;;  %185 = vst [vmem:[%s162_s30 + $0x18] sm:$0xff] %v184_v3 }
  0x15   : > { %187 = vst [vmem:[%s162_s30 + $0x20] sm:$0xff] %v186_v4  ;;  %189 = vst [vmem:[%s162_s30 + $0x28] sm:$0xff] %v188_v5  ;;  %v190_v6 = vld [vmem:[%s165_s29 + $0x60] sm:$0xff]  ;;  %v192_v7 = vld [vmem:[%s165_s29 + $0x68] sm:$0xff] }
  0x16   : > { %191 = vst [vmem:[%s162_s30 + $0x30] sm:$0xff] %v190_v6  ;;  %193 = vst [vmem:[%s162_s30 + $0x38] sm:$0xff] %v192_v7 }
  0x17 PF: > { %p1799_p7 = scmp.ge.s32.totalorder %s2208_s17, 1  ;;  %p198_p8 = scmp.lt.s32.totalorder %s2208_s17, 3 }
  0x19   : > { %p199_p9 = pnand %p1799_p7, %p198_p8 }
  0x1b   : > { %202 = sbr.rel (%p199_p9) target bundleno = 671 (0x29f), region = 51 }
  0x20   : > { %v2283_v8 = vld [vmem:[%s3336_s1 + $0x74] ss:$8 sps:$4 sm:$0xff]   ;;  %v2294_v10 = vld [vmem:[%s3336_s1 + $0x70] ss:$8 sps:$4 sm:$0xff]   ;;  %v2305_v12 = vld [vmem:[%s3336_s1 + $0x64] ss:$8 sps:$4 sm:$0xff]  }
  0x21   : > { %v2288_v9 = vld [vmem:[%s3336_s1 + $0x174] ss:$8 sps:$4 sm:$0xff]   ;;  %502 = vmatprep.subr.bf16.mxu0 %v2283_v8  ;;  %3449 = vst [vmem:[#allocation6_spill] sm:$0xff] %v2294_v10  ;;  %v2299_v11 = vld [vmem:[%s3336_s1 + $0x170] ss:$8 sps:$4 sm:$0xff]   ;;  %3450 = vst [vmem:[#allocation7_spill] sm:$0xff] %v2305_v12 }
  0x22   : > { %703 = vmatprep.subr.bf16.mxu1 %v2288_v9  ;;  %503 = vmatpush1.bf16.msra.mxu0 %v2294_v10  ;;  %v2312_v13 = vld [vmem:[%s3336_s1 + $0x164] ss:$8 sps:$4 sm:$0xff]   ;;  %v2317_v14 = vld [vmem:[%s3336_s1 + $0x60] ss:$8 sps:$4 sm:$0xff]   ;;  %v2329_v16 = vld [vmem:[%s3336_s1 + $0x54] ss:$8 sps:$4 sm:$0xff]  }
  0x23   : > { %704 = vmatpush1.bf16.msra.mxu1 %v2299_v11  ;;  %3451 = vst [vmem:[#allocation8_spill] sm:$0xff] %v2317_v14  ;;  %504 = vmatprep.subr.bf16.mxu0 %v2305_v12  ;;  %v2323_v15 = vld [vmem:[%s3336_s1 + $0x160] ss:$8 sps:$4 sm:$0xff]   ;;  %3452 = vst [vmem:[#allocation9_spill] sm:$0xff] %v2329_v16  ;;  %v2334_v17 = vld [vmem:[%s3336_s1 + $0x154] ss:$8 sps:$4 sm:$0xff]  }
  0x24   : > { %705 = vmatprep.subr.bf16.mxu1 %v2312_v13  ;;  %v2339_v18 = vld [vmem:[%s3336_s1 + $0x50] ss:$8 sps:$4 sm:$0xff]   ;;  %v2351_v20 = vld [vmem:[%s3336_s1 + $0x44] ss:$8 sps:$4 sm:$0xff]   ;;  %v2363_v22 = vld [vmem:[%s3336_s1 + $0x40] ss:$8 sps:$4 sm:$0xff]  }
  0x25   : > { %3453 = vst [vmem:[#allocation10_spill] sm:$0xff] %v2339_v18  ;;  %v2344_v19 = vld [vmem:[%s3336_s1 + $0x150] ss:$8 sps:$4 sm:$0xff]   ;;  %3454 = vst [vmem:[#allocation11_spill] sm:$0xff] %v2351_v20  ;;  %v2358_v21 = vld [vmem:[%s3336_s1 + $0x144] ss:$8 sps:$4 sm:$0xff]  }
  0x26   : > { %505 = vmatpush1.bf16.msra.mxu0 %v2317_v14  ;;  %3455 = vst [vmem:[#allocation12_spill] sm:$0xff] %v2363_v22  ;;  %v2370_v23 = vld [vmem:[%s3336_s1 + $0x140] ss:$8 sps:$4 sm:$0xff]   ;;  %v2375_v24 = vld [vmem:[%s3336_s1 + $0x34] ss:$8 sps:$4 sm:$0xff]   ;;  %s205_s27 = sand.u32 1, %s2200_s15  }
  0x27   : > { %706 = vmatpush1.bf16.msra.mxu1 %v2323_v15  ;;  %506 = vmatprep.subr.bf16.mxu0 %v2329_v16  ;;  %3456 = vst [vmem:[#allocation13_spill] sm:$0xff] %v2375_v24  ;;  %v2382_v25 = vld [vmem:[%s3336_s1 + $0x134] ss:$8 sps:$4 sm:$0xff]   ;;  %v2387_v26 = vld [vmem:[%s3336_s1 + $0x30] ss:$8 sps:$4 sm:$0xff]   ;;  %s1800_s8 = sshll.u32 %s205_s27, 6 }
  0x28   : > { %707 = vmatprep.subr.bf16.mxu1 %v2334_v17  ;;  %3457 = vst [vmem:[#allocation14_spill] sm:$0xff] %v2387_v26  ;;  %v2392_v27 = vld [vmem:[%s3336_s1 + $0x130] ss:$8 sps:$4 sm:$0xff]   ;;  %v2399_v28 = vld [vmem:[%s3336_s1 + $0x24] ss:$8 sps:$4 sm:$0xff]   ;;  %s2555_s25 = scalar_lea.vmem [#allocation4], %s1800_s8 }
  0x29   : > { %3458 = vst [vmem:[#allocation15_spill] sm:$0xff] %v2399_v28  ;;  %v2406_v29 = vld [vmem:[%s3336_s1 + $0x124] ss:$8 sps:$4 sm:$0xff]   ;;  %v2411_v30 = vld [vmem:[%s3336_s1 + $0x20] ss:$8 sps:$4 sm:$0xff]   ;;  %v339_v54 = vld [vmem:[%s2555_s25 + $0x8] sm:$0xff] }
  0x2a   : > { %507 = vmatpush1.bf16.msra.mxu0 %v2339_v18  ;;  %3459 = vst [vmem:[#allocation16_spill] sm:$0xff] %v2411_v30  ;;  %v2418_v31 = vld [vmem:[%s3336_s1 + $0x120] ss:$8 sps:$4 sm:$0xff]   ;;  %v2423_v32 = vld [vmem:[%s3336_s1 + $0x14] ss:$8 sps:$4 sm:$0xff]   ;;  %v341_v55 = vpack.c.bf16 %v339_v54, %v339_v54  ;;  %s1801_s12 = sshll.u32 %s205_s27, 5 }
  0x2b   : > { %708 = vmatpush1.bf16.msra.mxu1 %v2344_v19  ;;  %508 = vmatprep.subr.bf16.mxu0 %v2351_v20  ;;  %3460 = vst [vmem:[#allocation17_spill] sm:$0xff] %v2423_v32  ;;  %v2430_v33 = vld [vmem:[%s3336_s1 + $0x114] ss:$8 sps:$4 sm:$0xff]   ;;  %v2435_v34 = vld [vmem:[%s3336_s1 + $0x10] ss:$8 sps:$4 sm:$0xff]   ;;  %s3206_s20 = scalar_lea.vmem [#allocation5], %s1801_s12 }
  0x2c   : > { %709 = vmatprep.subr.bf16.mxu1 %v2358_v21  ;;  %3461 = vst [vmem:[#allocation18_spill] sm:$0xff] %v2435_v34  ;;  %v2440_v35 = vld [vmem:[%s3336_s1 + $0x110] ss:$8 sps:$4 sm:$0xff]   ;;  %v2447_v36 = vld [vmem:[%s3336_s1 + $0x4] ss:$8 sps:$4 sm:$0xff]   ;;  %534 = vmatprep.mubr.bf16.mxu0 %v341_v55  ;;  %p233_p10 = scmp.lt.s32.totalorder %s2253_s18, 1 }
  0x2d   : > { %3462 = vst [vmem:[#allocation19_spill] sm:$0xff] %v2447_v36  ;;  %v2454_v37 = vld [vmem:[%s3336_s1 + $0x104] ss:$8 sps:$4 sm:$0xff]   ;;  %v2459_v38 = vld [vmem:[%s3336_s1] ss:$8 sps:$4 sm:$0xff]   ;;  %735 = vmatprep.mubr.bf16.mxu1 %v341_v55  ;;  %s1994_s28 = sshll.u32 (%p2268_p5), %s2253_s18, 3 }
  0x2e   : > { %509 = vmatpush1.bf16.msra.mxu0 %v2363_v22  ;;  %3463 = vst [vmem:[#allocation20_spill] sm:$0xff] %v2459_v38  ;;  %v2466_v39 = vld [vmem:[%s3336_s1 + $0x100] ss:$8 sps:$4 sm:$0xff]   ;;  %v2471_v40 = vld [vmem:[%s3336_s1 + $0xf4] ss:$8 sps:$4 sm:$0xff]   ;;  %s234_s15 = scalar_select %p233_p10, %s2253_s18, 1 }
  0x2f   : > { %710 = vmatpush1.bf16.msra.mxu1 %v2370_v23  ;;  %510 = vmatprep.subr.bf16.mxu0 %v2375_v24  ;;  %3464 = vst [vmem:[#allocation21_spill] sm:$0xff] %v2471_v40  ;;  %v2478_v41 = vld [vmem:[%s3336_s1 + $0x1f4] ss:$8 sps:$4 sm:$0xff]   ;;  %v2483_v42 = vld [vmem:[%s3336_s1 + $0xf0] ss:$8 sps:$4 sm:$0xff]   ;;  %s1663_s5 = scalar_lea.vmem (%p2268_p5), %s3338_s3, %s1994_s28 }
  0x30   : > { %711 = vmatprep.subr.bf16.mxu1 %v2382_v25  ;;  %3465 = vst [vmem:[#allocation22_spill] sm:$0xff] %v2483_v42  ;;  %v2488_v43 = vld [vmem:[%s3336_s1 + $0x1f0] ss:$8 sps:$4 sm:$0xff]   ;;  %v2495_v44 = vld [vmem:[%s3336_s1 + $0xe4] ss:$8 sps:$4 sm:$0xff]   ;;  %s1802_s27 = sshll.u32 %s234_s15, 1 }
  0x31   : > { %3466 = vst [vmem:[#allocation23_spill] sm:$0xff] %v2495_v44  ;;  %v2502_v45 = vld [vmem:[%s3336_s1 + $0x1e4] ss:$8 sps:$4 sm:$0xff]   ;;  %v2508_v46 = vld [vmem:[%s3336_s1 + $0xe0] ss:$8 sps:$4 sm:$0xff]   ;;  %s236_s26 = scalar_lea.vmem %s3339_s4, %s1802_s27 }
  0x32   : > { %511 = vmatpush1.bf16.msra.mxu0 %v2387_v26  ;;  %3467 = vst [vmem:[#allocation24_spill] sm:$0xff] %v2508_v46  ;;  %v2515_v47 = vld [vmem:[%s3336_s1 + $0x1e0] ss:$8 sps:$4 sm:$0xff]   ;;  %v2520_v48 = vld [vmem:[%s3336_s1 + $0xd4] ss:$8 sps:$4 sm:$0xff]  }
  0x33   : > { %712 = vmatpush1.bf16.msra.mxu1 %v2392_v27  ;;  %512 = vmatprep.subr.bf16.mxu0 %v2399_v28  ;;  %3468 = vst [vmem:[#allocation25_spill] sm:$0xff] %v2520_v48  ;;  %v2529_v49 = vld [vmem:[%s3336_s1 + $0x1d4] ss:$8 sps:$4 sm:$0xff]   ;;  %v2534_v50 = vld [vmem:[%s3336_s1 + $0xd0] ss:$8 sps:$4 sm:$0xff]  }
  0x34   : > { %713 = vmatprep.subr.bf16.mxu1 %v2406_v29  ;;  %3469 = vst [vmem:[#allocation26_spill] sm:$0xff] %v2534_v50  ;;  %v2539_v51 = vld [vmem:[%s3336_s1 + $0x1d0] ss:$8 sps:$4 sm:$0xff]   ;;  %v2546_v52 = vld [vmem:[%s3336_s1 + $0xc4] ss:$8 sps:$4 sm:$0xff]  }
  0x35   : > { %3470 = vst [vmem:[#allocation27_spill] sm:$0xff] %v2539_v51  ;;  %3471 = vst [vmem:[#allocation28_spill] sm:$0xff] %v2546_v52  ;;  %v2553_v53 = vld [vmem:[%s3336_s1 + $0x1c4] ss:$8 sps:$4 sm:$0xff]   ;;  %v2563_v56 = vld [vmem:[%s3336_s1 + $0xc0] ss:$8 sps:$4 sm:$0xff]  }
  0x36   : > { %513 = vmatpush1.bf16.msra.mxu0 %v2411_v30  ;;  %3472 = vst [vmem:[#allocation29_spill] sm:$0xff] %v2553_v53  ;;  %3473 = vst [vmem:[#allocation30_spill] sm:$0xff] %v2563_v56  ;;  %v2568_v57 = vld [vmem:[%s3336_s1 + $0x1c0] ss:$8 sps:$4 sm:$0xff]   ;;  %v2575_v58 = vld [vmem:[%s3336_s1 + $0xb4] ss:$8 sps:$4 sm:$0xff]  }
  0x37   : > { %714 = vmatpush1.bf16.msra.mxu1 %v2418_v31  ;;  %514 = vmatprep.subr.bf16.mxu0 %v2423_v32  ;;  %3474 = vst [vmem:[#allocation31_spill] sm:$0xff] %v2568_v57  ;;  %3475 = vst [vmem:[#allocation32_spill] sm:$0xff] %v2575_v58  ;;  %v2580_v59 = vld [vmem:[%s3336_s1 + $0x1b4] ss:$8 sps:$4 sm:$0xff]   ;;  %v2587_v60 = vld [vmem:[%s3336_s1 + $0xb0] ss:$8 sps:$4 sm:$0xff]  }
  0x38   : > { %715 = vmatprep.subr.bf16.mxu1 %v2430_v33  ;;  %3476 = vst [vmem:[#allocation33_spill] sm:$0xff] %v2580_v59  ;;  %3477 = vst [vmem:[#allocation34_spill] sm:$0xff] %v2587_v60  ;;  %v2592_v61 = vld [vmem:[%s3336_s1 + $0x1b0] ss:$8 sps:$4 sm:$0xff]   ;;  %v2599_v62 = vld [vmem:[%s3336_s1 + $0xa4] ss:$8 sps:$4 sm:$0xff]  }
  0x39   : > { %3478 = vst [vmem:[#allocation35_spill] sm:$0xff] %v2592_v61  ;;  %3479 = vst [vmem:[#allocation36_spill] sm:$0xff] %v2599_v62  ;;  %v2604_v63 = vld [vmem:[%s3336_s1 + $0x1a4] ss:$8 sps:$4 sm:$0xff]   ;;  %v2611_v0 = vld [vmem:[%s3336_s1 + $0xa0] ss:$8 sps:$4 sm:$0xff]  }
  0x3a   : > { %515 = vmatpush1.bf16.msra.mxu0 %v2435_v34  ;;  %3480 = vst [vmem:[#allocation37_spill] sm:$0xff] %v2604_v63  ;;  %3481 = vst [vmem:[#allocation38_spill] sm:$0xff] %v2611_v0  ;;  %v2616_v1 = vld [vmem:[%s3336_s1 + $0x1a0] ss:$8 sps:$4 sm:$0xff]   ;;  %v2623_v2 = vld [vmem:[%s3336_s1 + $0x94] ss:$8 sps:$4 sm:$0xff]  }
  0x3b   : > { %716 = vmatpush1.bf16.msra.mxu1 %v2440_v35  ;;  %516 = vmatprep.subr.bf16.mxu0 %v2447_v36  ;;  %3482 = vst [vmem:[#allocation39_spill] sm:$0xff] %v2616_v1  ;;  %3483 = vst [vmem:[#allocation40_spill] sm:$0xff] %v2623_v2  ;;  %v2628_v3 = vld [vmem:[%s3336_s1 + $0x194] ss:$8 sps:$4 sm:$0xff]   ;;  %v2635_v4 = vld [vmem:[%s3336_s1 + $0x90] ss:$8 sps:$4 sm:$0xff]  }
  0x3c   : > { %717 = vmatprep.subr.bf16.mxu1 %v2454_v37  ;;  %3484 = vst [vmem:[#allocation41_spill] sm:$0xff] %v2628_v3  ;;  %3485 = vst [vmem:[#allocation42_spill] sm:$0xff] %v2635_v4  ;;  %v2640_v5 = vld [vmem:[%s3336_s1 + $0x190] ss:$8 sps:$4 sm:$0xff]   ;;  %v2647_v6 = vld [vmem:[%s3336_s1 + $0x84] ss:$8 sps:$4 sm:$0xff]  }
  0x3d   : > { %3486 = vst [vmem:[#allocation43_spill] sm:$0xff] %v2640_v5  ;;  %3487 = vst [vmem:[#allocation44_spill] sm:$0xff] %v2647_v6  ;;  %v2652_v7 = vld [vmem:[%s3336_s1 + $0x184] ss:$8 sps:$4 sm:$0xff]   ;;  %v2657_v54 = vld [vmem:[%s3336_s1 + $0x80] ss:$8 sps:$4 sm:$0xff]  }
  0x3e   : > { %517 = vmatpush1.bf16.msra.mxu0 %v2459_v38  ;;  %3488 = vst [vmem:[#allocation45_spill] sm:$0xff] %v2652_v7 }
  0x3f   : > { %718 = vmatpush1.bf16.msra.mxu1 %v2466_v39  ;;  %518 = vmatprep.subr.bf16.mxu0 %v2471_v40 }
  0x40   : > { %719 = vmatprep.subr.bf16.mxu1 %v2478_v41 }
  0x42   : > { %519 = vmatpush2.bf16.msra.mxu0 %v2483_v42 }
  0x43   : > { %720 = vmatpush2.bf16.msra.mxu1 %v2488_v43  ;;  %520 = vmatprep.subr.bf16.mxu0 %v2495_v44 }
  0x44   : > { %721 = vmatprep.subr.bf16.mxu1 %v2502_v45 }
  0x46   : > { %521 = vmatpush2.bf16.msra.mxu0 %v2508_v46 }
  0x47   : > { %722 = vmatpush2.bf16.msra.mxu1 %v2515_v47  ;;  %522 = vmatprep.subr.bf16.mxu0 %v2520_v48 }
  0x48   : > { %723 = vmatprep.subr.bf16.mxu1 %v2529_v49 }
  0x4a   : > { %523 = vmatpush2.bf16.msra.mxu0 %v2534_v50 }
  0x4b   : > { %724 = vmatpush2.bf16.msra.mxu1 %v2539_v51  ;;  %524 = vmatprep.subr.bf16.mxu0 %v2546_v52 }
  0x4c   : > { %725 = vmatprep.subr.bf16.mxu1 %v2553_v53 }
  0x4e   : > { %525 = vmatpush2.bf16.msra.mxu0 %v2563_v56 }
  0x4f   : > { %726 = vmatpush2.bf16.msra.mxu1 %v2568_v57  ;;  %526 = vmatprep.subr.bf16.mxu0 %v2575_v58 }
  0x50   : > { %727 = vmatprep.subr.bf16.mxu1 %v2580_v59  ;;  %v1967_v59 = vld [vmem:[%s2555_s25 + $0x18] sm:$0xff] }
  0x52   : > { %527 = vmatpush2.bf16.msra.mxu0 %v2587_v60 }
  0x53   : > { %728 = vmatpush2.bf16.msra.mxu1 %v2592_v61  ;;  %528 = vmatprep.subr.bf16.mxu0 %v2599_v62 }
  0x54   : > { %729 = vmatprep.subr.bf16.mxu1 %v2604_v63  ;;  %v2672_v63 = vld [vmem:[%s3336_s1 + $0x274] ss:$8 sps:$4 sm:$0xff]  }
  0x56   : > { %529 = vmatpush2.bf16.msra.mxu0 %v2611_v0 }
  0x57   : > { %730 = vmatpush2.bf16.msra.mxu1 %v2616_v1  ;;  %530 = vmatprep.subr.bf16.mxu0 %v2623_v2  ;;  %v338_v1 = vld [vmem:[%s2555_s25] sm:$0xff] }
  0x58   : > { %731 = vmatprep.subr.bf16.mxu1 %v2628_v3  ;;  %v2664_v3 = vld [vmem:[%s3336_s1 + $0x180] ss:$8 sps:$4 sm:$0xff]   ;;  %v2674_v61 = vpack.c.bf16 %v338_v1, %v338_v1  ;;  %v2691_v1 = vpack.c.bf16 %v1967_v59, %v1967_v59  ;;  %v2707_v59 = vld [vmem:[%s3336_s1 + $0x254] ss:$8 sps:$4 sm:$0xff]  }
  0x59   : > { %3489 = vst [vmem:[#allocation46_spill] sm:$0xff] %v2664_v3 }
  0x5a   : > { %531 = vmatpush2.bf16.msra.mxu0 %v2635_v4 }
  0x5b   : > { %732 = vmatpush2.bf16.msra.mxu1 %v2640_v5  ;;  %532 = vmatprep.subr.bf16.mxu0 %v2647_v6  ;;  %v2681_v5 = vld [vmem:[%s3336_s1 + $0x270] ss:$8 sps:$4 sm:$0xff]  }
  0x5c   : > { %733 = vmatprep.subr.bf16.mxu1 %v2652_v7  ;;  %v2689_v7 = vld [vmem:[%s3336_s1 + $0x264] ss:$8 sps:$4 sm:$0xff]  }
  0x5e   : > { %533 = vmatpush2.bf16.msra.mxu0 %v2657_v54 }
  0x5f   : > { %734 = vmatpush2.bf16.msra.mxu1 %v2664_v3  ;;  %904 = vmatprep.subr.bf16.mxu0 %v2672_v63  ;;  %v2700_v3 = vld [vmem:[%s3336_s1 + $0x260] ss:$8 sps:$4 sm:$0xff]  }
  0x60   : > { %1032 = vmatprep.subr.bf16.mxu1 %v2283_v8 }
  0x61   : > { %535 = vmatmul.mubr.bf16.vlgmr.msra.gmra.mxu0 %v2674_v61 }
  0x62   : > { %736 = vmatmul.mubr.bf16.vlgmr.msra.gmra.mxu1 %v2674_v61  ;;  %905 = vmatpush1.bf16.msra.mxu0 %v2681_v5 }
  0x63   : > { %1033 = vmatpush1.bf16.msra.mxu1 %v2294_v10  ;;  %906 = vmatprep.subr.bf16.mxu0 %v2689_v7  ;;  %v2715_v10 = vld [vmem:[%s3336_s1 + $0x250] ss:$8 sps:$4 sm:$0xff]  }
  0x64   : > { %1034 = vmatprep.subr.bf16.mxu1 %v2305_v12  ;;  %936 = vmatprep.mubr.bf16.mxu0 %v341_v55  ;;  %v2722_v12 = vld [vmem:[%s3336_s1 + $0x244] ss:$8 sps:$4 sm:$0xff]   ;;  %v2729_v55 = vld [vmem:[%s3336_s1 + $0x240] ss:$8 sps:$4 sm:$0xff]  }
  0x65   : > { %1064 = vmatprep.mubr.bf16.mxu1 %v2691_v1 }
  0x66   : > { %907 = vmatpush1.bf16.msra.mxu0 %v2700_v3 }
  0x67   : > { %1035 = vmatpush1.bf16.msra.mxu1 %v2317_v14  ;;  %908 = vmatprep.subr.bf16.mxu0 %v2707_v59  ;;  %v1966_v14 = vld [vmem:[%s2555_s25 + $0x10] sm:$0xff] }
  0x68   : > { %1036 = vmatprep.subr.bf16.mxu1 %v2329_v16  ;;  %v2736_v16 = vld [vmem:[%s3336_s1 + $0x234] ss:$8 sps:$4 sm:$0xff]  }
  0x6a   : > { %909 = vmatpush1.bf16.msra.mxu0 %v2715_v10 }
  0x6b   : > { %1037 = vmatpush1.bf16.msra.mxu1 %v2339_v18  ;;  %910 = vmatprep.subr.bf16.mxu0 %v2722_v12  ;;  %v2743_v18 = vld [vmem:[%s3336_s1 + $0x230] ss:$8 sps:$4 sm:$0xff]  }
  0x6c   : > { %1038 = vmatprep.subr.bf16.mxu1 %v2351_v20  ;;  %v2750_v20 = vld [vmem:[%s3336_s1 + $0x224] ss:$8 sps:$4 sm:$0xff]  }
  0x6e   : > { %911 = vmatpush1.bf16.msra.mxu0 %v2729_v55 }
  0x6f   : > { %1039 = vmatpush1.bf16.msra.mxu1 %v2363_v22  ;;  %912 = vmatprep.subr.bf16.mxu0 %v2736_v16  ;;  %v2757_v22 = vld [vmem:[%s3336_s1 + $0x220] ss:$8 sps:$4 sm:$0xff]  }
  0x70   : > { %1040 = vmatprep.subr.bf16.mxu1 %v2375_v24  ;;  %v2764_v24 = vld [vmem:[%s3336_s1 + $0x214] ss:$8 sps:$4 sm:$0xff]  }
  0x72   : > { %913 = vmatpush1.bf16.msra.mxu0 %v2743_v18 }
  0x73   : > { %1041 = vmatpush1.bf16.msra.mxu1 %v2387_v26  ;;  %914 = vmatprep.subr.bf16.mxu0 %v2750_v20  ;;  %v2771_v26 = vld [vmem:[%s3336_s1 + $0x210] ss:$8 sps:$4 sm:$0xff]  }
  0x74   : > { %1042 = vmatprep.subr.bf16.mxu1 %v2399_v28  ;;  %v2778_v28 = vld [vmem:[%s3336_s1 + $0x204] ss:$8 sps:$4 sm:$0xff]  }
  0x76   : > { %915 = vmatpush1.bf16.msra.mxu0 %v2757_v22 }
  0x77   : > { %1043 = vmatpush1.bf16.msra.mxu1 %v2411_v30  ;;  %916 = vmatprep.subr.bf16.mxu0 %v2764_v24  ;;  %v2785_v30 = vld [vmem:[%s3336_s1 + $0x200] ss:$8 sps:$4 sm:$0xff]  }
  0x78   : > { %1044 = vmatprep.subr.bf16.mxu1 %v2423_v32  ;;  %v2792_v32 = vld [vmem:[%s3336_s1 + $0x2f4] ss:$8 sps:$4 sm:$0xff]  }
  0x7a   : > { %917 = vmatpush1.bf16.msra.mxu0 %v2771_v26 }
  0x7b   : > { %1045 = vmatpush1.bf16.msra.mxu1 %v2435_v34  ;;  %918 = vmatprep.subr.bf16.mxu0 %v2778_v28  ;;  %v2799_v34 = vld [vmem:[%s3336_s1 + $0x2f0] ss:$8 sps:$4 sm:$0xff]  }
  0x7c   : > { %1046 = vmatprep.subr.bf16.mxu1 %v2447_v36  ;;  %v2806_v36 = vld [vmem:[%s3336_s1 + $0x2e4] ss:$8 sps:$4 sm:$0xff]  }
  0x7e   : > { %919 = vmatpush1.bf16.msra.mxu0 %v2785_v30 }
  0x7f   : > { %1047 = vmatpush1.bf16.msra.mxu1 %v2459_v38  ;;  %920 = vmatprep.subr.bf16.mxu0 %v2792_v32  ;;  %v2813_v38 = vld [vmem:[%s3336_s1 + $0x2e0] ss:$8 sps:$4 sm:$0xff]  }
  0x80   : > { %1048 = vmatprep.subr.bf16.mxu1 %v2471_v40  ;;  %v2820_v40 = vld [vmem:[%s3336_s1 + $0x2d4] ss:$8 sps:$4 sm:$0xff]  }
  0x81   : > { %3490 = vst [vmem:[#allocation47_spill] sm:$0xff] %v2820_v40 }
  0x82   : > { %921 = vmatpush2.bf16.msra.mxu0 %v2799_v34 }
  0x83   : > { %1049 = vmatpush2.bf16.msra.mxu1 %v2483_v42  ;;  %922 = vmatprep.subr.bf16.mxu0 %v2806_v36  ;;  %v2827_v42 = vld [vmem:[%s3336_s1 + $0x2d0] ss:$8 sps:$4 sm:$0xff]  }
  0x84   : > { %1050 = vmatprep.subr.bf16.mxu1 %v2495_v44  ;;  %3491 = vst [vmem:[#allocation48_spill] sm:$0xff] %v2827_v42  ;;  %v2834_v44 = vld [vmem:[%s3336_s1 + $0x2c4] ss:$8 sps:$4 sm:$0xff]  }
  0x85   : > { %3492 = vst [vmem:[#allocation49_spill] sm:$0xff] %v2834_v44 }
  0x86   : > { %923 = vmatpush2.bf16.msra.mxu0 %v2813_v38 }
  0x87   : > { %1051 = vmatpush2.bf16.msra.mxu1 %v2508_v46  ;;  %924 = vmatprep.subr.bf16.mxu0 %v2820_v40  ;;  %v2841_v46 = vld [vmem:[%s3336_s1 + $0x2c0] ss:$8 sps:$4 sm:$0xff]  }
  0x88   : > { %1052 = vmatprep.subr.bf16.mxu1 %v2520_v48  ;;  %3493 = vst [vmem:[#allocation50_spill] sm:$0xff] %v2841_v46  ;;  %v2848_v48 = vld [vmem:[%s3336_s1 + $0x2b4] ss:$8 sps:$4 sm:$0xff]  }
  0x89   : > { %3494 = vst [vmem:[#allocation51_spill] sm:$0xff] %v2848_v48 }
  0x8a   : > { %925 = vmatpush2.bf16.msra.mxu0 %v2827_v42 }
  0x8b   : > { %1053 = vmatpush2.bf16.msra.mxu1 %v2534_v50  ;;  %926 = vmatprep.subr.bf16.mxu0 %v2834_v44  ;;  %v2855_v50 = vld [vmem:[%s3336_s1 + $0x2b0] ss:$8 sps:$4 sm:$0xff]  }
  0x8c   : > { %1054 = vmatprep.subr.bf16.mxu1 %v2546_v52  ;;  %3495 = vst [vmem:[#allocation52_spill] sm:$0xff] %v2855_v50  ;;  %v2862_v52 = vld [vmem:[%s3336_s1 + $0x2a4] ss:$8 sps:$4 sm:$0xff]  }
  0x8e   : > { %927 = vmatpush2.bf16.msra.mxu0 %v2841_v46 }
  0x8f   : > { %1055 = vmatpush2.bf16.msra.mxu1 %v2563_v56  ;;  %928 = vmatprep.subr.bf16.mxu0 %v2848_v48  ;;  %v2869_v56 = vld [vmem:[%s3336_s1 + $0x2a0] ss:$8 sps:$4 sm:$0xff]  }
  0x90   : > { %1056 = vmatprep.subr.bf16.mxu1 %v2575_v58  ;;  %3496 = vst [vmem:[#allocation53_spill] sm:$0xff] %v2869_v56  ;;  %v2876_v58 = vld [vmem:[%s3336_s1 + $0x294] ss:$8 sps:$4 sm:$0xff]  }
  0x91   : > { %3497 = vst [vmem:[#allocation54_spill] sm:$0xff] %v2876_v58 }
  0x92   : > { %929 = vmatpush2.bf16.msra.mxu0 %v2855_v50 }
  0x93   : > { %1057 = vmatpush2.bf16.msra.mxu1 %v2587_v60  ;;  %930 = vmatprep.subr.bf16.mxu0 %v2862_v52  ;;  %v2883_v60 = vld [vmem:[%s3336_s1 + $0x290] ss:$8 sps:$4 sm:$0xff]  }
  0x94   : > { %1058 = vmatprep.subr.bf16.mxu1 %v2599_v62  ;;  %3498 = vst [vmem:[#allocation55_spill] sm:$0xff] %v2883_v60  ;;  %v2890_v62 = vld [vmem:[%s3336_s1 + $0x284] ss:$8 sps:$4 sm:$0xff]  }
  0x95   : > { %3499 = vst [vmem:[#allocation56_spill] sm:$0xff] %v2890_v62 }
  0x96   : > { %931 = vmatpush2.bf16.msra.mxu0 %v2869_v56 }
  0x97   : > { %1059 = vmatpush2.bf16.msra.mxu1 %v2611_v0  ;;  %932 = vmatprep.subr.bf16.mxu0 %v2876_v58  ;;  %v2897_v0 = vld [vmem:[%s3336_s1 + $0x280] ss:$8 sps:$4 sm:$0xff]  }
  0x98   : > { %1060 = vmatprep.subr.bf16.mxu1 %v2623_v2  ;;  %3500 = vst [vmem:[#allocation57_spill] sm:$0xff] %v2897_v0  ;;  %v2902_v2 = vpack.c.bf16 %v1966_v14, %v1966_v14  ;;  %v3501_v14 = vld [vmem:[#allocation33_spill] sm:$0xff] }
  0x9a   : > { %933 = vmatpush2.bf16.msra.mxu0 %v2883_v60 }
  0x9b   : > { %1061 = vmatpush2.bf16.msra.mxu1 %v2635_v4  ;;  %934 = vmatprep.subr.bf16.mxu0 %v2890_v62 }
  0x9c   : > { %1062 = vmatprep.subr.bf16.mxu1 %v2647_v6 }
  0x9e   : > { %935 = vmatpush2.bf16.msra.mxu0 %v2897_v0 }
  0x9f   : > { %1063 = vmatpush2.bf16.msra.mxu1 %v2657_v54  ;;  %1073 = vmatprep.subr.bf16.mxu0 %v2288_v9 }
  0xa0   : > { %1114 = vmatprep.subr.bf16.mxu1 %v2672_v63 }
  0xa1   : > { %937 = vmatmul.mubr.bf16.vlgmr.msra.gmra.mxu0 %v2674_v61  ;;  %v3502_v61 = vld [vmem:[#allocation35_spill] sm:$0xff] }
  0xa2   : > { %1065 = vmatmul.mubr.bf16.vlgmr.msra.gmra.mxu1 %v2902_v2  ;;  %1074 = vmatpush1.bf16.msra.mxu0 %v2299_v11 }
  0xa3   : > { %1115 = vmatpush1.bf16.msra.mxu1 %v2681_v5  ;;  %1075 = vmatprep.subr.bf16.mxu0 %v2312_v13 }
  0xa4   : > { %1116 = vmatprep.subr.bf16.mxu1 %v2689_v7  ;;  %1105 = vmatprep.mubr.bf16.mxu0 %v2691_v1 }
  0xa5   : > { %1146 = vmatprep.mubr.bf16.mxu1 %v2691_v1  ;;  %v3503_v1 = vld [vmem:[#allocation37_spill] sm:$0xff] }
  0xa6   : > { %1076 = vmatpush1.bf16.msra.mxu0 %v2323_v15 }
  0xa7   : > { %1117 = vmatpush1.bf16.msra.mxu1 %v2700_v3  ;;  %1077 = vmatprep.subr.bf16.mxu0 %v2334_v17 }
  0xa8   : > { %1118 = vmatprep.subr.bf16.mxu1 %v2707_v59 }
  0xaa   : > { %1078 = vmatpush1.bf16.msra.mxu0 %v2344_v19 }
  0xab   : > { %1119 = vmatpush1.bf16.msra.mxu1 %v2715_v10  ;;  %1079 = vmatprep.subr.bf16.mxu0 %v2358_v21 }
  0xac   : > { %1120 = vmatprep.subr.bf16.mxu1 %v2722_v12 }
  0xae   : > { %1080 = vmatpush1.bf16.msra.mxu0 %v2370_v23 }
  0xaf   : > { %1121 = vmatpush1.bf16.msra.mxu1 %v2729_v55  ;;  %1081 = vmatprep.subr.bf16.mxu0 %v2382_v25 }
  0xb0   : > { %1122 = vmatprep.subr.bf16.mxu1 %v2736_v16 }
  0xb2   : > { %1082 = vmatpush1.bf16.msra.mxu0 %v2392_v27 }
  0xb3   : > { %1123 = vmatpush1.bf16.msra.mxu1 %v2743_v18  ;;  %1083 = vmatprep.subr.bf16.mxu0 %v2406_v29 }
  0xb4   : > { %1124 = vmatprep.subr.bf16.mxu1 %v2750_v20 }
  0xb6   : > { %1084 = vmatpush1.bf16.msra.mxu0 %v2418_v31 }
  0xb7   : > { %1125 = vmatpush1.bf16.msra.mxu1 %v2757_v22  ;;  %1085 = vmatprep.subr.bf16.mxu0 %v2430_v33 }
  0xb8   : > { %1126 = vmatprep.subr.bf16.mxu1 %v2764_v24 }
  0xba   : > { %1086 = vmatpush1.bf16.msra.mxu0 %v2440_v35 }
  0xbb   : > { %1127 = vmatpush1.bf16.msra.mxu1 %v2771_v26  ;;  %1087 = vmatprep.subr.bf16.mxu0 %v2454_v37 }
  0xbc   : > { %1128 = vmatprep.subr.bf16.mxu1 %v2778_v28 }
  0xbe   : > { %1088 = vmatpush1.bf16.msra.mxu0 %v2466_v39 }
  0xbf   : > { %1129 = vmatpush1.bf16.msra.mxu1 %v2785_v30  ;;  %1089 = vmatprep.subr.bf16.mxu0 %v2478_v41 }
  0xc0   : > { %1130 = vmatprep.subr.bf16.mxu1 %v2792_v32 }
  0xc2   : > { %1090 = vmatpush2.bf16.msra.mxu0 %v2488_v43 }
  0xc3   : > { %1131 = vmatpush2.bf16.msra.mxu1 %v2799_v34  ;;  %1091 = vmatprep.subr.bf16.mxu0 %v2502_v45 }
  0xc4   : > { %1132 = vmatprep.subr.bf16.mxu1 %v2806_v36 }
  0xc6   : > { %1092 = vmatpush2.bf16.msra.mxu0 %v2515_v47 }
  0xc7   : > { %1133 = vmatpush2.bf16.msra.mxu1 %v2813_v38  ;;  %1093 = vmatprep.subr.bf16.mxu0 %v2529_v49 }
  0xc8   : > { %1134 = vmatprep.subr.bf16.mxu1 %v2820_v40  ;;  %v3508_v40 = vld [vmem:[#allocation46_spill] sm:$0xff] }
  0xca   : > { %1094 = vmatpush2.bf16.msra.mxu0 %v2539_v51 }
  0xcb   : > { %1135 = vmatpush2.bf16.msra.mxu1 %v2827_v42  ;;  %1095 = vmatprep.subr.bf16.mxu0 %v2553_v53  ;;  %v3504_v42 = vld [vmem:[#allocation39_spill] sm:$0xff] }
  0xcc   : > { %1136 = vmatprep.subr.bf16.mxu1 %v2834_v44  ;;  %v3505_v44 = vld [vmem:[#allocation41_spill] sm:$0xff] }
  0xce   : > { %1096 = vmatpush2.bf16.msra.mxu0 %v2568_v57 }
  0xcf   : > { %1137 = vmatpush2.bf16.msra.mxu1 %v2841_v46  ;;  %1097 = vmatprep.subr.bf16.mxu0 %v3501_v14  ;;  %v3506_v46 = vld [vmem:[#allocation43_spill] sm:$0xff] }
  0xd0   : > { %1138 = vmatprep.subr.bf16.mxu1 %v2848_v48  ;;  %v3507_v48 = vld [vmem:[#allocation45_spill] sm:$0xff] }
  0xd2   : > { %1098 = vmatpush2.bf16.msra.mxu0 %v3502_v61 }
  0xd3   : > { %1139 = vmatpush2.bf16.msra.mxu1 %v2855_v50  ;;  %1099 = vmatprep.subr.bf16.mxu0 %v3503_v1  ;;  %v1973_v50 = vld [vmem:[%s2555_s25 + $0x28] sm:$0xff] }
  0xd4   : > { %1140 = vmatprep.subr.bf16.mxu1 %v2862_v52 }
  0xd6   : > { %1100 = vmatpush2.bf16.msra.mxu0 %v3504_v42 }
  0xd7   : > { %1141 = vmatpush2.bf16.msra.mxu1 %v2869_v56  ;;  %1101 = vmatprep.subr.bf16.mxu0 %v3505_v44  ;;  %v2977_v56 = vpack.c.bf16 %v1973_v50, %v1973_v50  ;;  %v3513_v50 = vld [vmem:[#allocation10_spill] sm:$0xff] }
  0xd8   : > { %1142 = vmatprep.subr.bf16.mxu1 %v2876_v58  ;;  %v3534_v58 = vld [vmem:[#allocation36_spill] sm:$0xff] }
  0xda   : > { %1102 = vmatpush2.bf16.msra.mxu0 %v3506_v46 }
  0xdb   : > { %1143 = vmatpush2.bf16.msra.mxu1 %v2883_v60  ;;  %1103 = vmatprep.subr.bf16.mxu0 %v3507_v48  ;;  %v3509_v60 = vld [vmem:[#allocation6_spill] sm:$0xff] }
  0xdc   : > { %1144 = vmatprep.subr.bf16.mxu1 %v2890_v62  ;;  %v3510_v62 = vld [vmem:[#allocation7_spill] sm:$0xff] }
  0xde   : > { %1104 = vmatpush2.bf16.msra.mxu0 %v3508_v40 }
  0xdf   : > { %1145 = vmatpush2.bf16.msra.mxu1 %v2897_v0  ;;  %1232 = vmatprep.subr.bf16.mxu0 %v2283_v8  ;;  %v3511_v0 = vld [vmem:[#allocation8_spill] sm:$0xff] }
  0xe0   : > { %1273 = vmatprep.subr.bf16.mxu1 %v2288_v9  ;;  %v3512_v9 = vld [vmem:[#allocation9_spill] sm:$0xff] }
  0xe1   : > { %1106 = vmatmul.mubr.bf16.vlgmr.msra.gmra.mxu0 %v2902_v2 }
  0xe2   : > { %1147 = vmatmul.mubr.bf16.vlgmr.msra.gmra.mxu1 %v2902_v2  ;;  %1233 = vmatpush1.bf16.msra.mxu0 %v3509_v60  ;;  %v3516_v2 = vld [vmem:[#allocation13_spill] sm:$0xff] }
  0xe3   : > { %1274 = vmatpush1.bf16.msra.mxu1 %v2299_v11  ;;  %1234 = vmatprep.subr.bf16.mxu0 %v3510_v62  ;;  %v3514_v11 = vld [vmem:[#allocation11_spill] sm:$0xff] }
  0xe4   : > { %1275 = vmatprep.subr.bf16.mxu1 %v2312_v13  ;;  %1264 = vmatprep.mubr.bf16.mxu0 %v2977_v56  ;;  %v3515_v13 = vld [vmem:[#allocation12_spill] sm:$0xff] }
  0xe5   : > { %1305 = vmatprep.mubr.bf16.mxu1 %v2977_v56 }
  0xe6   : > { %1235 = vmatpush1.bf16.msra.mxu0 %v3511_v0 }
  0xe7   : > { %1276 = vmatpush1.bf16.msra.mxu1 %v2323_v15  ;;  %1236 = vmatprep.subr.bf16.mxu0 %v3512_v9  ;;  %v3517_v15 = vld [vmem:[#allocation14_spill] sm:$0xff] }
  0xe8   : > { %1277 = vmatprep.subr.bf16.mxu1 %v2334_v17  ;;  %v3518_v17 = vld [vmem:[#allocation15_spill] sm:$0xff] }
  0xea   : > { %1237 = vmatpush1.bf16.msra.mxu0 %v3513_v50 }
  0xeb   : > { %1278 = vmatpush1.bf16.msra.mxu1 %v2344_v19  ;;  %1238 = vmatprep.subr.bf16.mxu0 %v3514_v11  ;;  %v3519_v19 = vld [vmem:[#allocation16_spill] sm:$0xff] }
  0xec   : > { %1279 = vmatprep.subr.bf16.mxu1 %v2358_v21  ;;  %v3520_v21 = vld [vmem:[#allocation17_spill] sm:$0xff] }
  0xee   : > { %1239 = vmatpush1.bf16.msra.mxu0 %v3515_v13 }
  0xef   : > { %1280 = vmatpush1.bf16.msra.mxu1 %v2370_v23  ;;  %1240 = vmatprep.subr.bf16.mxu0 %v3516_v2  ;;  %v3521_v23 = vld [vmem:[#allocation18_spill] sm:$0xff] }
  0xf0   : > { %1281 = vmatprep.subr.bf16.mxu1 %v2382_v25  ;;  %v3522_v25 = vld [vmem:[#allocation19_spill] sm:$0xff] }
  0xf2   : > { %1241 = vmatpush1.bf16.msra.mxu0 %v3517_v15 }
  0xf3   : > { %1282 = vmatpush1.bf16.msra.mxu1 %v2392_v27  ;;  %1242 = vmatprep.subr.bf16.mxu0 %v3518_v17  ;;  %v3523_v27 = vld [vmem:[#allocation20_spill] sm:$0xff] }
  0xf4   : > { %1283 = vmatprep.subr.bf16.mxu1 %v2406_v29  ;;  %v3524_v29 = vld [vmem:[#allocation21_spill] sm:$0xff] }
  0xf6   : > { %1243 = vmatpush1.bf16.msra.mxu0 %v3519_v19 }
  0xf7   : > { %1284 = vmatpush1.bf16.msra.mxu1 %v2418_v31  ;;  %1244 = vmatprep.subr.bf16.mxu0 %v3520_v21  ;;  %v3525_v31 = vld [vmem:[#allocation22_spill] sm:$0xff] }
  0xf8   : > { %1285 = vmatprep.subr.bf16.mxu1 %v2430_v33  ;;  %v3526_v33 = vld [vmem:[#allocation23_spill] sm:$0xff] }
  0xfa   : > { %1245 = vmatpush1.bf16.msra.mxu0 %v3521_v23 }
  0xfb   : > { %1286 = vmatpush1.bf16.msra.mxu1 %v2440_v35  ;;  %1246 = vmatprep.subr.bf16.mxu0 %v3522_v25  ;;  %v3527_v35 = vld [vmem:[#allocation24_spill] sm:$0xff] }
  0xfc   : > { %1287 = vmatprep.subr.bf16.mxu1 %v2454_v37  ;;  %v3528_v37 = vld [vmem:[#allocation25_spill] sm:$0xff] }
  0xfe   : > { %1247 = vmatpush1.bf16.msra.mxu0 %v3523_v27 }
  0xff   : > { %1288 = vmatpush1.bf16.msra.mxu1 %v2466_v39  ;;  %1248 = vmatprep.subr.bf16.mxu0 %v3524_v29  ;;  %v3529_v39 = vld [vmem:[#allocation26_spill] sm:$0xff] }
 0x100   : > { %1289 = vmatprep.subr.bf16.mxu1 %v2478_v41  ;;  %v3530_v41 = vld [vmem:[#allocation28_spill] sm:$0xff] }
 0x102   : > { %1249 = vmatpush2.bf16.msra.mxu0 %v3525_v31 }
 0x103   : > { %1290 = vmatpush2.bf16.msra.mxu1 %v2488_v43  ;;  %1250 = vmatprep.subr.bf16.mxu0 %v3526_v33  ;;  %v3531_v43 = vld [vmem:[#allocation30_spill] sm:$0xff] }
 0x104   : > { %1291 = vmatprep.subr.bf16.mxu1 %v2502_v45  ;;  %v3532_v45 = vld [vmem:[#allocation32_spill] sm:$0xff] }
 0x106   : > { %1251 = vmatpush2.bf16.msra.mxu0 %v3527_v35 }
 0x107   : > { %1292 = vmatpush2.bf16.msra.mxu1 %v2515_v47  ;;  %1252 = vmatprep.subr.bf16.mxu0 %v3528_v37  ;;  %v3533_v47 = vld [vmem:[#allocation34_spill] sm:$0xff] }
 0x108   : > { %1293 = vmatprep.subr.bf16.mxu1 %v2529_v49  ;;  %v3439_v49 = vlaneseq }
 0x10a   : > { %1253 = vmatpush2.bf16.msra.mxu0 %v3529_v39 }
 0x10b   : > { %1294 = vmatpush2.bf16.msra.mxu1 %v2539_v51  ;;  %1254 = vmatprep.subr.bf16.mxu0 %v3530_v41  ;;  %v3537_v51 = vld [vmem:[#allocation40_spill] sm:$0xff] }
 0x10c   : > { %1295 = vmatprep.subr.bf16.mxu1 %v2553_v53  ;;  %v3535_v53 = vld [vmem:[#allocation38_spill] sm:$0xff] }
 0x10e   : > { %1255 = vmatpush2.bf16.msra.mxu0 %v3531_v43 }
 0x10f   : > { %1296 = vmatpush2.bf16.msra.mxu1 %v2568_v57  ;;  %1256 = vmatprep.subr.bf16.mxu0 %v3532_v45  ;;  %v3038_v57 = vshrl.u32 %v3439_v49, 7  ;;  %v239_v49 = vld [vmem:[%s3337_s2] sm:$0x3] }
 0x110   : > { %1297 = vmatprep.subr.bf16.mxu1 %v3501_v14  ;;  %v1972_v14 = vld [vmem:[%s2555_s25 + $0x20] sm:$0xff] }
 0x111   : > { %3536 = vst [vmem:[#allocation46_spill] sm:$0xff] %v3038_v57 }
 0x112   : > { %1257 = vmatpush2.bf16.msra.mxu0 %v3533_v47 }
 0x113   : > { %1298 = vmatpush2.bf16.msra.mxu1 %v3502_v61  ;;  %1258 = vmatprep.subr.bf16.mxu0 %v3534_v58  ;;  %v948_v61 = vsub.s32 0, %v3038_v57 }
 0x114   : > { %1299 = vmatprep.subr.bf16.mxu1 %v3503_v1  ;;  %v3052_v1 = vpack.c.bf16 %v1972_v14, %v1972_v14 }
 0x116   : > { %1259 = vmatpush2.bf16.msra.mxu0 %v3535_v53 }
 0x117   : > { %1300 = vmatpush2.bf16.msra.mxu1 %v3504_v42  ;;  %1260 = vmatprep.subr.bf16.mxu0 %v3537_v51  ;;  %v952_v42 = vsub.s32 1, %v3038_v57 }
 0x118   : > { %1301 = vmatprep.subr.bf16.mxu1 %v3505_v44  ;;  %v1979_v44 = vld [vmem:[%s2555_s25 + $0x38] sm:$0xff] }
 0x11a   : > { %1261 = vmatpush2.bf16.msra.mxu0 %v2635_v4 }
 0x11b   : > { %1302 = vmatpush2.bf16.msra.mxu1 %v3506_v46  ;;  %1262 = vmatprep.subr.bf16.mxu0 %v2647_v6  ;;  %v3057_v46 = vrot.slane %v239_v49, %v948_v61  ;;  %v3063_v6 = vpack.c.bf16 %v1979_v44, %v1979_v44 }
 0x11c   : > { %1303 = vmatprep.subr.bf16.mxu1 %v3507_v48  ;;  %v3061_v48 = vrot.slane %v239_v49, %v952_v42 }
 0x11e   : > { %1263 = vmatpush2.bf16.msra.mxu0 %v2657_v54 }
 0x11f   : > { %1304 = vmatpush2.bf16.msra.mxu1 %v3508_v40  ;;  %1314 = vmatprep.subr.bf16.mxu0 %v2672_v63 }
 0x120   : > { %1432 = vmatprep.subr.bf16.mxu1 %v2283_v8 }
 0x121   : > { %v536_v4 = vpop.f32.mrf.mxu0  ;;  %1265 = vmatmul.mubr.bf16.vlgmr.msra.gmra.mxu0 %v3052_v1 }
 0x122   : > { %v737_v51 = vpop.f32.mrf.mxu1  ;;  %1306 = vmatmul.mubr.bf16.vlgmr.msra.gmra.mxu1 %v3052_v1  ;;  %1315 = vmatpush1.bf16.msra.mxu0 %v2681_v5 }
 0x123   : > { %v956_v14 = vadd.f32 %v3057_v46, %v737_v51  ;;  %1433 = vmatpush1.bf16.msra.mxu1 %v3509_v60  ;;  %v538_v61 = vpop.f32.mrf.mxu0  ;;  %1316 = vmatprep.subr.bf16.mxu0 %v2689_v7 }
 0x124   : > { %v739_v57 = vpop.f32.mrf.mxu1  ;;  %1434 = vmatprep.subr.bf16.mxu1 %v3510_v62  ;;  %1346 = vmatprep.mubr.bf16.mxu0 %v2977_v56  ;;  %v964_v62 = vrot.slane %v536_v4, 7  ;;  %v965_v49 = vrot.slane %v538_v61, 7  ;;  %v3538_v4 = vld [vmem:[#allocation47_spill] sm:$0xff] }
 0x125   : > { %958 = vst [vmem:[#allocation2] sm:$0xff] %v956_v14  ;;  %v957_v8 = vadd.f32 %v3061_v48, %v739_v57  ;;  %1464 = vmatprep.mubr.bf16.mxu1 %v3063_v6  ;;  %v540_v42 = vpop.f32.mrf.mxu0 }
 0x126   : > { %v741_v44 = vpop.f32.mrf.mxu1  ;;  %1317 = vmatpush1.bf16.msra.mxu0 %v2700_v3  ;;  %v2168_v42 = vld [vmem:[%s3336_s1 + $0x160] ss:$8 sps:$4 sm:$0xff]  }
 0x127   : > { %959 = vst [vmem:[#allocation2 + $0x8] sm:$0xff] %v957_v8  ;;  %1435 = vmatpush1.bf16.msra.mxu1 %v3511_v0  ;;  %v541_v51 = vpop.f32.mrf.mxu0  ;;  %1318 = vmatprep.subr.bf16.mxu0 %v2707_v59 }
 0x128   : > { %v742_v60 = vpop.f32.mrf.mxu1  ;;  %1436 = vmatprep.subr.bf16.mxu1 %v3512_v9  ;;  %v3539_v9 = vld [vmem:[#allocation48_spill] sm:$0xff] }
 0x12a   : > { %1319 = vmatpush1.bf16.msra.mxu0 %v2715_v10 }
 0x12b   : > { %1437 = vmatpush1.bf16.msra.mxu1 %v3513_v50  ;;  %1320 = vmatprep.subr.bf16.mxu0 %v2722_v12  ;;  %v3540_v50 = vld [vmem:[#allocation49_spill] sm:$0xff] }
 0x12c   : > { %v960_v56 = vld [vmem:[#allocation2] sm:$0xfe]  ;;  %1438 = vmatprep.subr.bf16.mxu1 %v3514_v11  ;;  %v3541_v11 = vld [vmem:[#allocation50_spill] sm:$0xff] }
 0x12d   : > { %v968_v57 = vadd.f32 %v964_v62, %v960_v56 }
 0x12e   : > { %v961_v14 = vld [vmem:[#allocation2 + $0x8] sm:$0xfe]  ;;  %1321 = vmatpush1.bf16.msra.mxu0 %v2729_v55 }
 0x12f   : > { %970 = vst [vmem:[#allocation2] sm:$0xfe] %v968_v57  ;;  %v969_v0 = vadd.f32 %v965_v49, %v961_v14  ;;  %1439 = vmatpush1.bf16.msra.mxu1 %v3515_v13  ;;  %1322 = vmatprep.subr.bf16.mxu0 %v2736_v16  ;;  %v3542_v13 = vld [vmem:[#allocation51_spill] sm:$0xff] }
 0x130   : > { %1440 = vmatprep.subr.bf16.mxu1 %v3516_v2  ;;  %v3543_v2 = vld [vmem:[#allocation52_spill] sm:$0xff]  ;;  %v2174_v49 = vld [vmem:[%s3336_s1 + $0x130] ss:$8 sps:$4 sm:$0xff]  }
 0x131   : > { %971 = vst [vmem:[#allocation2 + $0x8] sm:$0xfe] %v969_v0 }
 0x132   : > { %1323 = vmatpush1.bf16.msra.mxu0 %v2743_v18 }
 0x133   : > { %1441 = vmatpush1.bf16.msra.mxu1 %v3517_v15  ;;  %1324 = vmatprep.subr.bf16.mxu0 %v2750_v20  ;;  %v3544_v15 = vld [vmem:[#allocation53_spill] sm:$0xff] }
 0x134   : > { %1442 = vmatprep.subr.bf16.mxu1 %v3518_v17  ;;  %v3545_v17 = vld [vmem:[#allocation54_spill] sm:$0xff] }
 0x136   : > { %1325 = vmatpush1.bf16.msra.mxu0 %v2757_v22 }
 0x137   : > { %1443 = vmatpush1.bf16.msra.mxu1 %v3519_v19  ;;  %1326 = vmatprep.subr.bf16.mxu0 %v2764_v24  ;;  %v3546_v19 = vld [vmem:[#allocation40_spill] sm:$0xff] }
 0x138   : > { %1444 = vmatprep.subr.bf16.mxu1 %v3520_v21  ;;  %v3547_v21 = vld [vmem:[#allocation55_spill] sm:$0xff] }
 0x13a   : > { %1327 = vmatpush1.bf16.msra.mxu0 %v2771_v26 }
 0x13b   : > { %1445 = vmatpush1.bf16.msra.mxu1 %v3521_v23  ;;  %1328 = vmatprep.subr.bf16.mxu0 %v2778_v28  ;;  %v3548_v23 = vld [vmem:[#allocation42_spill] sm:$0xff] }
 0x13c   : > { %1446 = vmatprep.subr.bf16.mxu1 %v3522_v25  ;;  %v1978_v25 = vld [vmem:[%s2555_s25 + $0x30] sm:$0xff] }
 0x13e   : > { %1329 = vmatpush1.bf16.msra.mxu0 %v2785_v30 }
 0x13f   : > { %1447 = vmatpush1.bf16.msra.mxu1 %v3523_v27  ;;  %1330 = vmatprep.subr.bf16.mxu0 %v2792_v32  ;;  %v3549_v27 = vld [vmem:[#allocation56_spill] sm:$0xff] }
 0x140   : > { %1448 = vmatprep.subr.bf16.mxu1 %v3524_v29  ;;  %v3550_v29 = vld [vmem:[#allocation44_spill] sm:$0xff] }
 0x142   : > { %1331 = vmatpush2.bf16.msra.mxu0 %v2799_v34 }
 0x143   : > { %1449 = vmatpush2.bf16.msra.mxu1 %v3525_v31  ;;  %1332 = vmatprep.subr.bf16.mxu0 %v2806_v36  ;;  %v3132_v31 = vpack.c.bf16 %v1978_v25, %v1978_v25  ;;  %v2178_v25 = vld [vmem:[%s3336_s1 + $0x110] ss:$8 sps:$4 sm:$0xff]  }
 0x144   : > { %1450 = vmatprep.subr.bf16.mxu1 %v3526_v33 }
 0x146   : > { %1333 = vmatpush2.bf16.msra.mxu0 %v2813_v38 }
 0x147   : > { %1451 = vmatpush2.bf16.msra.mxu1 %v3527_v35  ;;  %1334 = vmatprep.subr.bf16.mxu0 %v3538_v4 }
 0x148   : > { %1452 = vmatprep.subr.bf16.mxu1 %v3528_v37 }
 0x14a   : > { %1335 = vmatpush2.bf16.msra.mxu0 %v3539_v9 }
 0x14b   : > { %1453 = vmatpush2.bf16.msra.mxu1 %v3529_v39  ;;  %1336 = vmatprep.subr.bf16.mxu0 %v3540_v50  ;;  %v2166_v39 = vld [vmem:[%s3336_s1 + $0x170] ss:$8 sps:$4 sm:$0xff]  }
 0x14c   : > { %1454 = vmatprep.subr.bf16.mxu1 %v3530_v41 }
 0x14e   : > { %1337 = vmatpush2.bf16.msra.mxu0 %v3541_v11 }
 0x14f   : > { %1455 = vmatpush2.bf16.msra.mxu1 %v3531_v43  ;;  %1338 = vmatprep.subr.bf16.mxu0 %v3542_v13 }
 0x150   : > { %1456 = vmatprep.subr.bf16.mxu1 %v3532_v45 }
 0x152   : > { %1339 = vmatpush2.bf16.msra.mxu0 %v3543_v2 }
 0x153   : > { %1457 = vmatpush2.bf16.msra.mxu1 %v3533_v47  ;;  %1340 = vmatprep.subr.bf16.mxu0 %v2862_v52  ;;  %v973_v47 = vld [vmem:[#allocation2 + $0x8] sm:$0x7f] }
 0x154   : > { %1458 = vmatprep.subr.bf16.mxu1 %v3534_v58  ;;  %v3551_v58 = vld [vmem:[#allocation57_spill] sm:$0xff] }
 0x156   : > { %1341 = vmatpush2.bf16.msra.mxu0 %v3544_v15 }
 0x157   : > { %1459 = vmatpush2.bf16.msra.mxu1 %v3535_v53  ;;  %1342 = vmatprep.subr.bf16.mxu0 %v3545_v17  ;;  %v2165_v53 = vld [vmem:[%s3336_s1 + $0x174] ss:$8 sps:$4 sm:$0xff]  }
 0x158   : > { %1460 = vmatprep.subr.bf16.mxu1 %v3546_v19 }
 0x15a   : > { %1343 = vmatpush2.bf16.msra.mxu0 %v3547_v21 }
 0x15b   : > { %1461 = vmatpush2.bf16.msra.mxu1 %v3548_v23  ;;  %1344 = vmatprep.subr.bf16.mxu0 %v3549_v27  ;;  %v2176_v23 = vld [vmem:[%s3336_s1 + $0x120] ss:$8 sps:$4 sm:$0xff]  }
 0x15c   : > { %1462 = vmatprep.subr.bf16.mxu1 %v3550_v29  ;;  %v2180_v29 = vld [vmem:[%s3336_s1 + $0x100] ss:$8 sps:$4 sm:$0xff]  }
 0x15e   : > { %1345 = vmatpush2.bf16.msra.mxu0 %v3551_v58 }
 0x15f   : > { %1463 = vmatpush2.bf16.msra.mxu1 %v2657_v54  ;;  %1473 = vmatprep.subr.bf16.mxu0 %v2165_v53  ;;  %v972_v54 = vld [vmem:[#allocation2] sm:$0x7f]  ;;  %v3553_v53 = vld [vmem:[#allocation29_spill] sm:$0xff] }
 0x160   : > { %1514 = vmatprep.subr.bf16.mxu1 %v2672_v63  ;;  %v2167_v63 = vld [vmem:[%s3336_s1 + $0x164] ss:$8 sps:$4 sm:$0xff]  }
 0x161   : > { %v938_v33 = vpop.f32.mrf.mxu0  ;;  %1347 = vmatmul.mubr.bf16.vlgmr.msra.gmra.mxu0 %v3052_v1 }
 0x162   : > { %v3141_v35 = vpop.f32.mrf.mxu1  ;;  %1465 = vmatmul.mubr.bf16.vlgmr.msra.gmra.mxu1 %v3132_v31  ;;  %v976_v37 = vrot.slane %v938_v33, 1  ;;  %1474 = vmatpush1.bf16.msra.mxu0 %v2166_v39  ;;  %v3556_v33 = vld [vmem:[#allocation35_spill] sm:$0xff] }
 0x163   : > { %1515 = vmatpush1.bf16.msra.mxu1 %v2681_v5  ;;  %v940_v41 = vpop.f32.mrf.mxu0  ;;  %1475 = vmatprep.subr.bf16.mxu0 %v2167_v63 }
 0x164   : > { %v3151_v1 = vpop.f32.mrf.mxu1  ;;  %1516 = vmatprep.subr.bf16.mxu1 %v2689_v7  ;;  %v980_v43 = vadd.f32 %v976_v37, %v972_v54  ;;  %v977_v45 = vrot.slane %v940_v41, 1  ;;  %1505 = vmatprep.mubr.bf16.mxu0 %v3063_v6  ;;  %v2169_v7 = vld [vmem:[%s3336_s1 + $0x154] ss:$8 sps:$4 sm:$0xff]  }
 0x165   : > { %1546 = vmatprep.mubr.bf16.mxu1 %v3063_v6  ;;  %v942_v61 = vpop.f32.mrf.mxu0  ;;  %v2170_v6 = vld [vmem:[%s3336_s1 + $0x150] ss:$8 sps:$4 sm:$0xff]   ;;  %v1164_v63 = vrot.slane %v3151_v1, 7 }
 0x166   : > { %v1070_v5 = vpop.f32.mrf.mxu1  ;;  %982 = vst [vmem:[#allocation2] sm:$0x7f] %v980_v43  ;;  %v981_v8 = vadd.f32 %v977_v45, %v973_v47  ;;  %1476 = vmatpush1.bf16.msra.mxu0 %v2168_v42 }
 0x167   : > { %1517 = vmatpush1.bf16.msra.mxu1 %v2700_v3  ;;  %v943_v44 = vpop.f32.mrf.mxu0  ;;  %1477 = vmatprep.subr.bf16.mxu0 %v2169_v7  ;;  %v2171_v3 = vld [vmem:[%s3336_s1 + $0x144] ss:$8 sps:$4 sm:$0xff]  }
 0x168   : > { %v1071_v51 = vpop.f32.mrf.mxu1  ;;  %1518 = vmatprep.subr.bf16.mxu1 %v2707_v59  ;;  %983 = vst [vmem:[#allocation2 + $0x8] sm:$0x7f] %v981_v8  ;;  %v2172_v59 = vld [vmem:[%s3336_s1 + $0x140] ss:$8 sps:$4 sm:$0xff]  }
 0x16a   : > { %1478 = vmatpush1.bf16.msra.mxu0 %v2170_v6 }
 0x16b   : > { %1519 = vmatpush1.bf16.msra.mxu1 %v2715_v10  ;;  %1479 = vmatprep.subr.bf16.mxu0 %v2171_v3  ;;  %v2173_v10 = vld [vmem:[%s3336_s1 + $0x134] ss:$8 sps:$4 sm:$0xff]  }
 0x16c   : > { %1520 = vmatprep.subr.bf16.mxu1 %v2722_v12 }
 0x16d   : > { %v984_v60 = vld [vmem:[#allocation2] sm:$0xff] }
 0x16e   : > { %1480 = vmatpush1.bf16.msra.mxu0 %v2172_v59  ;;  %v990_v62 = vmul.f32 0.5, %v984_v60 }
 0x16f   : > { %1521 = vmatpush1.bf16.msra.mxu1 %v2729_v55  ;;  %1481 = vmatprep.subr.bf16.mxu0 %v2173_v10  ;;  %v985_v56 = vld [vmem:[#allocation2 + $0x8] sm:$0xff] }
 0x170   : > { %1522 = vmatprep.subr.bf16.mxu1 %v2736_v16  ;;  %vm994_vm0 = vcmp.ge.f32.partialorder %v990_v62, 1.0  ;;  %v991_v12 = vmul.f32 0.5, %v985_v56  ;;  %v2175_v55 = vld [vmem:[%s3336_s1 + $0x124] ss:$8 sps:$4 sm:$0xff]   ;;  %v2210_v16 = vmov 0.0  }
 0x171   : > { %v3182_v57 = vsel %vm994_vm0, 0.0, %v990_v62  ;;  %v3193_v14 = vsel %vm994_vm0, 1.0, %v2210_v16 }
 0x172   : > { %1482 = vmatpush1.bf16.msra.mxu0 %v2174_v49  ;;  %vm995_vm1 = vcmp.ge.f32.partialorder %v991_v12, 1.0  ;;  %v1013_v7 = vrot.slane %v3193_v14, 4 }
 0x173   : > { %1523 = vmatpush1.bf16.msra.mxu1 %v2743_v18  ;;  %1483 = vmatprep.subr.bf16.mxu0 %v2175_v55  ;;  %v3195_v0 = vsel %vm995_vm1, 0.0, %v991_v12  ;;  %v3198_v19 = vsel %vm995_vm1, 1.0, %v2210_v16 }
 0x174   : > { %1524 = vmatprep.subr.bf16.mxu1 %v2750_v20  ;;  %v1990_v18 = vpack.c.bf16 %v3198_v19, %v3193_v14  ;;  %v2177_v20 = vld [vmem:[%s3336_s1 + $0x114] ss:$8 sps:$4 sm:$0xff]   ;;  %v1014_v3 = vadd.f32 %v3193_v14, %v1013_v7 }
 0x176   : > { %1484 = vmatpush1.bf16.msra.mxu0 %v2176_v23  ;;  %1012 = vst [vmem:[%s3206_s20] sm:$0xff] %v1990_v18  ;;  %v1015_v12 = vrot.slane %v1014_v3, 2 }
 0x177   : > { %1525 = vmatpush1.bf16.msra.mxu1 %v2757_v22  ;;  %1485 = vmatprep.subr.bf16.mxu0 %v2177_v20  ;;  %v2179_v22 = vld [vmem:[%s3336_s1 + $0x104] ss:$8 sps:$4 sm:$0xff]  }
 0x178   : > { %1526 = vmatprep.subr.bf16.mxu1 %v2764_v24  ;;  %v2181_v24 = vld [vmem:[%s3336_s1 + $0x1f4] ss:$8 sps:$4 sm:$0xff]  }
 0x17a   : > { %1486 = vmatpush1.bf16.msra.mxu0 %v2178_v25 }
 0x17b   : > { %1527 = vmatpush1.bf16.msra.mxu1 %v2771_v26  ;;  %1487 = vmatprep.subr.bf16.mxu0 %v2179_v22  ;;  %v2182_v26 = vld [vmem:[%s3336_s1 + $0x1f0] ss:$8 sps:$4 sm:$0xff]  }
 0x17c   : > { %1528 = vmatprep.subr.bf16.mxu1 %v2778_v28  ;;  %v2183_v28 = vld [vmem:[%s3336_s1 + $0x1e4] ss:$8 sps:$4 sm:$0xff]  }
 0x17e   : > { %1488 = vmatpush1.bf16.msra.mxu0 %v2180_v29 }
 0x17f   : > { %1529 = vmatpush1.bf16.msra.mxu1 %v2785_v30  ;;  %1489 = vmatprep.subr.bf16.mxu0 %v2181_v24  ;;  %v2184_v30 = vld [vmem:[%s3336_s1 + $0x1e0] ss:$8 sps:$4 sm:$0xff]  }
 0x180   : > { %1530 = vmatprep.subr.bf16.mxu1 %v2792_v32  ;;  %v2185_v32 = vld [vmem:[%s3336_s1 + $0x1d4] ss:$8 sps:$4 sm:$0xff]  }
 0x182   : > { %1490 = vmatpush2.bf16.msra.mxu0 %v2182_v26 }
 0x183   : > { %1531 = vmatpush2.bf16.msra.mxu1 %v2799_v34  ;;  %1491 = vmatprep.subr.bf16.mxu0 %v2183_v28  ;;  %v3552_v34 = vld [vmem:[#allocation27_spill] sm:$0xff] }
 0x184   : > { %1532 = vmatprep.subr.bf16.mxu1 %v2806_v36  ;;  %v3554_v36 = vld [vmem:[#allocation31_spill] sm:$0xff] }
 0x186   : > { %1492 = vmatpush2.bf16.msra.mxu0 %v2184_v30 }
 0x187   : > { %1533 = vmatpush2.bf16.msra.mxu1 %v2813_v38  ;;  %1493 = vmatprep.subr.bf16.mxu0 %v2185_v32  ;;  %v3555_v38 = vld [vmem:[#allocation33_spill] sm:$0xff] }
 0x188   : > { %1534 = vmatprep.subr.bf16.mxu1 %v3538_v4  ;;  %v3557_v4 = vld [vmem:[#allocation37_spill] sm:$0xff] }
 0x18a   : > { %1494 = vmatpush2.bf16.msra.mxu0 %v3552_v34 }
 0x18b   : > { %1535 = vmatpush2.bf16.msra.mxu1 %v3539_v9  ;;  %1495 = vmatprep.subr.bf16.mxu0 %v3553_v53  ;;  %v3558_v9 = vld [vmem:[#allocation39_spill] sm:$0xff] }
 0x18c   : > { %1536 = vmatprep.subr.bf16.mxu1 %v3540_v50  ;;  %v3559_v50 = vld [vmem:[#allocation41_spill] sm:$0xff] }
 0x18e   : > { %1496 = vmatpush2.bf16.msra.mxu0 %v3554_v36 }
 0x18f   : > { %1537 = vmatpush2.bf16.msra.mxu1 %v3541_v11  ;;  %1497 = vmatprep.subr.bf16.mxu0 %v3555_v38  ;;  %v3560_v11 = vld [vmem:[#allocation43_spill] sm:$0xff] }
 0x190   : > { %1538 = vmatprep.subr.bf16.mxu1 %v3542_v13  ;;  %v3561_v13 = vld [vmem:[#allocation45_spill] sm:$0xff] }
 0x192   : > { %1498 = vmatpush2.bf16.msra.mxu0 %v3556_v33 }
 0x193   : > { %1539 = vmatpush2.bf16.msra.mxu1 %v3543_v2  ;;  %1499 = vmatprep.subr.bf16.mxu0 %v3557_v4 }
 0x194   : > { %1540 = vmatprep.subr.bf16.mxu1 %v2862_v52 }
 0x196   : > { %1500 = vmatpush2.bf16.msra.mxu0 %v3558_v9 }
 0x197   : > { %1541 = vmatpush2.bf16.msra.mxu1 %v3544_v15  ;;  %1501 = vmatprep.subr.bf16.mxu0 %v3559_v50 }
 0x198   : > { %1542 = vmatprep.subr.bf16.mxu1 %v3545_v17 }
 0x19a   : > { %1502 = vmatpush2.bf16.msra.mxu0 %v3560_v11 }
 0x19b   : > { %1543 = vmatpush2.bf16.msra.mxu1 %v3547_v21  ;;  %1503 = vmatprep.subr.bf16.mxu0 %v3561_v13 }
 0x19c   : > { %1544 = vmatprep.subr.bf16.mxu1 %v3549_v27 }
 0x19e   : > { %1504 = vmatpush2.bf16.msra.mxu0 %v3508_v40 }
 0x19f   : > { %1545 = vmatpush2.bf16.msra.mxu1 %v3551_v58  ;;  %v1163_v58 = vrot.slane %v3141_v35, 7  ;;  %v1019_v35 = vrot.slane %v3198_v19, 4 }
 0x1a1   : > { %v1107_v52 = vpop.f32.mrf.mxu0  ;;  %1506 = vmatmul.mubr.bf16.vlgmr.msra.gmra.mxu0 %v3132_v31  ;;  %v1020_v62 = vadd.f32 %v3198_v19, %v1019_v35  ;;  %v1016_v19 = vadd.f32 %v1015_v12, %v1014_v3 }
 0x1a2   : > { %1547 = vmatmul.mubr.bf16.vlgmr.msra.gmra.mxu1 %v3132_v31  ;;  %v1148_v2 = vpop.f32.mrf.mxu1  ;;  %v1155_v15 = vadd.f32 %v1107_v52, %v3057_v46 }
 0x1a3   : > { %v1109_v17 = vpop.f32.mrf.mxu0  ;;  %v1175_v47 = vrot.slane %v1148_v2, 1  ;;  %v1021_v23 = vrot.slane %v1020_v62, 2 }
 0x1a4   : > { %v1150_v37 = vpop.f32.mrf.mxu1  ;;  %1157 = vst [vmem:[#allocation2] sm:$0xff] %v1155_v15  ;;  %v1156_v21 = vadd.f32 %v1109_v17, %v3061_v48 }
 0x1a5   : > { %v1111_v39 = vpop.f32.mrf.mxu0  ;;  %v1176_v61 = vrot.slane %v1150_v37, 1  ;;  %v1022_v24 = vadd.f32 %v1021_v23, %v1020_v62 }
 0x1a6   : > { %v1152_v54 = vpop.f32.mrf.mxu1  ;;  %1158 = vst [vmem:[#allocation2 + $0x8] sm:$0xff] %v1156_v21 }
 0x1a7   : > { %v1112_v27 = vpop.f32.mrf.mxu0  ;;  %v1023_v34 = vrot.slane %v1022_v24, 1 }
 0x1a8   : > { %v1153_v40 = vpop.f32.mrf.mxu1 }
 0x1a9   : > { %v1024_v9 = vadd.f32 %v1023_v34, %v1022_v24 }
 0x1ab   : > { %v1159_v41 = vld [vmem:[#allocation2] sm:$0xfe] }
 0x1ac   : > { %v1167_v43 = vadd.f32 %v1163_v58, %v1159_v41 }
 0x1ad   : > { %v1160_v31 = vld [vmem:[#allocation2 + $0x8] sm:$0xfe] }
 0x1ae   : > { %1169 = vst [vmem:[#allocation2] sm:$0xfe] %v1167_v43  ;;  %v1168_v45 = vadd.f32 %v1164_v63, %v1160_v31 }
 0x1b0   : > { %1170 = vst [vmem:[#allocation2 + $0x8] sm:$0xfe] %v1168_v45 }
 0x1b5   : > { %v1171_v5 = vld [vmem:[#allocation2] sm:$0x7f] }
 0x1b6   : > { %v1179_v8 = vadd.f32 %v1175_v47, %v1171_v5 }
 0x1b7   : > { %v1172_v42 = vld [vmem:[#allocation2 + $0x8] sm:$0x7f] }
 0x1b8   : > { %1181 = vst [vmem:[#allocation2] sm:$0x7f] %v1179_v8  ;;  %v1180_v44 = vadd.f32 %v1176_v61, %v1172_v42 }
 0x1ba   : > { %1182 = vst [vmem:[#allocation2 + $0x8] sm:$0x7f] %v1180_v44 }
 0x1bf   : > { %v1183_v51 = vld [vmem:[#allocation2] sm:$0xff] }
 0x1c0   : > { %v1187_v1 = vsub.f32 %v1183_v51, %v3182_v57 }
 0x1c1   : > { %v1184_v6 = vld [vmem:[#allocation2 + $0x8] sm:$0xff] }
 0x1c2   : > { %v1189_v60 = vmul.f32 0.5, %v1187_v1  ;;  %v1188_v59 = vsub.f32 %v1184_v6, %v3195_v0 }
 0x1c4   : > { %v1191_v10 = vadd.f32 %v1189_v60, %v3182_v57  ;;  %v1190_v56 = vmul.f32 0.5, %v1188_v59 }
 0x1c6   : > { %vm1193_vm2 = vcmp.ge.f32.partialorder %v1191_v10, 1.0  ;;  %v1192_v49 = vadd.f32 %v1190_v56, %v3195_v0  ;;  %v1017_v0 = vrot.slane %v1016_v19, 1 }
 0x1c7   : > { %v3281_v55 = vsel %vm1193_vm2, 0.0, %v1191_v10  ;;  %v1968_v18 = vsel %vm1193_vm2, 1.0, %v2210_v16 }
 0x1c8   : > { %v1213_v20 = vrot.slane %v1968_v18, 4  ;;  %vm1194_vm3 = vcmp.ge.f32.partialorder %v1192_v49, 1.0  ;;  %v1018_v38 = vadd.f32 %v1017_v0, %v1016_v19 }
 0x1c9   : > { %v3284_v14 = vsel %vm1194_vm3, 0.0, %v1192_v49  ;;  %v1969_v25 = vsel %vm1194_vm3, 1.0, %v2210_v16 }
 0x1ca   : > { %v1214_v22 = vadd.f32 %v1968_v18, %v1213_v20  ;;  %v1991_v57 = vpack.c.bf16 %v1969_v25, %v1968_v18  ;;  %v1219_v29 = vrot.slane %v1969_v25, 4 }
 0x1cc   : > { %v1215_v26 = vrot.slane %v1214_v22, 2  ;;  %1971 = vst [vmem:[%s3206_s20 + $0x8] sm:$0xff] %v1991_v57  ;;  %v1220_v28 = vadd.f32 %v1969_v25, %v1219_v29 }
 0x1ce   : > { %v1216_v30 = vadd.f32 %v1215_v26, %v1214_v22  ;;  %v1221_v32 = vrot.slane %v1220_v28, 2 }
 0x1d0   : > { %v1217_v53 = vrot.slane %v1216_v30, 1  ;;  %v1222_v36 = vadd.f32 %v1221_v32, %v1220_v28 }
 0x1d2   : > { %v1218_v33 = vadd.f32 %v1217_v53, %v1216_v30  ;;  %v1223_v4 = vrot.slane %v1222_v36, 1 }
 0x1d4   : > { %v3288_v50 = vadd.f32 %v1218_v33, %v1018_v38  ;;  %v1224_v11 = vadd.f32 %v1223_v4, %v1222_v36 }
 0x1d6   : > { %v3290_v13 = vadd.f32 %v1224_v11, %v1024_v9 }
 0x1e1   : > { %v1266_v52 = vpop.f32.mrf.mxu0 }
 0x1e2   : > { %v1307_v2 = vpop.f32.mrf.mxu1  ;;  %v1363_v58 = vrot.slane %v1266_v52, 7 }
 0x1e3   : > { %v1355_v15 = vadd.f32 %v1307_v2, %v3057_v46  ;;  %v1268_v17 = vpop.f32.mrf.mxu0 }
 0x1e4   : > { %v1309_v37 = vpop.f32.mrf.mxu1  ;;  %v1364_v63 = vrot.slane %v1268_v17, 7 }
 0x1e5   : > { %1357 = vst [vmem:[#allocation2] sm:$0xff] %v1355_v15  ;;  %v1356_v21 = vadd.f32 %v1309_v37, %v3061_v48  ;;  %v1270_v39 = vpop.f32.mrf.mxu0 }
 0x1e6   : > { %v1311_v54 = vpop.f32.mrf.mxu1 }
 0x1e7   : > { %1358 = vst [vmem:[#allocation2 + $0x8] sm:$0xff] %v1356_v21  ;;  %v1271_v27 = vpop.f32.mrf.mxu0 }
 0x1e8   : > { %v1312_v40 = vpop.f32.mrf.mxu1 }
 0x1ec   : > { %v1359_v41 = vld [vmem:[#allocation2] sm:$0xfe] }
 0x1ed   : > { %v1367_v43 = vadd.f32 %v1363_v58, %v1359_v41 }
 0x1ee   : > { %v1360_v31 = vld [vmem:[#allocation2 + $0x8] sm:$0xfe] }
 0x1ef   : > { %1369 = vst [vmem:[#allocation2] sm:$0xfe] %v1367_v43  ;;  %v1368_v45 = vadd.f32 %v1364_v63, %v1360_v31 }
 0x1f1   : > { %1370 = vst [vmem:[#allocation2 + $0x8] sm:$0xfe] %v1368_v45 }
 0x1f6   : > { %v1371_v8 = vld [vmem:[#allocation2] sm:$0x7f] }
 0x1f8   : > { %v1372_v35 = vld [vmem:[#allocation2 + $0x8] sm:$0x7f] }
 0x221   : > { %v1348_v47 = vpop.f32.mrf.mxu0 }
 0x222   : > { %v1466_v61 = vpop.f32.mrf.mxu1  ;;  %v1375_v5 = vrot.slane %v1348_v47, 1 }
 0x223   : > { %v1350_v42 = vpop.f32.mrf.mxu0  ;;  %v1563_v27 = vrot.slane %v1466_v61, 7 }
 0x224   : > { %v1468_v44 = vpop.f32.mrf.mxu1  ;;  %v1379_v7 = vadd.f32 %v1375_v5, %v1371_v8  ;;  %v1376_v51 = vrot.slane %v1350_v42, 1 }
 0x225   : > { %v1352_v1 = vpop.f32.mrf.mxu0 }
 0x226   : > { %v1470_v6 = vpop.f32.mrf.mxu1  ;;  %1381 = vst [vmem:[#allocation2] sm:$0x7f] %v1379_v7  ;;  %v1380_v3 = vadd.f32 %v1376_v51, %v1372_v35 }
 0x227   : > { %v1353_v60 = vpop.f32.mrf.mxu0 }
 0x228   : > { %v1471_v59 = vpop.f32.mrf.mxu1  ;;  %1382 = vst [vmem:[#allocation2 + $0x8] sm:$0x7f] %v1380_v3 }
 0x22d   : > { %v1383_v62 = vld [vmem:[#allocation2] sm:$0xff] }
 0x22e   : > { %v1387_v10 = vsub.f32 %v1383_v62, %v3281_v55 }
 0x22f   : > { %v1384_v56 = vld [vmem:[#allocation2 + $0x8] sm:$0xff] }
 0x230   : > { %v1389_v12 = vmul.f32 0.5, %v1387_v10  ;;  %v1388_v49 = vsub.f32 %v1384_v56, %v3284_v14  ;;  %v2211_v56 = vmov 1966171168  }
 0x232   : > { %v1391_v18 = vadd.f32 %v1389_v12, %v3281_v55  ;;  %v1390_v23 = vmul.f32 0.5, %v1388_v49  ;;  %v1631_v12 = vunpack.c.l.s4 %v2211_v56 }
 0x234   : > { %vm1393_vm4 = vcmp.ge.f32.partialorder %v1391_v18, 1.0  ;;  %v1392_v20 = vadd.f32 %v1390_v23, %v3284_v14 }
 0x235   : > { %v1974_v25 = vsel %vm1393_vm4, 1.0, %v2210_v16  ;;  %v1395_v19 = vsel %vm1393_vm4, 0.0, %v1391_v18 }
 0x236   : > { %v1413_v22 = vrot.slane %v1974_v25, 4  ;;  %vm1394_vm5 = vcmp.ge.f32.partialorder %v1392_v20, 1.0 }
 0x237   : > { %v1975_v57 = vsel %vm1394_vm5, 1.0, %v2210_v16  ;;  %v1396_v29 = vsel %vm1394_vm5, 0.0, %v1392_v20 }
 0x238   : > { %v1414_v24 = vadd.f32 %v1974_v25, %v1413_v22  ;;  %v1992_v26 = vpack.c.bf16 %v1975_v57, %v1974_v25  ;;  %v1419_v28 = vrot.slane %v1975_v57, 4  ;;  %v1632_v25 = vunpack.c.0.s8 %v1631_v12 }
 0x23a   : > { %v1415_v0 = vrot.slane %v1414_v24, 2  ;;  %1977 = vst [vmem:[%s3206_s20 + $0x10] sm:$0xff] %v1992_v26  ;;  %v1420_v30 = vadd.f32 %v1975_v57, %v1419_v28 }
 0x23c   : > { %v1416_v32 = vadd.f32 %v1415_v0, %v1414_v24  ;;  %v1421_v55 = vrot.slane %v1420_v30, 2 }
 0x23e   : > { %v1417_v34 = vrot.slane %v1416_v32, 1  ;;  %v1422_v53 = vadd.f32 %v1421_v55, %v1420_v30  ;;  %v3563_v30 = vlaneseq  ;;  %v1698_v55 = vld [vmem:[%s3206_s20] sm:$0xff] (%p2268_p5) }
 0x23f   : > { %1699 = vst [vmem:[%s1663_s5] sm:$0xff] (%p2268_p5), %v1698_v55 }
 0x240   : > { %v1418_v36 = vadd.f32 %v1417_v34, %v1416_v32  ;;  %v1423_v14 = vrot.slane %v1422_v53, 1  ;;  %vm1647_vm8 = vcmp.lt.s32.totalorder %v3563_v30, 256  ;;  %v1700_v34 = vld [vmem:[%s3206_s20 + $0x8] sm:$0xff] (%p2268_p5) }
 0x241   : > { %1701 = vst [vmem:[%s1663_s5 + $0x10] sm:$0xff] (%p2268_p5), %v1700_v34 }
 0x242   : > { %v1425_v38 = vadd.f32 %v1418_v36, %v3288_v50  ;;  %v1424_v33 = vadd.f32 %v1423_v14, %v1422_v53  ;;  %v1564_v50 = vrot.slane %v1468_v44, 7  ;;  %v1702_v53 = vld [vmem:[%s3206_s20 + $0x10] sm:$0xff] (%p2268_p5) }
 0x243   : > { %1703 = vst [vmem:[%s1663_s5 + $0x20] sm:$0xff] (%p2268_p5), %v1702_v53 }
 0x244   : > { %v1426_v4 = vadd.f32 %v1424_v33, %v3290_v13 }
 0x261   : > { %v1507_v9 = vpop.f32.mrf.mxu0 }
 0x262   : > { %v1548_v11 = vpop.f32.mrf.mxu1  ;;  %v1555_v52 = vadd.f32 %v1507_v9, %v3057_v46 }
 0x263   : > { %v1509_v2 = vpop.f32.mrf.mxu0  ;;  %v1575_v63 = vrot.slane %v1548_v11, 1 }
 0x264   : > { %v1550_v15 = vpop.f32.mrf.mxu1  ;;  %1557 = vst [vmem:[#allocation2] sm:$0xff] %v1555_v52  ;;  %v1556_v17 = vadd.f32 %v1509_v2, %v3061_v48 }
 0x265   : > { %v1511_v37 = vpop.f32.mrf.mxu0  ;;  %v1576_v31 = vrot.slane %v1550_v15, 1 }
 0x266   : > { %v1552_v21 = vpop.f32.mrf.mxu1  ;;  %1558 = vst [vmem:[#allocation2 + $0x8] sm:$0xff] %v1556_v17 }
 0x267   : > { %v1512_v39 = vpop.f32.mrf.mxu0 }
 0x268   : > { %v1553_v54 = vpop.f32.mrf.mxu1 }
 0x26b   : > { %v1559_v40 = vld [vmem:[#allocation2] sm:$0xfe] }
 0x26c   : > { %v1567_v58 = vadd.f32 %v1563_v27, %v1559_v40 }
 0x26d   : > { %v1560_v41 = vld [vmem:[#allocation2 + $0x8] sm:$0xfe] }
 0x26e   : > { %1569 = vst [vmem:[#allocation2] sm:$0xfe] %v1567_v58  ;;  %v1568_v13 = vadd.f32 %v1564_v50, %v1560_v41 }
 0x270   : > { %1570 = vst [vmem:[#allocation2 + $0x8] sm:$0xfe] %v1568_v13 }
 0x275   : > { %v1571_v46 = vld [vmem:[#allocation2] sm:$0x7f] }
 0x276   : > { %v1579_v43 = vadd.f32 %v1575_v63, %v1571_v46 }
 0x277   : > { %v1572_v45 = vld [vmem:[#allocation2 + $0x8] sm:$0x7f] }
 0x278   : > { %1581 = vst [vmem:[#allocation2] sm:$0x7f] %v1579_v43  ;;  %v1580_v48 = vadd.f32 %v1576_v31, %v1572_v45 }
 0x27a   : > { %1582 = vst [vmem:[#allocation2 + $0x8] sm:$0x7f] %v1580_v48 }
 0x27f   : > { %v1583_v47 = vld [vmem:[#allocation2] sm:$0xff] }
 0x280   : > { %v1587_v5 = vsub.f32 %v1583_v47, %v1395_v19 }
 0x281   : > { %v1584_v8 = vld [vmem:[#allocation2 + $0x8] sm:$0xff] }
 0x282   : > { %v1589_v61 = vmul.f32 0.5, %v1587_v5  ;;  %v1588_v42 = vsub.f32 %v1584_v8, %v1396_v29 }
 0x284   : > { %v1591_v44 = vadd.f32 %v1589_v61, %v1395_v19  ;;  %v1590_v7 = vmul.f32 0.5, %v1588_v42 }
 0x286   : > { %vm1593_vm6 = vcmp.ge.f32.partialorder %v1591_v44, 1.0  ;;  %v1592_v51 = vadd.f32 %v1590_v7, %v1396_v29  ;;  %v3562_v29 = vld [vmem:[#allocation46_spill] sm:$0xff] }
 0x287   : > { %v1980_v35 = vsel %vm1593_vm6, 1.0, %v2210_v16  ;;  %v1635_v24 = vsub.s32 %v1632_v25, %v3562_v29 }
 0x288   : > { %v1613_v1 = vrot.slane %v1980_v35, 4  ;;  %vm1594_vm7 = vcmp.ge.f32.partialorder %v1592_v51, 1.0 }
 0x289   : > { %v1981_v6 = vsel %vm1594_vm7, 1.0, %v2210_v16 }
 0x28a   : > { %v1614_v3 = vadd.f32 %v1980_v35, %v1613_v1  ;;  %v1993_v60 = vpack.c.bf16 %v1981_v6, %v1980_v35  ;;  %v1619_v59 = vrot.slane %v1981_v6, 4 }
 0x28c   : > { %v1615_v62 = vrot.slane %v1614_v3, 2  ;;  %1983 = vst [vmem:[%s3206_s20 + $0x18] sm:$0xff] %v1993_v60  ;;  %v1620_v10 = vadd.f32 %v1981_v6, %v1619_v59 }
 0x28e   : > { %v1616_v49 = vadd.f32 %v1615_v62, %v1614_v3  ;;  %v1621_v18 = vrot.slane %v1620_v10, 2 }
 0x290   : > { %v1617_v23 = vrot.slane %v1616_v49, 1  ;;  %v1622_v20 = vadd.f32 %v1621_v18, %v1620_v10 }
 0x292   : > { %v1618_v19 = vadd.f32 %v1617_v23, %v1616_v49  ;;  %v1623_v22 = vrot.slane %v1622_v20, 1 }
 0x293   : > { %v1704_v36 = vld [vmem:[%s3206_s20 + $0x18] sm:$0xff] (%p2268_p5) }
 0x294   : > { %v1625_v57 = vadd.f32 %v1618_v19, %v1425_v38  ;;  %v1624_v16 = vadd.f32 %v1623_v22, %v1622_v20  ;;  %1705 = vst [vmem:[%s1663_s5 + $0x30] sm:$0xff] (%p2268_p5), %v1704_v36 }
 0x296   : > { %v1626_v26 = vadd.f32 %v1624_v16, %v1426_v4 }
 0x298   : > { %v1629_v28 = vcombine.low %v1625_v57, %v1626_v26 }
 0x29a   : > { %v1636_v0 = vrot.slane %v1629_v28, %v1635_v24  ;;  %1660 = sbr.rel (!%p2268_p5) target bundleno = 671 (0x29f), region = 59 }
 0x29c   : > { %v1643_v32 = vrot.slane %v1636_v0, %v1635_v24 }
 0x29e   : > { %1649 = vst.msk [vmem:[%s236_s26] sm:$0x3] %vm1647_vm8, %v1643_v32 }
 0x29f PF: > { %p12_p11 = scmp.ge.s32.totalorder %s2256_s19, 4   ;;  %s3564_s15 = smov %s2204_s16 }
 0x2a0   : > { %s3565_s16 = smov %s2266_s22  ;;  %s3566_s17 = smov %s2256_s19 }
 0x2a1   :  { %14 = sbr.rel (!%p12_p11) target bundleno = 2 (0x2), region = 148 }

</bundles_post_ra>
